<compile_context>
chip_gen: v6e
topology: v6e:2x2x1
jax: 0.10.0
libtpu: 0.0.40
codegen_flags: <defaults>
</compile_context>

<pallas_src>
from functools import partial

import jax
import jax.numpy as jnp
from jax.experimental import pallas as pl
from jax.experimental.pallas import tpu as pltpu


def linformer_kernel(x_ref, wqkv_ref, e_ref, wout_ref, bias_ref, o_ref,
                     *, heads, scale):
    N = x_ref.shape[1]
    D = x_ref.shape[2]
    hd = D // heads
    cdt = x_ref.dtype        # matmul operand dtype (f32 or bf16); accum is f32

    xb = x_ref[0]                                                    # (N, D)

    # Fused full-width QKV projection: (N, D) @ (D, 3D) -> (N, 3D).
    qkv = jnp.dot(xb, wqkv_ref[...],
                  preferred_element_type=jnp.float32).astype(cdt)    # (N, 3D)
    q = qkv[:, :D]                                                   # (N, D)
    kv = qkv[:, D:]                                                  # (N, 2D) = [k | v]

    # Linformer low-rank projection of K and V for all heads in one matmul:
    # contract the sequence axis of E against kv (no explicit transpose).
    kv_proj = jax.lax.dot_general(
        e_ref[...], kv, dimension_numbers=(((0,), (0,)), ((), ())),
        preferred_element_type=jnp.float32).astype(cdt)              # (K, 2D)
    k_proj = kv_proj[:, :D]                                          # (K, D)
    v_proj = kv_proj[:, D:]                                          # (K, D)

    # Per-head attention over the K compressed positions.
    # heads is small and static -> unrolled Python loop.
    outs = []
    for h in range(heads):
        sl = slice(h * hd, (h + 1) * hd)
        q_h = q[:, sl]                                               # (N, hd)
        k_h = k_proj[:, sl]                                          # (K, hd)
        v_h = v_proj[:, sl]                                          # (K, hd)

        # scores: contract head_dim of q with head_dim of k_proj (no .T)
        s = jax.lax.dot_general(
            q_h, k_h, dimension_numbers=(((1,), (1,)), ((), ())),
            preferred_element_type=jnp.float32) * scale              # (N, K)

        # numerically-stable softmax in f32; the 1/denom is folded into the
        # (N, hd) attn@V result via pl.reciprocal (EUP), not a VALU divide.
        m = jnp.max(s, axis=-1, keepdims=True)
        p = jnp.exp(s - m)
        denom = jnp.sum(p, axis=-1, keepdims=True)
        o_h = jnp.dot(p.astype(cdt), v_h,
                      preferred_element_type=jnp.float32)            # (N, hd)
        outs.append(o_h * pl.reciprocal(denom))

    out_heads = jnp.concatenate(outs, axis=-1).astype(cdt)           # (N, D)

    # Full-width output projection + bias.
    y = jnp.dot(out_heads, wout_ref[...],
                preferred_element_type=jnp.float32)                  # (N, D)
    o_ref[0] = y + bias_ref[...]          # bias (1, D) broadcasts over N


def linformer_self_attention(x, w_qkv, E, w_out, b_out, *, heads,
                             matmul_dtype=jnp.float32):
    """x: (B, N, D); w_qkv: (3D, D) torch Linear weight; E: (N, K);
    w_out: (D, D) torch Linear weight; b_out: (D,)."""
    B, N, D = x.shape
    hd = D // heads
    K = E.shape[1]
    scale = hd ** (-0.5)

    cdt = matmul_dtype
    x_c = x.astype(cdt)
    w_qkv_t = w_qkv.T.astype(cdt)                     # (D, 3D): y = x @ W^T
    e_c = E.astype(cdt)                               # (N, K)
    w_out_t = w_out.T.astype(cdt)                     # (D, D)
    bias2d = b_out.reshape(1, D).astype(jnp.float32)  # bias added in f32

    kern = partial(linformer_kernel, heads=heads, scale=scale)

    return pl.pallas_call(
        kern,
        out_shape=jax.ShapeDtypeStruct((B, N, D), jnp.float32),
        grid_spec=pltpu.PrefetchScalarGridSpec(
            num_scalar_prefetch=0,
            grid=(B,),
            in_specs=[
                pl.BlockSpec((1, N, D), lambda b: (b, 0, 0)),   # x batch slice
                pl.BlockSpec((D, 3 * D), lambda b: (0, 0)),     # fused QKV weight
                pl.BlockSpec((N, K), lambda b: (0, 0)),         # E
                pl.BlockSpec((D, D), lambda b: (0, 0)),         # out_proj weight
                pl.BlockSpec((1, D), lambda b: (0, 0)),         # out_proj bias
            ],
            out_specs=pl.BlockSpec((1, N, D), lambda b: (b, 0, 0)),
        ),
        compiler_params=pltpu.CompilerParams(
            dimension_semantics=("parallel",)),   # v7x: one batch per TC
    )(x_c, w_qkv_t, e_c, w_out_t, bias2d)


def reference(x, w_qkv, E, w_out, b_out, *, heads):
    B, N, D = x.shape
    hd = D // heads
    qkv = x @ w_qkv.T
    q, k, v = jnp.split(qkv, 3, axis=-1)

    def to_heads(t):
        return t.reshape(B, N, heads, hd).transpose(0, 2, 1, 3)

    q, k, v = map(to_heads, (q, k, v))
    k_proj = jnp.einsum('bhnd,nk->bhkd', k, E)
    v_proj = jnp.einsum('bhnd,nk->bhkd', v, E)
    scores = jnp.einsum('bhnd,bhkd->bhnk', q, k_proj) * (hd ** -0.5)
    attn = jax.nn.softmax(scores, axis=-1)
    o = jnp.einsum('bhnk,bhkd->bhnd', attn, v_proj)
    o = o.transpose(0, 2, 1, 3).reshape(B, N, D)
    return o @ w_out.T + b_out


if __name__ == "__main__":
    B, N, D, heads, K = 2, 128, 128, 4, 64   # matches torch example x = randn(2,128,128)

    key = jax.random.PRNGKey(0)
    k1, k2, k3, k4, k5 = jax.random.split(key, 5)
    x = jax.random.normal(k1, (B, N, D), jnp.float32)
    w_qkv = jax.random.normal(k2, (3 * D, D), jnp.float32) * (D ** -0.5)
    E = jax.random.normal(k3, (N, K), jnp.float32)
    w_out = jax.random.normal(k4, (D, D), jnp.float32) * (D ** -0.5)
    b_out = jax.random.normal(k5, (D,), jnp.float32) * 0.01

    expected = reference(x, w_qkv, E, w_out, b_out, heads=heads)

    # f32-operand path: tight check against the f32 reference.
    out = linformer_self_attention(x, w_qkv, E, w_out, b_out, heads=heads)
    out = jax.block_until_ready(out)
    max_err = float(jnp.max(jnp.abs(out - expected)))
    assert jnp.allclose(out, expected, atol=1e-3, rtol=1e-3), max_err

    # bf16-operand / f32-accumulate perf path (v5e/v6e/v7x MXU): make sure it
    # compiles & runs; check only at a loose global tolerance since the
    # reference is pure f32 and the softmax here is very peaked.
    out_bf16 = linformer_self_attention(x, w_qkv, E, w_out, b_out, heads=heads,
                                        matmul_dtype=jnp.bfloat16)
    out_bf16 = jax.block_until_ready(out_bf16)
    rel_fro = float(jnp.linalg.norm(out_bf16 - expected) /
                    jnp.linalg.norm(expected))
    assert rel_fro < 0.25, rel_fro

    print("KERNEL_OK")
</pallas_src>

<mosaic_0001>
module attributes {stable_mosaic.version = 11 : i64} {
  func.func @linformer_kernel(%arg0: i32, %arg1: memref<1x128x128xf32, #tpu.memory_space<vmem>>, %arg2: memref<128x384xf32, #tpu.memory_space<vmem>>, %arg3: memref<128x64xf32, #tpu.memory_space<vmem>>, %arg4: memref<128x128xf32, #tpu.memory_space<vmem>>, %arg5: memref<1x128xf32, #tpu.memory_space<vmem>>, %arg6: memref<1x128x128xf32, #tpu.memory_space<vmem>>) attributes {dimension_semantics = [#tpu.dimension_semantics<parallel>], iteration_bounds = array<i64: 2>, scalar_prefetch = 0 : i64, scratch_operands = 0 : i64, tpu.core_type = #tpu.core_type<tc>, window_params = [{transform_indices = @transform_0, window_bounds = array<i64: 1, 128, 128>}, {pipeline_mode = #tpu.pipeline_mode<synchronous>, transform_indices = @transform_1, window_bounds = array<i64: 128, 384>}, {pipeline_mode = #tpu.pipeline_mode<synchronous>, transform_indices = @transform_2, window_bounds = array<i64: 128, 64>}, {pipeline_mode = #tpu.pipeline_mode<synchronous>, transform_indices = @transform_3, window_bounds = array<i64: 128, 128>}, {pipeline_mode = #tpu.pipeline_mode<synchronous>, transform_indices = @transform_4, window_bounds = array<i64: 1, 128>}, {transform_indices = @transform_5, window_bounds = array<i64: 1, 128, 128>}]} {
    %c0 = arith.constant 0 : index
    %c0_0 = arith.constant 0 : index
    %c0_1 = arith.constant 0 : index
    %0 = vector.load %arg1[%c0, %c0_0, %c0_1] : memref<1x128x128xf32, #tpu.memory_space<vmem>>, vector<1x128x128xf32>
    %1 = vector.shape_cast %0 : vector<1x128x128xf32> to vector<128x128xf32>
    %c0_2 = arith.constant 0 : index
    %c0_3 = arith.constant 0 : index
    %2 = vector.load %arg2[%c0_2, %c0_3] : memref<128x384xf32, #tpu.memory_space<vmem>>, vector<128x384xf32>
    %cst = arith.constant dense<0.000000e+00> : vector<128x384xf32>
    %3 = tpu.matmul %1, %2, %cst {dimension_numbers = #tpu.dot_dimension_numbers<[1], [0], [0], [1], [0, 0, 1, 1], [], []>} : vector<128x128xf32>, vector<128x384xf32>, vector<128x384xf32> -> vector<128x384xf32>
    %4 = vector.extract_strided_slice %3 {offsets = [0, 0], sizes = [128, 128], strides = [1, 1]} : vector<128x384xf32> to vector<128x128xf32>
    %5 = vector.extract_strided_slice %3 {offsets = [0, 128], sizes = [128, 256], strides = [1, 1]} : vector<128x384xf32> to vector<128x256xf32>
    %c0_4 = arith.constant 0 : index
    %c0_5 = arith.constant 0 : index
    %6 = vector.load %arg3[%c0_4, %c0_5] : memref<128x64xf32, #tpu.memory_space<vmem>>, vector<128x64xf32>
    %cst_6 = arith.constant dense<0.000000e+00> : vector<64x256xf32>
    %7 = tpu.matmul %6, %5, %cst_6 {dimension_numbers = #tpu.dot_dimension_numbers<[0], [0], [1], [1], [0, 1, 1, 1], [], []>} : vector<128x64xf32>, vector<128x256xf32>, vector<64x256xf32> -> vector<64x256xf32>
    %8 = vector.extract_strided_slice %7 {offsets = [0, 0], sizes = [64, 128], strides = [1, 1]} : vector<64x256xf32> to vector<64x128xf32>
    %9 = vector.extract_strided_slice %7 {offsets = [0, 128], sizes = [64, 128], strides = [1, 1]} : vector<64x256xf32> to vector<64x128xf32>
    %10 = vector.extract_strided_slice %4 {offsets = [0, 0], sizes = [128, 32], strides = [1, 1]} : vector<128x128xf32> to vector<128x32xf32>
    %11 = vector.extract_strided_slice %8 {offsets = [0, 0], sizes = [64, 32], strides = [1, 1]} : vector<64x128xf32> to vector<64x32xf32>
    %12 = vector.extract_strided_slice %9 {offsets = [0, 0], sizes = [64, 32], strides = [1, 1]} : vector<64x128xf32> to vector<64x32xf32>
    %cst_7 = arith.constant dense<0.000000e+00> : vector<128x64xf32>
    %13 = tpu.matmul %10, %11, %cst_7 {dimension_numbers = #tpu.dot_dimension_numbers<[1], [1], [0], [0], [0, 0, 1, 0], [], []>} : vector<128x32xf32>, vector<64x32xf32>, vector<128x64xf32> -> vector<128x64xf32>
    %cst_8 = arith.constant 0.176776692 : f32
    %14 = vector.broadcast %cst_8 : f32 to vector<128x64xf32>
    %15 = arith.mulf %13, %14 : vector<128x64xf32>
    %cst_9 = arith.constant dense<0xFF800000> : vector<128xf32>
    %16 = vector.multi_reduction <maximumf>, %15, %cst_9 [1] : vector<128x64xf32> to vector<128xf32>
    %17 = vector.shape_cast %16 : vector<128xf32> to vector<128x1xf32>
    %18 = vector.broadcast %17 : vector<128x1xf32> to vector<128x64xf32>
    %19 = arith.subf %15, %18 : vector<128x64xf32>
    %20 = math.exp %19 : vector<128x64xf32>
    %cst_10 = arith.constant dense<0.000000e+00> : vector<128xf32>
    %21 = vector.multi_reduction <add>, %20, %cst_10 [1] : vector<128x64xf32> to vector<128xf32>
    %22 = vector.shape_cast %21 : vector<128xf32> to vector<128x1xf32>
    %cst_11 = arith.constant dense<0.000000e+00> : vector<128x32xf32>
    %23 = tpu.matmul %20, %12, %cst_11 {dimension_numbers = #tpu.dot_dimension_numbers<[1], [0], [0], [1], [0, 0, 1, 1], [], []>} : vector<128x64xf32>, vector<64x32xf32>, vector<128x32xf32> -> vector<128x32xf32>
    %24 = tpu.reciprocal %22 : vector<128x1xf32> -> vector<128x1xf32>
    %25 = vector.broadcast %24 : vector<128x1xf32> to vector<128x32xf32>
    %26 = arith.mulf %23, %25 : vector<128x32xf32>
    %27 = vector.extract_strided_slice %4 {offsets = [0, 32], sizes = [128, 32], strides = [1, 1]} : vector<128x128xf32> to vector<128x32xf32>
    %28 = vector.extract_strided_slice %8 {offsets = [0, 32], sizes = [64, 32], strides = [1, 1]} : vector<64x128xf32> to vector<64x32xf32>
    %29 = vector.extract_strided_slice %9 {offsets = [0, 32], sizes = [64, 32], strides = [1, 1]} : vector<64x128xf32> to vector<64x32xf32>
    %cst_12 = arith.constant dense<0.000000e+00> : vector<128x64xf32>
    %30 = tpu.matmul %27, %28, %cst_12 {dimension_numbers = #tpu.dot_dimension_numbers<[1], [1], [0], [0], [0, 0, 1, 0], [], []>} : vector<128x32xf32>, vector<64x32xf32>, vector<128x64xf32> -> vector<128x64xf32>
    %cst_13 = arith.constant 0.176776692 : f32
    %31 = vector.broadcast %cst_13 : f32 to vector<128x64xf32>
    %32 = arith.mulf %30, %31 : vector<128x64xf32>
    %cst_14 = arith.constant dense<0xFF800000> : vector<128xf32>
    %33 = vector.multi_reduction <maximumf>, %32, %cst_14 [1] : vector<128x64xf32> to vector<128xf32>
    %34 = vector.shape_cast %33 : vector<128xf32> to vector<128x1xf32>
    %35 = vector.broadcast %34 : vector<128x1xf32> to vector<128x64xf32>
    %36 = arith.subf %32, %35 : vector<128x64xf32>
    %37 = math.exp %36 : vector<128x64xf32>
    %cst_15 = arith.constant dense<0.000000e+00> : vector<128xf32>
    %38 = vector.multi_reduction <add>, %37, %cst_15 [1] : vector<128x64xf32> to vector<128xf32>
    %39 = vector.shape_cast %38 : vector<128xf32> to vector<128x1xf32>
    %cst_16 = arith.constant dense<0.000000e+00> : vector<128x32xf32>
    %40 = tpu.matmul %37, %29, %cst_16 {dimension_numbers = #tpu.dot_dimension_numbers<[1], [0], [0], [1], [0, 0, 1, 1], [], []>} : vector<128x64xf32>, vector<64x32xf32>, vector<128x32xf32> -> vector<128x32xf32>
    %41 = tpu.reciprocal %39 : vector<128x1xf32> -> vector<128x1xf32>
    %42 = vector.broadcast %41 : vector<128x1xf32> to vector<128x32xf32>
    %43 = arith.mulf %40, %42 : vector<128x32xf32>
    %44 = vector.extract_strided_slice %4 {offsets = [0, 64], sizes = [128, 32], strides = [1, 1]} : vector<128x128xf32> to vector<128x32xf32>
    %45 = vector.extract_strided_slice %8 {offsets = [0, 64], sizes = [64, 32], strides = [1, 1]} : vector<64x128xf32> to vector<64x32xf32>
    %46 = vector.extract_strided_slice %9 {offsets = [0, 64], sizes = [64, 32], strides = [1, 1]} : vector<64x128xf32> to vector<64x32xf32>
    %cst_17 = arith.constant dense<0.000000e+00> : vector<128x64xf32>
    %47 = tpu.matmul %44, %45, %cst_17 {dimension_numbers = #tpu.dot_dimension_numbers<[1], [1], [0], [0], [0, 0, 1, 0], [], []>} : vector<128x32xf32>, vector<64x32xf32>, vector<128x64xf32> -> vector<128x64xf32>
    %cst_18 = arith.constant 0.176776692 : f32
    %48 = vector.broadcast %cst_18 : f32 to vector<128x64xf32>
    %49 = arith.mulf %47, %48 : vector<128x64xf32>
    %cst_19 = arith.constant dense<0xFF800000> : vector<128xf32>
    %50 = vector.multi_reduction <maximumf>, %49, %cst_19 [1] : vector<128x64xf32> to vector<128xf32>
    %51 = vector.shape_cast %50 : vector<128xf32> to vector<128x1xf32>
    %52 = vector.broadcast %51 : vector<128x1xf32> to vector<128x64xf32>
    %53 = arith.subf %49, %52 : vector<128x64xf32>
    %54 = math.exp %53 : vector<128x64xf32>
    %cst_20 = arith.constant dense<0.000000e+00> : vector<128xf32>
    %55 = vector.multi_reduction <add>, %54, %cst_20 [1] : vector<128x64xf32> to vector<128xf32>
    %56 = vector.shape_cast %55 : vector<128xf32> to vector<128x1xf32>
    %cst_21 = arith.constant dense<0.000000e+00> : vector<128x32xf32>
    %57 = tpu.matmul %54, %46, %cst_21 {dimension_numbers = #tpu.dot_dimension_numbers<[1], [0], [0], [1], [0, 0, 1, 1], [], []>} : vector<128x64xf32>, vector<64x32xf32>, vector<128x32xf32> -> vector<128x32xf32>
    %58 = tpu.reciprocal %56 : vector<128x1xf32> -> vector<128x1xf32>
    %59 = vector.broadcast %58 : vector<128x1xf32> to vector<128x32xf32>
    %60 = arith.mulf %57, %59 : vector<128x32xf32>
    %61 = vector.extract_strided_slice %4 {offsets = [0, 96], sizes = [128, 32], strides = [1, 1]} : vector<128x128xf32> to vector<128x32xf32>
    %62 = vector.extract_strided_slice %8 {offsets = [0, 96], sizes = [64, 32], strides = [1, 1]} : vector<64x128xf32> to vector<64x32xf32>
    %63 = vector.extract_strided_slice %9 {offsets = [0, 96], sizes = [64, 32], strides = [1, 1]} : vector<64x128xf32> to vector<64x32xf32>
    %cst_22 = arith.constant dense<0.000000e+00> : vector<128x64xf32>
    %64 = tpu.matmul %61, %62, %cst_22 {dimension_numbers = #tpu.dot_dimension_numbers<[1], [1], [0], [0], [0, 0, 1, 0], [], []>} : vector<128x32xf32>, vector<64x32xf32>, vector<128x64xf32> -> vector<128x64xf32>
    %cst_23 = arith.constant 0.176776692 : f32
    %65 = vector.broadcast %cst_23 : f32 to vector<128x64xf32>
    %66 = arith.mulf %64, %65 : vector<128x64xf32>
    %cst_24 = arith.constant dense<0xFF800000> : vector<128xf32>
    %67 = vector.multi_reduction <maximumf>, %66, %cst_24 [1] : vector<128x64xf32> to vector<128xf32>
    %68 = vector.shape_cast %67 : vector<128xf32> to vector<128x1xf32>
    %69 = vector.broadcast %68 : vector<128x1xf32> to vector<128x64xf32>
    %70 = arith.subf %66, %69 : vector<128x64xf32>
    %71 = math.exp %70 : vector<128x64xf32>
    %cst_25 = arith.constant dense<0.000000e+00> : vector<128xf32>
    %72 = vector.multi_reduction <add>, %71, %cst_25 [1] : vector<128x64xf32> to vector<128xf32>
    %73 = vector.shape_cast %72 : vector<128xf32> to vector<128x1xf32>
    %cst_26 = arith.constant dense<0.000000e+00> : vector<128x32xf32>
    %74 = tpu.matmul %71, %63, %cst_26 {dimension_numbers = #tpu.dot_dimension_numbers<[1], [0], [0], [1], [0, 0, 1, 1], [], []>} : vector<128x64xf32>, vector<64x32xf32>, vector<128x32xf32> -> vector<128x32xf32>
    %75 = tpu.reciprocal %73 : vector<128x1xf32> -> vector<128x1xf32>
    %76 = vector.broadcast %75 : vector<128x1xf32> to vector<128x32xf32>
    %77 = arith.mulf %74, %76 : vector<128x32xf32>
    %78 = tpu.concatenate %26, %43, %60, %77 in 1 : vector<128x32xf32>, vector<128x32xf32>, vector<128x32xf32>, vector<128x32xf32> -> vector<128x128xf32>
    %c0_27 = arith.constant 0 : index
    %c0_28 = arith.constant 0 : index
    %79 = vector.load %arg4[%c0_27, %c0_28] : memref<128x128xf32, #tpu.memory_space<vmem>>, vector<128x128xf32>
    %cst_29 = arith.constant dense<0.000000e+00> : vector<128x128xf32>
    %80 = tpu.matmul %78, %79, %cst_29 {dimension_numbers = #tpu.dot_dimension_numbers<[1], [0], [0], [1], [0, 0, 1, 1], [], []>} : vector<128x128xf32>, vector<128x128xf32>, vector<128x128xf32> -> vector<128x128xf32>
    %c0_30 = arith.constant 0 : index
    %c0_31 = arith.constant 0 : index
    %81 = vector.load %arg5[%c0_30, %c0_31] : memref<1x128xf32, #tpu.memory_space<vmem>>, vector<1x128xf32>
    %82 = vector.broadcast %81 : vector<1x128xf32> to vector<128x128xf32>
    %83 = arith.addf %80, %82 : vector<128x128xf32>
    %c0_32 = arith.constant 0 : index
    %c0_33 = arith.constant 0 : index
    %c0_34 = arith.constant 0 : index
    %84 = vector.load %arg6[%c0_32, %c0_33, %c0_34] : memref<1x128x128xf32, #tpu.memory_space<vmem>>, vector<1x128x128xf32>
    %85 = vector.shape_cast %84 : vector<1x128x128xf32> to vector<128x128xf32>
    %86 = vector.shape_cast %83 : vector<128x128xf32> to vector<1x128x128xf32>
    tpu.vector_store %arg6[%c0_32, %c0_33, %c0_34], %86 {strides = array<i32>} : memref<1x128x128xf32, #tpu.memory_space<vmem>>, vector<1x128x128xf32>,
    return
  }
  func.func @transform_0(%arg0: i32) -> (i32, i32, i32) {
    %c0_i32 = arith.constant 0 : i32
    %c0_i32_0 = arith.constant 0 : i32
    %c0_i32_1 = arith.constant 0 : i32
    return %arg0, %c0_i32, %c0_i32_0 : i32, i32, i32
  }
  func.func @transform_1(%arg0: i32) -> (i32, i32) {
    %c0_i32 = arith.constant 0 : i32
    %c0_i32_0 = arith.constant 0 : i32
    %c0_i32_1 = arith.constant 0 : i32
    return %c0_i32, %c0_i32_0 : i32, i32
  }
  func.func @transform_2(%arg0: i32) -> (i32, i32) {
    %c0_i32 = arith.constant 0 : i32
    %c0_i32_0 = arith.constant 0 : i32
    %c0_i32_1 = arith.constant 0 : i32
    return %c0_i32, %c0_i32_0 : i32, i32
  }
  func.func @transform_3(%arg0: i32) -> (i32, i32) {
    %c0_i32 = arith.constant 0 : i32
    %c0_i32_0 = arith.constant 0 : i32
    %c0_i32_1 = arith.constant 0 : i32
    return %c0_i32, %c0_i32_0 : i32, i32
  }
  func.func @transform_4(%arg0: i32) -> (i32, i32) {
    %c0_i32 = arith.constant 0 : i32
    %c0_i32_0 = arith.constant 0 : i32
    %c0_i32_1 = arith.constant 0 : i32
    return %c0_i32, %c0_i32_0 : i32, i32
  }
  func.func @transform_5(%arg0: i32) -> (i32, i32, i32) {
    %c0_i32 = arith.constant 0 : i32
    %c0_i32_0 = arith.constant 0 : i32
    %c0_i32_1 = arith.constant 0 : i32
    return %arg0, %c0_i32, %c0_i32_0 : i32, i32, i32
  }
}

</mosaic_0001>

<bundles_post_ra>
// kernel: tpu_custom_call.1
= control target key start
LH: loop header
LB: loop body
LE: loop exit
PB: predicated region body
PF: predicated region fallthrough
CT: control target
= control target key end

     0   :  { %10 = vsyncpa [#allocation3], 0  ;;  %s7190_s0 = inlined_call_operand.hbm [shape: f32[2,128,128], index: 0, kind: input, shape index: {}]   ;;  %s7191_s1 = inlined_call_operand.hbm [shape: f32[128,384], index: 1, kind: input, shape index: {}]   ;;  %s7192_s2 = inlined_call_operand.vmem [shape: f32[128,64], index: 2, kind: input, shape index: {}]   ;;  %s7193_s3 = inlined_call_operand.vmem [shape: f32[128,128], index: 3, kind: input, shape index: {}]   ;;  %s7194_s4 = inlined_call_operand.vmem [shape: f32[1,128], index: 4, kind: input, shape index: {}]   ;;  %s7195_s5 = inlined_call_operand.hbm [shape: f32[2,128,128], index: 5, kind: output, shape index: {}]  }
   0x1   :  { %12 = vsyncpa [#allocation3 + $0x1], 0 }
   0x2   :  { %13 = vsyncpa [#allocation6], 0 }
   0x3   :  { %14 = vsyncpa [#allocation4], 0 }
   0x4   :  { %16 = vsyncpa [#allocation4 + $0x1], 0  ;;  %s5382_s18 = smov 0   ;;  %s5384_s19 = smov 0  }
   0x5   :  { %s5386_s20 = smov 0   ;;  %s5388_s21 = smov 0  }
   0x6 LB: > { %s5403_s22 = sadd.s32 4294967295, %s5337_s21   ;;  %s3873_s23 = sadd.s32 4294967294, %s5337_s21   ;;  %s5337_s21 = sphi %s5388_s21, %s7295_s21   ;;  %s5333_s20 = sphi %s5386_s20, %s7294_s20   ;;  %s5329_s19 = sphi %s5384_s19, %s7293_s19   ;;  %s5325_s18 = sphi %s5382_s18, %s7292_s18  }
   0x7   : > { %p42_p0 = scmp.ne.s32.totalorder %s5329_s19, %s5325_s18  ;;  %p7196_p1 = scmp.eq.s32.totalorder %s5403_s22, 0 }
   0x8   : > { %p156_p3 = scmp.eq.s32.totalorder %s3873_s23, 1  ;;  %p3874_p5 = scmp.ge.s32.totalorder %s5337_s21, 1 }
   0x9   : > { %p5412_p4 = por %p7196_p1, %p42_p0  ;;  %p163_p7 = scmp.lt.s32.totalorder %s5337_s21, 3 }
   0xa   : > { %p5417_p6 = por %p156_p3, %p42_p0  ;;  %s5339_s27 = smov [#allocation5]  }
   0xb   : > { %s7226_s24 = scalar_select %p5412_p4, 1, 0 }
   0xc   : > { %s7227_s25 = scalar_select %p5417_p6, 1, 0 }
   0xd   : > { %p5422_p8 = pnand %p3874_p5, %p163_p7  ;;  %s175_s28 = sshll.u32 %s5339_s27, 4  ;;  %s176_s28 = int_to_ptr.vmem [resolvable:$true] %s175_s28 }
   0xe   : > { %s5436_s30 = sadd.s32 1, %s5337_s21   ;;  %s29_s6 = sadd.s32 1, %s5333_s20 }
   0xf   : > { %s7228_s26 = scalar_select %p5422_p8, 1, 0 }
  0x10   : > { %p4780_p9 = pneg %p5422_p8  ;;  %s26_s7 = ssub.s32 %s5337_s21, %s5436_s30 }
  0x11   : > { %s5226_s8 = scalar_lea.vmem %s176_s28, 6144  ;;  %p5234_p5 = scmp.lt.s32.totalorder %s176_s28, %s176_s28 }
  0x12   : > { %p5431_p11 = pnand %p4780_p9, %p7196_p1  ;;  %p5227_p13 = scmp.ne.s32.totalorder %s176_s28, %s5226_s8 }
  0x13   : > { %p5235_p7 = scmp.lt.s32.totalorder %s5226_s8, %s5226_s8 }
  0x14   : > { %p5217_p12 = pneg %p5431_p11 }
  0x15   : > { %p5236_p10 = por %p5235_p7, %p5234_p5 }
  0x16   : > { %p5229_p0 = pnand %p5227_p13, %p5217_p12 }
  0x18   : > { %p5230_p3 = pneg %p5229_p0 }
  0x1a   : > { %p5237_p2 = pnand %p5236_p10, %p5230_p3 }
  0x1c   : > { %5240 = shalt.err (!%p5237_p2)
}
  0x1d   : > { %s5340_s9 = smov 384   ;;  %s5341_s10 = smov 24  }
  0x1e   : > { %4783 = dma.hbm_to_vmem [thread:$0]  (!%p5431_p11), %s7191_s1, 6144, %s176_s28, [#allocation6], %s5340_s9, %s5340_s9, %s5341_s10  }
  0x1f   : > { %p27_p9 = scmp.eq.s32.totalorder %s26_s7, 0  ;;  %p36_p12 = scmp.ne.s32.totalorder %s5333_s20, %s5329_s19 }
  0x20   : > { %p37_p10 = scmp.eq.s32.totalorder %s5337_s21, 0  ;;  %p4793_p2 = scmp.lt.s32.totalorder %s5337_s21, 2 }
  0x21   : > { %s5453_s13 = scalar_select %p27_p9, %s5333_s20, %s29_s6  }
  0x22   : > { %p38_p13 = por %p37_p10, %p36_p12  ;;  %p7230_p0 = scmp.eq.s32.totalorder %s5403_s22, 1 }
  0x23   : > { %s198_s15 = sand.u32 1, %s5333_s20   ;;  %s4050_s16 = sshll.u32 %s5337_s21, 11 }
  0x24   : > { %p5457_p3 = por %p7230_p0, %p36_p12  ;;  %s3877_s17 = sshll.u32 %s198_s15, 7 }
  0x25   : > { %s5466_s29 = scalar_lea.hbm %s7190_s0, %s4050_s16  ;;  %s202_s28 = scalar_lea.vmem [#allocation2], %s3877_s17 }
  0x26   : > { %s7231_s14 = scalar_select %p5457_p3, 1, 0 }
  0x27   : > { %s209_s6 = sshll.u32 %s202_s28, 4  ;;  %p5468_p11 = pnand %p4793_p2, %p38_p13  ;;  %s5472_s6 = int_to_ptr.vmem [resolvable:$true] %s209_s6 }
  0x28   : > { %s5474_s8 = scalar_lea.sflag [#allocation3], %s198_s15  ;;  %s5241_s9 = scalar_lea.hbm %s5466_s29, 2048 }
  0x29   : > { %p5242_p5 = scmp.ne.s32.totalorder %s5466_s29, %s5241_s9  ;;  %p5243_p7 = pneg %p5468_p11 }
  0x2a   : > { %s5246_s12 = scalar_lea.hbm %s7190_s0, 4096  ;;  %p5247_p10 = scmp.lt.s32.totalorder %s5466_s29, %s7190_s0 }
  0x2b   : > { %p5244_p9 = pnand %p5243_p7, %p5242_p5  ;;  %p5248_p2 = scmp.lt.s32.totalorder %s5246_s12, %s5241_s9 }
  0x2d   : > { %p5245_p12 = pneg %p5244_p9  ;;  %p5249_p13 = por %p5248_p2, %p5247_p10 }
  0x2f   : > { %p5250_p0 = pnand %p5249_p13, %p5245_p12 }
  0x31   : > { %5253 = shalt.err (!%p5250_p0)
}
  0x32   : > { %s5254_s15 = scalar_lea.vmem %s5472_s6, 2048  ;;  %s5342_s23 = smov [#allocation2]  }
  0x33   : > { %p5255_p1 = scmp.ne.s32.totalorder %s5472_s6, %s5254_s15  ;;  %s5259_s27 = sshll.u32 %s5342_s23, 4  ;;  %s5260_s27 = int_to_ptr.vmem [resolvable:$false] %s5259_s27 }
  0x34   : > { %s5261_s28 = scalar_lea.vmem %s5260_s27, 4096  ;;  %p5262_p9 = scmp.lt.s32.totalorder %s5472_s6, %s5260_s27 }
  0x35   : > { %p5257_p6 = pnand %p5255_p1, %p5243_p7  ;;  %p5263_p3 = scmp.lt.s32.totalorder %s5261_s28, %s5254_s15 }
  0x37   : > { %p5258_p5 = pneg %p5257_p6  ;;  %p5264_p4 = por %p5263_p3, %p5262_p9 }
  0x39   : > { %p5265_p8 = pnand %p5264_p4, %p5258_p5 }
  0x3b   : > { %5268 = shalt.err (!%p5265_p8)
}
  0x3c   : > { %s5343_s9 = smov 128   ;;  %s5344_s10 = smov 8  }
  0x3d   : > { %4787 = dma.hbm_to_vmem [thread:$0]  (!%p5468_p11), %s5466_s29, 2048, %s5472_s6, %s5474_s8, %s5343_s9, %s5343_s9, %s5344_s10  }
  0x3e   : > { %p7233_p1 = scmp.ne.s32.totalorder %s7228_s26, 0 }
  0x40   : > { %221 = sbr.rel (%p7233_p1) target bundleno = 1803 (0x70b), region = 40 }
  0x45   : > { %s5498_s11 = sand.u32 1, %s5329_s19   ;;  %p7234_p4 = scmp.ne.s32.totalorder %s7226_s24, 0 }
  0x46   : > { %s3881_s12 = sshll.u32 %s5498_s11, 7  ;;  %s224_s16 = scalar_lea.sflag [#allocation3], %s5498_s11 }
  0x47   : > { %s5504_s17 = scalar_lea.vmem [#allocation2], %s3881_s12 }
  0x48   : > { %5312 = dma.done.wait (%p7234_p4), %s224_s16, 2048  }
  0x49   : > { %5314 = vsyncadd (%p7234_p4), %s224_s16, 4294965248  ;;  %p7235_p6 = scmp.eq.s32.totalorder %s5403_s22, 0 }
  0x4b   : > { %5316 = dma.done.wait (%p7235_p6), [#allocation6], 6144   ;;  %p7236_p8 = pmov %p7235_p6 }
  0x4c   : > { %v5345_v0 = vmov 0.0   ;;  %v320_v1 = vld [vmem:[#allocation5 + $0x170] sm:$0xff]  ;;  %v319_v2 = vld [vmem:[#allocation5 + $0x168] sm:$0xff]  ;;  %v317_v3 = vld [vmem:[#allocation5 + $0x158] sm:$0xff]  ;;  %vm789_vm0 = vcmask 261120   ;;  %s5346_s7 = smov 96  }
  0x4d   : > { %5318 = vsyncadd (%p7236_p8), [#allocation6], 4294961152  ;;  %386 = vmatprep.mubr.f32.mxu0 %v5345_v0  ;;  %322 = vmatprep.subr.mxu0 %v320_v1  ;;  %v316_v4 = vld [vmem:[#allocation5 + $0x150] sm:$0xff]  ;;  %v314_v5 = vld [vmem:[#allocation5 + $0x140] sm:$0xff]  ;;  %s5347_s8 = smov 64   ;;  %s5348_s15 = smov 32  }
  0x4e   : > { %323 = vmatpush1.msra.mxu0 %v319_v2  ;;  %v313_v6 = vld [vmem:[#allocation5 + $0x138] sm:$0xff]  ;;  %v311_v7 = vld [vmem:[#allocation5 + $0x128] sm:$0xff]  ;;  %v310_v8 = vld [vmem:[#allocation5 + $0x120] sm:$0xff]  ;;  %vm1023_vm1 = vcmask 523264   ;;  %vm3575_vm2 = vcmask 785408   ;;  %s7122_s26 = scalar_lea.vmem [#allocation7], %s3881_s12 }
  0x4f   : > { %324 = vmatprep.subr.mxu0 %v317_v3  ;;  %v308_v9 = vld [vmem:[#allocation5 + $0x110] sm:$0xff]  ;;  %v307_v10 = vld [vmem:[#allocation5 + $0x108] sm:$0xff]  ;;  %v305_v11 = vld [vmem:[#allocation5 + $0xf8] sm:$0xff]  ;;  %s4051_s12 = sshll.u32 %s5403_s22, 11  ;;  %s3790_s29 = sshll.u32 %s7122_s26, 4  ;;  %s7143_s29 = int_to_ptr.vmem [resolvable:$true] %s3790_s29 }
  0x50   : > { %325 = vmatpush1.msra.mxu0 %v316_v4  ;;  %v304_v12 = vld [vmem:[#allocation5 + $0xf0] sm:$0xff]  ;;  %v302_v13 = vld [vmem:[#allocation5 + $0xe0] sm:$0xff]  ;;  %v321_v14 = vld [vmem:[#allocation5 + $0x178] sm:$0xff]  ;;  %s3777_s22 = scalar_lea.sflag [#allocation4], %s5498_s11  ;;  %s5269_s23 = scalar_lea.vmem %s7143_s29, 2048 }
  0x51   : > { %326 = vmatprep.subr.mxu0 %v314_v5  ;;  %v301_v15 = vld [vmem:[#allocation5 + $0xd8] sm:$0xff]  ;;  %4308 = vmatprep.subr.mxu1 %v321_v14  ;;  %v318_v16 = vld [vmem:[#allocation5 + $0x160] sm:$0xff]  ;;  %v299_v17 = vld [vmem:[#allocation5 + $0xc8] sm:$0xff]  ;;  %p5270_p3 = scmp.ne.s32.totalorder %s7143_s29, %s5269_s23  ;;  %p7289_p11 = scmp.ne.s32.totalorder %s7231_s14, 0 }
  0x52   : > { %327 = vmatpush1.msra.mxu0 %v313_v6  ;;  %4309 = vmatpush3.msra.mxu1 %v321_v14  ;;  %v315_v18 = vld [vmem:[#allocation5 + $0x148] sm:$0xff]  ;;  %v298_v19 = vld [vmem:[#allocation5 + $0xc0] sm:$0xff]  ;;  %v296_v20 = vld [vmem:[#allocation5 + $0xb0] sm:$0xff]  ;;  %s5349_s27 = smov [#allocation7]  }
  0x53   : > { %328 = vmatprep.subr.mxu0 %v311_v7  ;;  %4310 = vmatprep.subr.mxu1 %v318_v16  ;;  %v312_v21 = vld [vmem:[#allocation5 + $0x130] sm:$0xff]  ;;  %v295_v22 = vld [vmem:[#allocation5 + $0xa8] sm:$0xff]  ;;  %v293_v23 = vld [vmem:[#allocation5 + $0x98] sm:$0xff]  ;;  %p5271_p7 = pnand %p5270_p3, %p7289_p11  ;;  %s5273_s28 = sshll.u32 %s5349_s27, 4  ;;  %s5274_s28 = int_to_ptr.vmem [resolvable:$false] %s5273_s28 }
  0x54   : > { %329 = vmatpush1.msra.mxu0 %v310_v8  ;;  %4311 = vmatpush3.msra.mxu1 %v318_v16  ;;  %v309_v24 = vld [vmem:[#allocation5 + $0x118] sm:$0xff]  ;;  %v292_v25 = vld [vmem:[#allocation5 + $0x90] sm:$0xff]  ;;  %v290_v26 = vld [vmem:[#allocation5 + $0x80] sm:$0xff]  ;;  %s5275_s9 = scalar_lea.vmem %s5274_s28, 4096  ;;  %p5276_p10 = scmp.lt.s32.totalorder %s7143_s29, %s5274_s28 }
  0x55   : > { %330 = vmatprep.subr.mxu0 %v308_v9  ;;  %4312 = vmatprep.subr.mxu1 %v315_v18  ;;  %v306_v27 = vld [vmem:[#allocation5 + $0x100] sm:$0xff]  ;;  %v289_v28 = vld [vmem:[#allocation5 + $0x78] sm:$0xff]  ;;  %v287_v29 = vld [vmem:[#allocation5 + $0x68] sm:$0xff]  ;;  %p5272_p12 = pneg %p5271_p7  ;;  %p5277_p2 = scmp.lt.s32.totalorder %s5275_s9, %s5269_s23 }
  0x56   : > { %331 = vmatpush1.msra.mxu0 %v307_v10  ;;  %4313 = vmatpush3.msra.mxu1 %v315_v18  ;;  %v303_v30 = vld [vmem:[#allocation5 + $0xe8] sm:$0xff]  ;;  %v286_v31 = vld [vmem:[#allocation5 + $0x60] sm:$0xff]  ;;  %v284_v32 = vld [vmem:[#allocation5 + $0x50] sm:$0xff] }
  0x57   : > { %332 = vmatprep.subr.mxu0 %v305_v11  ;;  %4314 = vmatprep.subr.mxu1 %v312_v21  ;;  %v300_v33 = vld [vmem:[#allocation5 + $0xd0] sm:$0xff]  ;;  %v283_v34 = vld [vmem:[#allocation5 + $0x48] sm:$0xff]  ;;  %v281_v35 = vld [vmem:[#allocation5 + $0x38] sm:$0xff]  ;;  %p5278_p13 = por %p5277_p2, %p5276_p10 }
  0x58   : > { %333 = vmatpush1.msra.mxu0 %v304_v12  ;;  %4315 = vmatpush3.msra.mxu1 %v312_v21  ;;  %v297_v36 = vld [vmem:[#allocation5 + $0xb8] sm:$0xff]  ;;  %v280_v37 = vld [vmem:[#allocation5 + $0x30] sm:$0xff]  ;;  %v278_v38 = vld [vmem:[#allocation5 + $0x20] sm:$0xff] }
  0x59   : > { %334 = vmatprep.subr.mxu0 %v302_v13  ;;  %4316 = vmatprep.subr.mxu1 %v309_v24  ;;  %v294_v39 = vld [vmem:[#allocation5 + $0xa0] sm:$0xff]  ;;  %v277_v40 = vld [vmem:[#allocation5 + $0x18] sm:$0xff]  ;;  %v275_v41 = vld [vmem:[#allocation5 + $0x8] sm:$0xff]  ;;  %p5279_p0 = pnand %p5278_p13, %p5272_p12 }
  0x5a   : > { %335 = vmatpush1.msra.mxu0 %v301_v15  ;;  %4317 = vmatpush3.msra.mxu1 %v309_v24  ;;  %v291_v42 = vld [vmem:[#allocation5 + $0x88] sm:$0xff]  ;;  %v274_v43 = vld [vmem:[#allocation5] sm:$0xff]  ;;  %v288_v45 = vld [vmem:[#allocation5 + $0x70] sm:$0xff] }
  0x5b   : > { %336 = vmatprep.subr.mxu0 %v299_v17  ;;  %4318 = vmatprep.subr.mxu1 %v306_v27  ;;  %v258_v44 = vld [vmem:[%s5504_s17] sm:$0xff]  ;;  %v285_v46 = vld [vmem:[#allocation5 + $0x58] sm:$0xff]  ;;  %v259_v48 = vld [vmem:[%s5504_s17 + $0x8] sm:$0xff] }
  0x5c   : > { %337 = vmatpush1.msra.mxu0 %v298_v19  ;;  %4319 = vmatpush3.msra.mxu1 %v306_v27  ;;  %v628_v47 = vld [vmem:[%s7192_s2] sm:$0xff]  ;;  %v279_v50 = vld [vmem:[#allocation5 + $0x28] sm:$0xff]  ;;  %v260_v52 = vld [vmem:[%s5504_s17 + $0x10] sm:$0xff] }
  0x5d   : > { %338 = vmatprep.subr.mxu0 %v296_v20  ;;  %4320 = vmatprep.subr.mxu1 %v303_v30  ;;  %v282_v49 = vld [vmem:[#allocation5 + $0x40] sm:$0xff]  ;;  %v629_v51 = vld [vmem:[%s7192_s2 + $0x8] sm:$0xff]  ;;  %v276_v53 = vld [vmem:[#allocation5 + $0x10] sm:$0xff] }
  0x5e   : > { %339 = vmatpush1.msra.mxu0 %v295_v22  ;;  %4321 = vmatpush3.msra.mxu1 %v303_v30  ;;  %v630_v54 = vld [vmem:[%s7192_s2 + $0x10] sm:$0xff]  ;;  %v261_v55 = vld [vmem:[%s5504_s17 + $0x18] sm:$0xff]  ;;  %v262_v57 = vld [vmem:[%s5504_s17 + $0x20] sm:$0xff] }
  0x5f   : > { %340 = vmatprep.subr.mxu0 %v293_v23  ;;  %4322 = vmatprep.subr.mxu1 %v300_v33  ;;  %v631_v56 = vld [vmem:[%s7192_s2 + $0x18] sm:$0xff]  ;;  %v632_v58 = vld [vmem:[%s7192_s2 + $0x20] sm:$0xff]  ;;  %v263_v59 = vld [vmem:[%s5504_s17 + $0x28] sm:$0xff] }
  0x60   : > { %341 = vmatpush1.msra.mxu0 %v292_v25  ;;  %4323 = vmatpush3.msra.mxu1 %v300_v33  ;;  %v264_v60 = vld [vmem:[%s5504_s17 + $0x30] sm:$0xff]  ;;  %v633_v61 = vld [vmem:[%s7192_s2 + $0x28] sm:$0xff]  ;;  %v265_v62 = vld [vmem:[%s5504_s17 + $0x38] sm:$0xff] }
  0x61   : > { %342 = vmatprep.subr.mxu0 %v290_v26  ;;  %4324 = vmatprep.subr.mxu1 %v297_v36  ;;  %v266_v63 = vld [vmem:[%s5504_s17 + $0x40] sm:$0xff]  ;;  %v634_v1 = vld [vmem:[%s7192_s2 + $0x30] sm:$0xff]  ;;  %v267_v2 = vld [vmem:[%s5504_s17 + $0x48] sm:$0xff] }
  0x62   : > { %343 = vmatpush1.msra.mxu0 %v289_v28  ;;  %4325 = vmatpush3.msra.mxu1 %v297_v36  ;;  %v268_v3 = vld [vmem:[%s5504_s17 + $0x50] sm:$0xff]  ;;  %v635_v4 = vld [vmem:[%s7192_s2 + $0x38] sm:$0xff]  ;;  %v270_v6 = vld [vmem:[%s5504_s17 + $0x60] sm:$0xff] }
  0x63   : > { %344 = vmatprep.subr.mxu0 %v287_v29  ;;  %4326 = vmatprep.subr.mxu1 %v294_v39  ;;  %v269_v5 = vld [vmem:[%s5504_s17 + $0x58] sm:$0xff]  ;;  %v271_v7 = vld [vmem:[%s5504_s17 + $0x68] sm:$0xff]  ;;  %v272_v8 = vld [vmem:[%s5504_s17 + $0x70] sm:$0xff] }
  0x64   : > { %345 = vmatpush1.msra.mxu0 %v286_v31  ;;  %4327 = vmatpush3.msra.mxu1 %v294_v39  ;;  %v273_v9 = vld [vmem:[%s5504_s17 + $0x78] sm:$0xff]  ;;  %v636_v10 = vld [vmem:[%s7192_s2 + $0x40] sm:$0xff]  ;;  %v637_v11 = vld [vmem:[%s7192_s2 + $0x48] sm:$0xff] }
  0x65   : > { %346 = vmatprep.subr.mxu0 %v284_v32  ;;  %4328 = vmatprep.subr.mxu1 %v291_v42  ;;  %v638_v12 = vld [vmem:[%s7192_s2 + $0x50] sm:$0xff]  ;;  %v639_v13 = vld [vmem:[%s7192_s2 + $0x58] sm:$0xff]  ;;  %v640_v14 = vld [vmem:[%s7192_s2 + $0x60] sm:$0xff] }
  0x66   : > { %347 = vmatpush1.msra.mxu0 %v283_v34  ;;  %4329 = vmatpush3.msra.mxu1 %v291_v42  ;;  %v641_v15 = vld [vmem:[%s7192_s2 + $0x68] sm:$0xff]  ;;  %v642_v16 = vld [vmem:[%s7192_s2 + $0x70] sm:$0xff]  ;;  %v643_v17 = vld [vmem:[%s7192_s2 + $0x78] sm:$0xff] }
  0x67   : > { %348 = vmatprep.subr.mxu0 %v281_v35  ;;  %4330 = vmatprep.subr.mxu1 %v288_v45 }
  0x68   : > { %349 = vmatpush1.msra.mxu0 %v280_v37  ;;  %4331 = vmatpush3.msra.mxu1 %v288_v45 }
  0x69   : > { %350 = vmatprep.subr.mxu0 %v278_v38  ;;  %4332 = vmatprep.subr.mxu1 %v285_v46 }
  0x6a   : > { %351 = vmatpush1.msra.mxu0 %v277_v40  ;;  %4340 = vmatprep.mubr.f32.mxu1 %v258_v44 }
  0x6b   : > { %352 = vmatprep.subr.mxu0 %v275_v41  ;;  %4333 = vmatpush3.msra.mxu1 %v285_v46 }
  0x6c   : > { %353 = vmatpush1.msra.mxu0 %v274_v43  ;;  %644 = vxpose.xlu0.b32.start [1/16] (narrow) %v628_v47, 64 }
  0x6d   : > { %387 = vmatmul.mubr.f32.vlgmr.msra.gmra.mxu0 %v258_v44  ;;  %4334 = vmatprep.subr.mxu1 %v282_v49 }
  0x6e   : > { %392 = vmatprep.mubr.f32.mxu0 %v5345_v0  ;;  %4335 = vmatpush3.msra.mxu1 %v282_v49 }
  0x6f   : > { %4336 = vmatprep.subr.mxu1 %v279_v50 }
  0x70   : > { %4337 = vmatpush3.msra.mxu1 %v279_v50  ;;  %645 = vxpose.xlu0.b32.cont [2/16] (narrow) %v629_v51, 64 }
  0x71   : > { %393 = vmatmul.mubr.f32.gmra.mxu0 %v259_v48  ;;  %4338 = vmatprep.subr.mxu1 %v276_v53 }
  0x72   : > { %398 = vmatprep.mubr.f32.mxu0 %v5345_v0  ;;  %4339 = vmatpush3.msra.mxu1 %v276_v53 }
  0x73   : > { %4341 = vmatmul.mubr.f32.vlgmr.msra.gmra.mxu1 %v259_v48 }
  0x74   : > { %4343 = vmatprep.mubr.f32.mxu1 %v260_v52  ;;  %646 = vxpose.xlu0.b32.cont [3/16] (narrow) %v630_v54, 64 }
  0x75   : > { %399 = vmatmul.mubr.f32.gmra.mxu0 %v260_v52 }
  0x76   : > { %404 = vmatprep.mubr.f32.mxu0 %v5345_v0 }
  0x77   : > { %4344 = vmatmul.mubr.f32.gmra.mxu1 %v261_v55 }
  0x78   : > { %4346 = vmatprep.mubr.f32.mxu1 %v262_v57  ;;  %647 = vxpose.xlu0.b32.cont [4/16] (narrow) %v631_v56, 64 }
  0x79   : > { %405 = vmatmul.mubr.f32.gmra.mxu0 %v261_v55 }
  0x7a   : > { %410 = vmatprep.mubr.f32.mxu0 %v5345_v0 }
  0x7b   : > { %4347 = vmatmul.mubr.f32.gmra.mxu1 %v263_v59 }
  0x7c   : > { %4349 = vmatprep.mubr.f32.mxu1 %v264_v60  ;;  %648 = vxpose.xlu0.b32.cont [5/16] (narrow) %v632_v58, 64 }
  0x7d   : > { %411 = vmatmul.mubr.f32.gmra.mxu0 %v262_v57 }
  0x7e   : > { %416 = vmatprep.mubr.f32.mxu0 %v5345_v0 }
  0x7f   : > { %4350 = vmatmul.mubr.f32.gmra.mxu1 %v265_v62 }
  0x80   : > { %4352 = vmatprep.mubr.f32.mxu1 %v266_v63  ;;  %649 = vxpose.xlu0.b32.cont [6/16] (narrow) %v633_v61, 64 }
  0x81   : > { %417 = vmatmul.mubr.f32.gmra.mxu0 %v263_v59 }
  0x82   : > { %422 = vmatprep.mubr.f32.mxu0 %v5345_v0 }
  0x83   : > { %4353 = vmatmul.mubr.f32.gmra.mxu1 %v267_v2 }
  0x84   : > { %4355 = vmatprep.mubr.f32.mxu1 %v268_v3  ;;  %650 = vxpose.xlu0.b32.cont [7/16] (narrow) %v634_v1, 64 }
  0x85   : > { %423 = vmatmul.mubr.f32.gmra.mxu0 %v264_v60 }
  0x86   : > { %428 = vmatprep.mubr.f32.mxu0 %v5345_v0 }
  0x87   : > { %4356 = vmatmul.mubr.f32.gmra.mxu1 %v269_v5 }
  0x88   : > { %4358 = vmatprep.mubr.f32.mxu1 %v270_v6  ;;  %651 = vxpose.xlu0.b32.cont [8/16] (narrow) %v635_v4, 64 }
  0x89   : > { %429 = vmatmul.mubr.f32.gmra.mxu0 %v265_v62 }
  0x8a   : > { %434 = vmatprep.mubr.f32.mxu0 %v5345_v0 }
  0x8b   : > { %4359 = vmatmul.mubr.f32.gmra.mxu1 %v271_v7 }
  0x8c   : > { %4361 = vmatprep.mubr.f32.mxu1 %v272_v8  ;;  %652 = vxpose.xlu0.b32.cont [9/16] (narrow) %v636_v10, 64 }
  0x8d   : > { %435 = vmatmul.mubr.f32.gmra.mxu0 %v266_v63 }
  0x8e   : > { %440 = vmatprep.mubr.f32.mxu0 %v5345_v0 }
  0x8f   : > { %4362 = vmatmul.mubr.f32.gmra.mxu1 %v273_v9 }
  0x90   : > { %740 = vmatprep.mubr.f32.mxu1 %v5345_v0  ;;  %653 = vxpose.xlu0.b32.cont [10/16] (narrow) %v637_v11, 64 }
  0x91   : > { %441 = vmatmul.mubr.f32.gmra.mxu0 %v267_v2 }
  0x92   : > { %446 = vmatprep.mubr.f32.mxu0 %v5345_v0 }
  0x94   : > { %654 = vxpose.xlu0.b32.cont [11/16] (narrow) %v638_v12, 64 }
  0x95   : > { %447 = vmatmul.mubr.f32.gmra.mxu0 %v268_v3 }
  0x96   : > { %452 = vmatprep.mubr.f32.mxu0 %v5345_v0 }
  0x98   : > { %655 = vxpose.xlu0.b32.cont [12/16] (narrow) %v639_v13, 64 }
  0x99   : > { %453 = vmatmul.mubr.f32.gmra.mxu0 %v269_v5 }
  0x9a   : > { %458 = vmatprep.mubr.f32.mxu0 %v5345_v0 }
  0x9c   : > { %656 = vxpose.xlu0.b32.cont [13/16] (narrow) %v640_v14, 64 }
  0x9d   : > { %459 = vmatmul.mubr.f32.gmra.mxu0 %v270_v6 }
  0x9e   : > { %464 = vmatprep.mubr.f32.mxu0 %v5345_v0 }
  0xa0   : > { %657 = vxpose.xlu0.b32.cont [14/16] (narrow) %v641_v15, 64 }
  0xa1   : > { %465 = vmatmul.mubr.f32.gmra.mxu0 %v271_v7 }
  0xa2   : > { %470 = vmatprep.mubr.f32.mxu0 %v5345_v0 }
  0xa4   : > { %658 = vxpose.xlu0.b32.cont [15/16] (narrow) %v642_v16, 64 }
  0xa5   : > { %471 = vmatmul.mubr.f32.gmra.mxu0 %v272_v8 }
  0xa6   : > { %476 = vmatprep.mubr.f32.mxu0 %v5345_v0 }
  0xa8   : > { %659 = vxpose.xlu0.b32.end [16/16] (narrow) %v643_v17, 64 }
  0xa9   : > { %477 = vmatmul.mubr.f32.gmra.mxu0 %v273_v9 }
  0xe8   : > { %v660_v3 = vpop.trf.xlu0 }
  0xec   : > { %v661_v4 = vpop.trf.xlu0 }
  0xf0   : > { %v662_v5 = vpop.trf.xlu0 }
  0xf4   : > { %v663_v6 = vpop.trf.xlu0 }
  0xf8   : > { %v664_v7 = vpop.trf.xlu0 }
  0xfc   : > { %v665_v8 = vpop.trf.xlu0 }
 0x100   : > { %v666_v9 = vpop.trf.xlu0 }
 0x104   : > { %v667_v10 = vpop.trf.xlu0 }
 0x12d   : > { %v5595_v18 = vpop.f32.mrf.mxu0 }
 0x12e   : > { %1393 = vrot.lane.b32.xlu1 %v5595_v18, %s5346_s7  ;;  %4380 = vmatprep.mubr.msk.f32.mxu0 %vm789_vm0, %v5595_v18 }
 0x12f   : > { %v5601_v19 = vpop.f32.mrf.mxu0 }
 0x131   : > { %v5603_v20 = vpop.f32.mrf.mxu0 }
 0x132   : > { %1395 = vrot.lane.b32.xlu1 %v5603_v20, %s5346_s7 }
 0x133   : > { %v5607_v21 = vpop.f32.mrf.mxu0  ;;  %v5615_v24 = vpop.f32.mrf.mxu1 }
 0x135   : > { %v5609_v22 = vpop.f32.mrf.mxu0  ;;  %v5619_v26 = vpop.f32.mrf.mxu1 }
 0x136   : > { %1397 = vrot.lane.b32.xlu1 %v5609_v22, %s5346_s7 }
 0x137   : > { %v5613_v23 = vpop.f32.mrf.mxu0  ;;  %v5625_v28 = vpop.f32.mrf.mxu1 }
 0x139   : > { %v5617_v25 = vpop.f32.mrf.mxu0  ;;  %v5629_v30 = vpop.f32.mrf.mxu1 }
 0x13a   : > { %1399 = vrot.lane.b32.xlu1 %v5617_v25, %s5346_s7 }
 0x13b   : > { %v5623_v27 = vpop.f32.mrf.mxu0  ;;  %v4348_v32 = vpop.f32.mrf.mxu1 }
 0x13d   : > { %v5627_v29 = vpop.f32.mrf.mxu0  ;;  %v569_v34 = vpop.f32.mrf.mxu1 }
 0x13e   : > { %1401 = vrot.lane.b32.xlu1 %v5627_v29, %s5346_s7 }
 0x13f   : > { %v414_v31 = vpop.f32.mrf.mxu0  ;;  %v4351_v36 = vpop.f32.mrf.mxu1 }
 0x141   : > { %v5633_v33 = vpop.f32.mrf.mxu0  ;;  %v579_v38 = vpop.f32.mrf.mxu1 }
 0x142   : > { %1403 = vrot.lane.b32.xlu1 %v5633_v33, %s5346_s7 }
 0x143   : > { %v420_v35 = vpop.f32.mrf.mxu0  ;;  %v4354_v40 = vpop.f32.mrf.mxu1 }
 0x145   : > { %v5637_v37 = vpop.f32.mrf.mxu0  ;;  %v589_v42 = vpop.f32.mrf.mxu1 }
 0x146   : > { %1405 = vrot.lane.b32.xlu1 %v5637_v37, %s5346_s7 }
 0x147   : > { %v426_v39 = vpop.f32.mrf.mxu0  ;;  %v4357_v44 = vpop.f32.mrf.mxu1 }
 0x149   : > { %v5641_v41 = vpop.f32.mrf.mxu0  ;;  %v599_v46 = vpop.f32.mrf.mxu1 }
 0x14a   : > { %1407 = vrot.lane.b32.xlu1 %v5641_v41, %s5346_s7 }
 0x14b   : > { %v432_v43 = vpop.f32.mrf.mxu0  ;;  %v4360_v48 = vpop.f32.mrf.mxu1 }
 0x14d   : > { %v5645_v45 = vpop.f32.mrf.mxu0  ;;  %v609_v50 = vpop.f32.mrf.mxu1 }
 0x14f   : > { %v438_v47 = vpop.f32.mrf.mxu0  ;;  %v4363_v52 = vpop.f32.mrf.mxu1 }
 0x150   : > { %676 = vmatprep.subr.mxu1 %v4363_v52 }
 0x151   : > { %v5647_v49 = vpop.f32.mrf.mxu0  ;;  %v619_v2 = vpop.f32.mrf.mxu1 }
 0x153   : > { %v444_v51 = vpop.f32.mrf.mxu0 }
 0x155   : > { %v5649_v53 = vpop.f32.mrf.mxu0 }
 0x157   : > { %v450_v54 = vpop.f32.mrf.mxu0 }
 0x159   : > { %v5651_v55 = vpop.f32.mrf.mxu0 }
 0x15b   : > { %v456_v56 = vpop.f32.mrf.mxu0 }
 0x15d   : > { %v5653_v57 = vpop.f32.mrf.mxu0 }
 0x15f   : > { %v462_v58 = vpop.f32.mrf.mxu0 }
 0x161   : > { %v5655_v59 = vpop.f32.mrf.mxu0 }
 0x163   : > { %v468_v60 = vpop.f32.mrf.mxu0 }
 0x165   : > { %v5657_v61 = vpop.f32.mrf.mxu0 }
 0x167   : > { %v474_v62 = vpop.f32.mrf.mxu0 }
 0x169   : > { %v5659_v63 = vpop.f32.mrf.mxu0 }
 0x16b   : > { %v480_v1 = vpop.f32.mrf.mxu0 }
 0x16c   : > { %677 = vmatpush1.msra.mxu1 %v480_v1 }
 0x16d   : > { %678 = vmatprep.subr.mxu1 %v619_v2 }
 0x16e   : > { %679 = vmatpush1.msra.mxu1 %v474_v62 }
 0x16f   : > { %680 = vmatprep.subr.mxu1 %v4360_v48 }
 0x170   : > { %681 = vmatpush1.msra.mxu1 %v468_v60 }
 0x171   : > { %682 = vmatprep.subr.mxu1 %v609_v50 }
 0x172   : > { %683 = vmatpush1.msra.mxu1 %v462_v58 }
 0x173   : > { %684 = vmatprep.subr.mxu1 %v4357_v44 }
 0x174   : > { %685 = vmatpush1.msra.mxu1 %v456_v56 }
 0x175   : > { %686 = vmatprep.subr.mxu1 %v599_v46 }
 0x176   : > { %687 = vmatpush1.msra.mxu1 %v450_v54 }
 0x177   : > { %688 = vmatprep.subr.mxu1 %v4354_v40 }
 0x178   : > { %689 = vmatpush1.msra.mxu1 %v444_v51 }
 0x179   : > { %690 = vmatprep.subr.mxu1 %v589_v42 }
 0x17a   : > { %691 = vmatpush1.msra.mxu1 %v438_v47 }
 0x17b   : > { %692 = vmatprep.subr.mxu1 %v4351_v36 }
 0x17c   : > { %693 = vmatpush1.msra.mxu1 %v432_v43 }
 0x17d   : > { %694 = vmatprep.subr.mxu1 %v579_v38 }
 0x17e   : > { %695 = vmatpush1.msra.mxu1 %v426_v39 }
 0x17f   : > { %696 = vmatprep.subr.mxu1 %v4348_v32 }
 0x180   : > { %697 = vmatpush1.msra.mxu1 %v420_v35 }
 0x181   : > { %698 = vmatprep.subr.mxu1 %v569_v34 }
 0x182   : > { %699 = vmatpush1.msra.mxu1 %v414_v31 }
 0x183   : > { %700 = vmatprep.subr.mxu1 %v5625_v28 }
 0x184   : > { %701 = vmatpush1.msra.mxu1 %v5623_v27 }
 0x185   : > { %702 = vmatprep.subr.mxu1 %v5629_v30 }
 0x186   : > { %703 = vmatpush1.msra.mxu1 %v5613_v23 }
 0x187   : > { %704 = vmatprep.subr.mxu1 %v5615_v24 }
 0x188   : > { %705 = vmatpush1.msra.mxu1 %v5607_v21 }
 0x189   : > { %706 = vmatprep.subr.mxu1 %v5619_v26 }
 0x18a   : > { %707 = vmatpush1.msra.mxu1 %v5601_v19 }
 0x18b   : > { %741 = vmatmul.mubr.f32.vlgmr.msra.gmra.mxu1 %v660_v3 }
 0x18c   : > { %746 = vmatprep.mubr.f32.mxu1 %v5345_v0 }
 0x18f   : > { %747 = vmatmul.mubr.f32.gmra.mxu1 %v661_v4 }
 0x190   : > { %752 = vmatprep.mubr.f32.mxu1 %v5345_v0 }
 0x193   : > { %753 = vmatmul.mubr.f32.gmra.mxu1 %v662_v5 }
 0x194   : > { %758 = vmatprep.mubr.f32.mxu1 %v5345_v0 }
 0x197   : > { %759 = vmatmul.mubr.f32.gmra.mxu1 %v663_v6 }
 0x198   : > { %764 = vmatprep.mubr.f32.mxu1 %v5345_v0 }
 0x19b   : > { %765 = vmatmul.mubr.f32.gmra.mxu1 %v664_v7 }
 0x19c   : > { %770 = vmatprep.mubr.f32.mxu1 %v5345_v0 }
 0x19f   : > { %771 = vmatmul.mubr.f32.gmra.mxu1 %v665_v8 }
 0x1a0   : > { %776 = vmatprep.mubr.f32.mxu1 %v5345_v0  ;;  %v1394_v31 = vpop.permute.xlu1 %1393 }
 0x1a3   : > { %777 = vmatmul.mubr.f32.gmra.mxu1 %v666_v9 }
 0x1a4   : > { %782 = vmatprep.mubr.f32.mxu1 %v5345_v0  ;;  %v5822_v32 = vpop.permute.xlu1 %1395 }
 0x1a7   : > { %783 = vmatmul.mubr.f32.gmra.mxu1 %v667_v10 }
 0x1a8   : > { %v5834_v34 = vpop.permute.xlu1 %1397 }
 0x1ac   : > { %v5850_v35 = vpop.permute.xlu1 %1399 }
 0x24b   : > { %v5676_v11 = vpop.f32.mrf.mxu1 }
 0x24c   : > { %1425 = vrot.lane.b32.xlu1 %v5676_v11, %s5346_s7 }
 0x24d   : > { %v5680_v12 = vpop.f32.mrf.mxu1 }
 0x24f   : > { %v5682_v13 = vpop.f32.mrf.mxu1 }
 0x250   : > { %1427 = vrot.lane.b32.xlu1 %v5682_v13, %s5346_s7 }
 0x251   : > { %v5686_v14 = vpop.f32.mrf.mxu1 }
 0x253   : > { %v5688_v15 = vpop.f32.mrf.mxu1 }
 0x254   : > { %1429 = vrot.lane.b32.xlu1 %v5688_v15, %s5346_s7 }
 0x255   : > { %v5692_v0 = vpop.f32.mrf.mxu1 }
 0x257   : > { %v5694_v16 = vpop.f32.mrf.mxu1 }
 0x258   : > { %1431 = vrot.lane.b32.xlu1 %v5694_v16, %s5346_s7 }
 0x259   : > { %v5698_v17 = vpop.f32.mrf.mxu1 }
 0x25b   : > { %v5700_v19 = vpop.f32.mrf.mxu1 }
 0x25c   : > { %1433 = vrot.lane.b32.xlu1 %v5700_v19, %s5346_s7 }
 0x25d   : > { %v5704_v21 = vpop.f32.mrf.mxu1 }
 0x25f   : > { %v772_v23 = vpop.f32.mrf.mxu1 }
 0x260   : > { %2091 = vrot.lane.b32.xlu1 %v5700_v19, %s5347_s8  ;;  %2093 = vrot.lane.b32.xlu0 %v772_v23, %s5347_s8 }
 0x261   : > { %v5709_v24 = vpop.f32.mrf.mxu1 }
 0x263   : > { %v5711_v26 = vpop.f32.mrf.mxu1 }
 0x264   : > { %2085 = vrot.lane.b32.xlu0 %v5682_v13, %s5347_s8  ;;  %1435 = vrot.lane.b32.xlu1 %v772_v23, %s5346_s7 }
 0x265   : > { %v5716_v27 = vpop.f32.mrf.mxu1 }
 0x267   : > { %v784_v28 = vpop.f32.mrf.mxu1 }
 0x268   : > { %1423 = vrot.lane.b32.xlu0 %v5659_v63, %s5346_s7  ;;  %1437 = vrot.lane.b32.xlu1 %v5711_v26, %s5346_s7 }
 0x269   : > { %4364 = vmatprep.subr.msk.mxu0 %vm789_vm0, %v784_v28  ;;  %v5723_v30 = vpop.f32.mrf.mxu1 }
 0x26a   : > { %4365 = vmatpush3.xpose.msk.msra.mxu0 %vm789_vm0, %v784_v28  ;;  %4404 = vmatprep.subr.mxu1 %v5723_v30 }
 0x26b   : > { %4366 = vmatprep.subr.msk.mxu0 %vm789_vm0, %v5711_v26  ;;  %4405 = vmatpush3.msra.mxu1 %v5723_v30 }
 0x26c   : > { %2051 = vrot.lane.b32.xlu0 %v5595_v18, %s5347_s8  ;;  %2095 = vrot.lane.b32.xlu1 %v5711_v26, %s5347_s8 }
 0x26d   : > { %4406 = vmatprep.subr.mxu1 %v5716_v27 }
 0x26e   : > { %4367 = vmatpush3.xpose.msk.msra.mxu0 %vm789_vm0, %v5711_v26  ;;  %4407 = vmatpush3.msra.mxu1 %v5716_v27 }
 0x26f   : > { %4368 = vmatprep.subr.msk.mxu0 %vm789_vm0, %v772_v23  ;;  %4408 = vmatprep.subr.mxu1 %v5709_v24 }
 0x270   : > { %4409 = vmatpush3.msra.mxu1 %v5709_v24  ;;  %2057 = vrot.lane.b32.xlu0 %v5617_v25, %s5347_s8 }
 0x271   : > { %1439 = vrot.lane.b32.xlu1 %v784_v28, %s5346_s7  ;;  %4410 = vmatprep.subr.mxu1 %v5704_v21 }
 0x272   : > { %4369 = vmatpush3.xpose.msk.msra.mxu0 %vm789_vm0, %v772_v23  ;;  %4411 = vmatpush3.msra.mxu1 %v5704_v21 }
 0x273   : > { %4370 = vmatprep.subr.msk.mxu0 %vm789_vm0, %v5700_v19  ;;  %4412 = vmatprep.subr.mxu1 %v5698_v17 }
 0x274   : > { %4413 = vmatpush3.msra.mxu1 %v5698_v17  ;;  %2059 = vrot.lane.b32.xlu0 %v5627_v29, %s5347_s8 }
 0x275   : > { %1409 = vrot.lane.b32.xlu1 %v5645_v45, %s5346_s7  ;;  %4414 = vmatprep.subr.mxu1 %v5692_v0 }
 0x276   : > { %4371 = vmatpush3.xpose.msk.msra.mxu0 %vm789_vm0, %v5700_v19  ;;  %4415 = vmatpush3.msra.mxu1 %v5692_v0 }
 0x277   : > { %4372 = vmatprep.subr.msk.mxu0 %vm789_vm0, %v5694_v16  ;;  %4416 = vmatprep.subr.mxu1 %v5686_v14 }
 0x278   : > { %4417 = vmatpush3.msra.mxu1 %v5686_v14  ;;  %2743 = vrot.lane.b32.xlu0 %v772_v23, %s5348_s15 }
 0x279   : > { %1411 = vrot.lane.b32.xlu1 %v5647_v49, %s5346_s7  ;;  %4418 = vmatprep.subr.mxu1 %v5680_v12 }
 0x27a   : > { %4373 = vmatpush3.xpose.msk.msra.mxu0 %vm789_vm0, %v5694_v16  ;;  %4419 = vmatpush3.msra.mxu1 %v5680_v12 }
 0x27b   : > { %4374 = vmatprep.subr.msk.mxu0 %vm789_vm0, %v5688_v15 }
 0x27c   : > { %2747 = vrot.lane.b32.xlu0 %v784_v28, %s5348_s15 }
 0x27d   : > { %2089 = vrot.lane.b32.xlu1 %v5694_v16, %s5347_s8 }
 0x27e   : > { %4375 = vmatpush3.xpose.msk.msra.mxu0 %vm789_vm0, %v5688_v15 }
 0x27f   : > { %4376 = vmatprep.subr.msk.mxu0 %vm789_vm0, %v5682_v13 }
 0x280   : > { %2065 = vrot.lane.b32.xlu0 %v5641_v41, %s5347_s8 }
 0x281   : > { %1413 = vrot.lane.b32.xlu1 %v5649_v53, %s5346_s7 }
 0x282   : > { %4377 = vmatpush3.xpose.msk.msra.mxu0 %vm789_vm0, %v5682_v13 }
 0x283   : > { %4378 = vmatprep.subr.msk.mxu0 %vm789_vm0, %v5676_v11 }
 0x284   : > { %2067 = vrot.lane.b32.xlu0 %v5645_v45, %s5347_s8 }
 0x285   : > { %1415 = vrot.lane.b32.xlu1 %v5651_v55, %s5346_s7 }
 0x286   : > { %4379 = vmatpush3.xpose.msk.msra.mxu0 %vm789_vm0, %v5676_v11 }
 0x288   : > { %2739 = vrot.lane.b32.xlu0 %v5694_v16, %s5348_s15 }
 0x289   : > { %2087 = vrot.lane.b32.xlu1 %v5688_v15, %s5347_s8  ;;  %4381 = vmatmul.mubr.msk.f32.vlgmr.msra.gmra.mxu0 %vm789_vm0, %v5603_v20 }
 0x28a   : > { %4383 = vmatprep.mubr.msk.f32.mxu0 %vm789_vm0, %v5609_v22 }
 0x28c   : > { %2073 = vrot.lane.b32.xlu0 %v5651_v55, %s5347_s8 }
 0x28d   : > { %1417 = vrot.lane.b32.xlu1 %v5653_v57, %s5346_s7  ;;  %4384 = vmatmul.mubr.msk.f32.gmra.mxu0 %vm789_vm0, %v5617_v25 }
 0x28e   : > { %4386 = vmatprep.mubr.msk.f32.mxu0 %vm789_vm0, %v5627_v29 }
 0x290   : > { %2075 = vrot.lane.b32.xlu0 %v5653_v57, %s5347_s8 }
 0x291   : > { %2097 = vrot.lane.b32.xlu1 %v784_v28, %s5347_s8  ;;  %4387 = vmatmul.mubr.msk.f32.gmra.mxu0 %vm789_vm0, %v5633_v33 }
 0x292   : > { %4389 = vmatprep.mubr.msk.f32.mxu0 %vm789_vm0, %v5637_v37 }
 0x294   : > { %2735 = vrot.lane.b32.xlu0 %v5682_v13, %s5348_s15 }
 0x295   : > { %1419 = vrot.lane.b32.xlu1 %v5655_v59, %s5346_s7  ;;  %4390 = vmatmul.mubr.msk.f32.gmra.mxu0 %vm789_vm0, %v5641_v41 }
 0x296   : > { %4392 = vmatprep.mubr.msk.f32.mxu0 %vm789_vm0, %v5645_v45 }
 0x298   : > { %2081 = vrot.lane.b32.xlu0 %v5659_v63, %s5347_s8 }
 0x299   : > { %1421 = vrot.lane.b32.xlu1 %v5657_v61, %s5346_s7  ;;  %4393 = vmatmul.mubr.msk.f32.gmra.mxu0 %vm789_vm0, %v5647_v49 }
 0x29a   : > { %4395 = vmatprep.mubr.msk.f32.mxu0 %vm789_vm0, %v5649_v53 }
 0x29c   : > { %2701 = vrot.lane.b32.xlu0 %v5595_v18, %s5348_s15  ;;  %v5861_v18 = vpop.permute.xlu1 %1401 }
 0x29d   : > { %2083 = vrot.lane.b32.xlu1 %v5676_v11, %s5347_s8  ;;  %4396 = vmatmul.mubr.msk.f32.gmra.mxu0 %vm789_vm0, %v5651_v55 }
 0x29e   : > { %4398 = vmatprep.mubr.msk.f32.mxu0 %vm789_vm0, %v5653_v57 }
 0x2a0   : > { %2705 = vrot.lane.b32.xlu0 %v5609_v22, %s5348_s15 }
 0x2a1   : > { %2053 = vrot.lane.b32.xlu1 %v5603_v20, %s5347_s8  ;;  %4399 = vmatmul.mubr.msk.f32.gmra.mxu0 %vm789_vm0, %v5655_v59 }
 0x2a2   : > { %4401 = vmatprep.mubr.msk.f32.mxu0 %vm789_vm0, %v5657_v61 }
 0x2a4   : > { %2709 = vrot.lane.b32.xlu0 %v5627_v29, %s5348_s15 }
 0x2a5   : > { %2055 = vrot.lane.b32.xlu1 %v5609_v22, %s5347_s8  ;;  %4402 = vmatmul.mubr.msk.f32.gmra.mxu0 %vm789_vm0, %v5659_v63  ;;  %v5871_v22 = vpop.permute.xlu1 %1403 }
 0x2a6   : > { %4460 = vmatprep.mubr.msk.f32.mxu0 %vm789_vm0, %v1394_v31 }
 0x2a8   : > { %2713 = vrot.lane.b32.xlu0 %v5637_v37, %s5348_s15 }
 0x2a9   : > { %2745 = vrot.lane.b32.xlu1 %v5711_v26, %s5348_s15  ;;  %v5877_v29 = vpop.permute.xlu1 %1405 }
 0x2ac   : > { %2717 = vrot.lane.b32.xlu0 %v5645_v45, %s5348_s15 }
 0x2ad   : > { %2061 = vrot.lane.b32.xlu1 %v5633_v33, %s5347_s8  ;;  %v5887_v36 = vpop.permute.xlu1 %1407 }
 0x2b0   : > { %2721 = vrot.lane.b32.xlu0 %v5649_v53, %s5348_s15 }
 0x2b1   : > { %2063 = vrot.lane.b32.xlu1 %v5637_v37, %s5347_s8 }
 0x2b4   : > { %2725 = vrot.lane.b32.xlu0 %v5653_v57, %s5348_s15 }
 0x2b5   : > { %2741 = vrot.lane.b32.xlu1 %v5700_v19, %s5348_s15 }
 0x2b8   : > { %2729 = vrot.lane.b32.xlu0 %v5657_v61, %s5348_s15 }
 0x2b9   : > { %2069 = vrot.lane.b32.xlu1 %v5647_v49, %s5347_s8 }
 0x2bc   : > { %1812 = vrot.lane.b32.xlu0 %v5709_v24, %s5346_s7 }
 0x2bd   : > { %2071 = vrot.lane.b32.xlu1 %v5649_v53, %s5347_s8 }
 0x2be   : > { %v5893_v37 = vpop.permute.xlu1 %1425 }
 0x2c0   : > { %1810 = vrot.lane.b32.xlu0 %v5704_v21, %s5346_s7 }
 0x2c1   : > { %2737 = vrot.lane.b32.xlu1 %v5688_v15, %s5348_s15 }
 0x2c2   : > { %v5899_v38 = vpop.permute.xlu1 %1427 }
 0x2c4   : > { %1806 = vrot.lane.b32.xlu0 %v5692_v0, %s5346_s7 }
 0x2c5   : > { %2077 = vrot.lane.b32.xlu1 %v5655_v59, %s5347_s8 }
 0x2c6   : > { %v1430_v39 = vpop.permute.xlu1 %1429 }
 0x2c8   : > { %1802 = vrot.lane.b32.xlu0 %v5680_v12, %s5346_s7 }
 0x2c9   : > { %2079 = vrot.lane.b32.xlu1 %v5657_v61, %s5347_s8 }
 0x2ca   : > { %v1432_v40 = vpop.permute.xlu1 %1431 }
 0x2cc   : > { %2464 = vrot.lane.b32.xlu0 %v5716_v27, %s5347_s8 }
 0x2cd   : > { %2733 = vrot.lane.b32.xlu1 %v5676_v11, %s5348_s15 }
 0x2ce   : > { %v1434_v42 = vpop.permute.xlu1 %1433 }
 0x2d0   : > { %2462 = vrot.lane.b32.xlu0 %v5709_v24, %s5347_s8 }
 0x2d1   : > { %2703 = vrot.lane.b32.xlu1 %v5603_v20, %s5348_s15 }
 0x2d2   : > { %v5917_v43 = vpop.permute.xlu1 %2091  ;;  %v5919_v44 = vpop.permute.xlu0 %2093 }
 0x2d4   : > { %2456 = vrot.lane.b32.xlu0 %v5692_v0, %s5347_s8 }
 0x2d5   : > { %2707 = vrot.lane.b32.xlu1 %v5617_v25, %s5348_s15 }
 0x2d6   : > { %v5925_v45 = vpop.permute.xlu0 %2085  ;;  %v1436_v46 = vpop.permute.xlu1 %1435 }
 0x2d8   : > { %2454 = vrot.lane.b32.xlu0 %v5686_v14, %s5347_s8 }
 0x2d9   : > { %2711 = vrot.lane.b32.xlu1 %v5633_v33, %s5348_s15 }
 0x2da   : > { %v5931_v20 = vpop.permute.xlu0 %1423  ;;  %v1438_v47 = vpop.permute.xlu1 %1437 }
 0x2dc   : > { %3112 = vrot.lane.b32.xlu0 %v5709_v24, %s5348_s15 }
 0x2dd   : > { %2715 = vrot.lane.b32.xlu1 %v5641_v41, %s5348_s15 }
 0x2de   : > { %v5937_v48 = vpop.permute.xlu0 %2051  ;;  %v2096_v25 = vpop.permute.xlu1 %2095 }
 0x2e0   : > { %3110 = vrot.lane.b32.xlu0 %v5704_v21, %s5348_s15 }
 0x2e1   : > { %2719 = vrot.lane.b32.xlu1 %v5647_v49, %s5348_s15 }
 0x2e2   : > { %v5943_v50 = vpop.permute.xlu0 %2057 }
 0x2e3   : > { %v1440_v33 = vpop.permute.xlu1 %1439 }
 0x2e4   : > { %4444 = vmatprep.subr.msk.mxu0 %vm789_vm0, %v1440_v33  ;;  %3106 = vrot.lane.b32.xlu0 %v5692_v0, %s5348_s15 }
 0x2e5   : > { %2723 = vrot.lane.b32.xlu1 %v5651_v55, %s5348_s15  ;;  %4445 = vmatpush3.xpose.msk.msra.mxu0 %vm789_vm0, %v1440_v33 }
 0x2e6   : > { %4446 = vmatprep.subr.msk.mxu0 %vm789_vm0, %v1438_v47  ;;  %v5952_v41 = vpop.permute.xlu0 %2059 }
 0x2e7   : > { %v1410_v51 = vpop.permute.xlu1 %1409 }
 0x2e8   : > { %1816 = vrot.lane.b32.xlu0 %v5723_v30, %s5346_s7 }
 0x2e9   : > { %2727 = vrot.lane.b32.xlu1 %v5655_v59, %s5348_s15  ;;  %4447 = vmatpush3.xpose.msk.msra.mxu0 %vm789_vm0, %v1438_v47 }
 0x2ea   : > { %4448 = vmatprep.subr.msk.mxu0 %vm789_vm0, %v1436_v46  ;;  %v5960_v49 = vpop.permute.xlu0 %2743 }
 0x2eb   : > { %v1412_v52 = vpop.permute.xlu1 %1411 }
 0x2ec   : > { %3116 = vrot.lane.b32.xlu0 %v5723_v30, %s5348_s15 }
 0x2ed   : > { %2731 = vrot.lane.b32.xlu1 %v5659_v63, %s5348_s15  ;;  %4449 = vmatpush3.xpose.msk.msra.mxu0 %vm789_vm0, %v1436_v46 }
 0x2ee   : > { %4450 = vmatprep.subr.msk.mxu0 %vm789_vm0, %v1434_v42  ;;  %v5968_v53 = vpop.permute.xlu0 %2747 }
 0x2ef   : > { %v2090_v54 = vpop.permute.xlu1 %2089 }
 0x2f1   : > { %1814 = vrot.lane.b32.xlu1 %v5716_v27, %s5346_s7  ;;  %4451 = vmatpush3.xpose.msk.msra.mxu0 %vm789_vm0, %v1434_v42 }
 0x2f2   : > { %4452 = vmatprep.subr.msk.mxu0 %vm789_vm0, %v1432_v40  ;;  %v5974_v55 = vpop.permute.xlu0 %2065 }
 0x2f3   : > { %v1414_v56 = vpop.permute.xlu1 %1413 }
 0x2f5   : > { %1808 = vrot.lane.b32.xlu1 %v5698_v17, %s5346_s7  ;;  %4453 = vmatpush3.xpose.msk.msra.mxu0 %vm789_vm0, %v1432_v40 }
 0x2f6   : > { %4454 = vmatprep.subr.msk.mxu0 %vm789_vm0, %v1430_v39  ;;  %v5980_v57 = vpop.permute.xlu0 %2067 }
 0x2f7   : > { %v1416_v58 = vpop.permute.xlu1 %1415 }
 0x2f9   : > { %1804 = vrot.lane.b32.xlu1 %v5686_v14, %s5346_s7  ;;  %4455 = vmatpush3.xpose.msk.msra.mxu0 %vm789_vm0, %v1430_v39 }
 0x2fa   : > { %4456 = vmatprep.subr.msk.mxu0 %vm789_vm0, %v5899_v38  ;;  %v5987_v59 = vpop.permute.xlu0 %2739 }
 0x2fb   : > { %v2088_v60 = vpop.permute.xlu1 %2087 }
 0x2fd   : > { %2460 = vrot.lane.b32.xlu1 %v5704_v21, %s5347_s8  ;;  %4457 = vmatpush3.xpose.msk.msra.mxu0 %vm789_vm0, %v5899_v38 }
 0x2fe   : > { %4458 = vmatprep.subr.msk.mxu0 %vm789_vm0, %v5893_v37  ;;  %v5995_v61 = vpop.permute.xlu0 %2073 }
 0x2ff   : > { %v1418_v62 = vpop.permute.xlu1 %1417 }
 0x301   : > { %2458 = vrot.lane.b32.xlu1 %v5698_v17, %s5347_s8  ;;  %4459 = vmatpush3.xpose.msk.msra.mxu0 %vm789_vm0, %v5893_v37 }
 0x302   : > { %v6001_v63 = vpop.permute.xlu0 %2075 }
 0x303   : > { %v2098_v1 = vpop.permute.xlu1 %2097 }
 0x304   : > { %4461 = vmatmul.mubr.msk.f32.vlgmr.msra.gmra.mxu0 %vm789_vm0, %v5822_v32  ;;  %4524 = vmatprep.subr.msk.mxu0 %vm789_vm0, %v2098_v1 }
 0x305   : > { %2452 = vrot.lane.b32.xlu1 %v5680_v12, %s5347_s8  ;;  %4463 = vmatprep.mubr.msk.f32.mxu0 %vm789_vm0, %v5834_v34 }
 0x306   : > { %4525 = vmatpush3.xpose.msk.msra.mxu0 %vm789_vm0, %v2098_v1  ;;  %v6011_v2 = vpop.permute.xlu0 %2735 }
 0x307   : > { %4526 = vmatprep.subr.msk.mxu0 %vm789_vm0, %v2096_v25  ;;  %v1420_v3 = vpop.permute.xlu1 %1419 }
 0x308   : > { %4464 = vmatmul.mubr.msk.f32.gmra.mxu0 %vm789_vm0, %v5850_v35 }
 0x309   : > { %3114 = vrot.lane.b32.xlu1 %v5716_v27, %s5348_s15  ;;  %4466 = vmatprep.mubr.msk.f32.mxu0 %vm789_vm0, %v5861_v18 }
 0x30a   : > { %4527 = vmatpush3.xpose.msk.msra.mxu0 %vm789_vm0, %v2096_v25  ;;  %v6021_v4 = vpop.permute.xlu0 %2081 }
 0x30b   : > { %4528 = vmatprep.subr.msk.mxu0 %vm789_vm0, %v5919_v44  ;;  %v1422_v5 = vpop.permute.xlu1 %1421 }
 0x30c   : > { %4467 = vmatmul.mubr.msk.f32.gmra.mxu0 %vm789_vm0, %v5871_v22 }
 0x30d   : > { %3108 = vrot.lane.b32.xlu1 %v5698_v17, %s5348_s15  ;;  %4469 = vmatprep.mubr.msk.f32.mxu0 %vm789_vm0, %v5877_v29 }
 0x30e   : > { %4529 = vmatpush3.xpose.msk.msra.mxu0 %vm789_vm0, %v5919_v44  ;;  %v6033_v6 = vpop.permute.xlu0 %2701 }
 0x30f   : > { %4530 = vmatprep.subr.msk.mxu0 %vm789_vm0, %v5917_v43  ;;  %v2084_v7 = vpop.permute.xlu1 %2083 }
 0x310   : > { %4470 = vmatmul.mubr.msk.f32.gmra.mxu0 %vm789_vm0, %v5887_v36 }
 0x311   : > { %4472 = vmatprep.mubr.msk.f32.mxu0 %vm789_vm0, %v1410_v51  ;;  %2466 = vrot.lane.b32.xlu1 %v5723_v30, %s5347_s8 }
 0x312   : > { %4531 = vmatpush3.xpose.msk.msra.mxu0 %vm789_vm0, %v5917_v43  ;;  %v6044_v8 = vpop.permute.xlu0 %2705 }
 0x313   : > { %4532 = vmatprep.subr.msk.mxu0 %vm789_vm0, %v2090_v54  ;;  %v2054_v9 = vpop.permute.xlu1 %2053 }
 0x314   : > { %4473 = vmatmul.mubr.msk.f32.gmra.mxu0 %vm789_vm0, %v1412_v52 }
 0x315   : > { %4475 = vmatprep.mubr.msk.f32.mxu0 %vm789_vm0, %v1414_v56 }
 0x316   : > { %4533 = vmatpush3.xpose.msk.msra.mxu0 %vm789_vm0, %v2090_v54  ;;  %v6050_v10 = vpop.permute.xlu0 %2709 }
 0x317   : > { %4534 = vmatprep.subr.msk.mxu0 %vm789_vm0, %v2088_v60  ;;  %v2056_v11 = vpop.permute.xlu1 %2055 }
 0x318   : > { %4476 = vmatmul.mubr.msk.f32.gmra.mxu0 %vm789_vm0, %v1416_v58 }
 0x319   : > { %4478 = vmatprep.mubr.msk.f32.mxu0 %vm789_vm0, %v1418_v62 }
 0x31a   : > { %4535 = vmatpush3.xpose.msk.msra.mxu0 %vm789_vm0, %v2088_v60  ;;  %v6056_v13 = vpop.permute.xlu0 %2713 }
 0x31b   : > { %4536 = vmatprep.subr.msk.mxu0 %vm789_vm0, %v5925_v45  ;;  %v2746_v15 = vpop.permute.xlu1 %2745 }
 0x31c   : > { %4479 = vmatmul.mubr.msk.f32.gmra.mxu0 %vm789_vm0, %v1420_v3 }
 0x31d   : > { %4481 = vmatprep.mubr.msk.f32.mxu0 %vm789_vm0, %v1422_v5 }
 0x31e   : > { %4537 = vmatpush3.xpose.msk.msra.mxu0 %vm789_vm0, %v5925_v45  ;;  %v6064_v0 = vpop.permute.xlu0 %2717 }
 0x31f   : > { %4538 = vmatprep.subr.msk.mxu0 %vm789_vm0, %v2084_v7  ;;  %v2062_v16 = vpop.permute.xlu1 %2061 }
 0x320   : > { %4482 = vmatmul.mubr.msk.f32.gmra.mxu0 %vm789_vm0, %v5931_v20 }
 0x321   : > { %4540 = vmatprep.mubr.msk.f32.mxu0 %vm789_vm0, %v5937_v48 }
 0x322   : > { %4539 = vmatpush3.xpose.msk.msra.mxu0 %vm789_vm0, %v2084_v7  ;;  %v6072_v17 = vpop.permute.xlu0 %2721 }
 0x323   : > { %4604 = vmatprep.subr.msk.mxu0 %vm789_vm0, %v5968_v53  ;;  %v2064_v19 = vpop.permute.xlu1 %2063 }
 0x325   : > { %4541 = vmatmul.mubr.msk.f32.vlgmr.msra.gmra.mxu0 %vm789_vm0, %v2054_v9 }
 0x326   : > { %4543 = vmatprep.mubr.msk.f32.mxu0 %vm789_vm0, %v2056_v11  ;;  %4605 = vmatpush3.xpose.msk.msra.mxu0 %vm789_vm0, %v5968_v53  ;;  %v6080_v21 = vpop.permute.xlu0 %2725 }
 0x327   : > { %4606 = vmatprep.subr.msk.mxu0 %vm789_vm0, %v2746_v15  ;;  %v2742_v23 = vpop.permute.xlu1 %2741 }
 0x329   : > { %4544 = vmatmul.mubr.msk.f32.gmra.mxu0 %vm789_vm0, %v5943_v50 }
 0x32a   : > { %4546 = vmatprep.mubr.msk.f32.mxu0 %vm789_vm0, %v5952_v41  ;;  %4607 = vmatpush3.xpose.msk.msra.mxu0 %vm789_vm0, %v2746_v15  ;;  %v6088_v24 = vpop.permute.xlu0 %2729 }
 0x32b   : > { %4608 = vmatprep.subr.msk.mxu0 %vm789_vm0, %v5960_v49  ;;  %v2070_v26 = vpop.permute.xlu1 %2069 }
 0x32d   : > { %4547 = vmatmul.mubr.msk.f32.gmra.mxu0 %vm789_vm0, %v2062_v16 }
 0x32e   : > { %4549 = vmatprep.mubr.msk.f32.mxu0 %vm789_vm0, %v2064_v19  ;;  %4609 = vmatpush3.xpose.msk.msra.mxu0 %vm789_vm0, %v5960_v49  ;;  %v6096_v27 = vpop.permute.xlu0 %1812 }
 0x32f   : > { %4610 = vmatprep.subr.msk.mxu0 %vm789_vm0, %v2742_v23  ;;  %v2072_v28 = vpop.permute.xlu1 %2071 }
 0x331   : > { %4550 = vmatmul.mubr.msk.f32.gmra.mxu0 %vm789_vm0, %v5974_v55 }
 0x332   : > { %4552 = vmatprep.mubr.msk.f32.mxu0 %vm789_vm0, %v5980_v57  ;;  %4611 = vmatpush3.xpose.msk.msra.mxu0 %vm789_vm0, %v2742_v23  ;;  %v6104_v30 = vpop.permute.xlu0 %1810 }
 0x333   : > { %4612 = vmatprep.subr.msk.mxu0 %vm789_vm0, %v5987_v59  ;;  %v2738_v31 = vpop.permute.xlu1 %2737 }
 0x335   : > { %4553 = vmatmul.mubr.msk.f32.gmra.mxu0 %vm789_vm0, %v2070_v26 }
 0x336   : > { %4555 = vmatprep.mubr.msk.f32.mxu0 %vm789_vm0, %v2072_v28  ;;  %4613 = vmatpush3.xpose.msk.msra.mxu0 %vm789_vm0, %v5987_v59  ;;  %v6112_v32 = vpop.permute.xlu0 %1806 }
 0x337   : > { %4614 = vmatprep.subr.msk.mxu0 %vm789_vm0, %v2738_v31  ;;  %v2078_v34 = vpop.permute.xlu1 %2077 }
 0x339   : > { %4556 = vmatmul.mubr.msk.f32.gmra.mxu0 %vm789_vm0, %v5995_v61 }
 0x33a   : > { %4558 = vmatprep.mubr.msk.f32.mxu0 %vm789_vm0, %v6001_v63  ;;  %4615 = vmatpush3.xpose.msk.msra.mxu0 %vm789_vm0, %v2738_v31  ;;  %v6120_v35 = vpop.permute.xlu0 %1802 }
 0x33b   : > { %4616 = vmatprep.subr.msk.mxu0 %vm789_vm0, %v6011_v2  ;;  %v2080_v18 = vpop.permute.xlu1 %2079 }
 0x33d   : > { %4559 = vmatmul.mubr.msk.f32.gmra.mxu0 %vm789_vm0, %v2078_v34 }
 0x33e   : > { %4561 = vmatprep.mubr.msk.f32.mxu0 %vm789_vm0, %v2080_v18  ;;  %4617 = vmatpush3.xpose.msk.msra.mxu0 %vm789_vm0, %v6011_v2  ;;  %v6128_v22 = vpop.permute.xlu0 %2464 }
 0x33f   : > { %v2734_v29 = vpop.permute.xlu1 %2733 }
 0x340   : > { %4618 = vmatprep.subr.msk.mxu0 %vm789_vm0, %v2734_v29 }
 0x341   : > { %4562 = vmatmul.mubr.msk.f32.gmra.mxu0 %vm789_vm0, %v6021_v4 }
 0x342   : > { %4619 = vmatpush3.xpose.msk.msra.mxu0 %vm789_vm0, %v2734_v29  ;;  %4620 = vmatprep.mubr.msk.f32.mxu0 %vm789_vm0, %v6033_v6  ;;  %v6136_v36 = vpop.permute.xlu0 %2462 }
 0x343   : > { %v2704_v37 = vpop.permute.xlu1 %2703 }
 0x345   : > { %4621 = vmatmul.mubr.msk.f32.vlgmr.msra.gmra.mxu0 %vm789_vm0, %v2704_v37 }
 0x346   : > { %4623 = vmatprep.mubr.msk.f32.mxu0 %vm789_vm0, %v6044_v8  ;;  %v6141_v38 = vpop.permute.xlu0 %2456 }
 0x347   : > { %v2708_v39 = vpop.permute.xlu1 %2707 }
 0x349   : > { %4624 = vmatmul.mubr.msk.f32.gmra.mxu0 %vm789_vm0, %v2708_v39  ;;  %v4382_v40 = vpop.f32.mrf.mxu0 }
 0x34a   : > { %v6144_v42 = vmul.f32 0.17677669, %v4382_v40  ;;  %4626 = vmatprep.mubr.msk.f32.mxu0 %vm789_vm0, %v6050_v10  ;;  %v6148_v43 = vpop.permute.xlu0 %2454 }
 0x34b   : > { %v2712_v44 = vpop.permute.xlu1 %2711  ;;  %v928_v45 = vpop.f32.mrf.mxu0 }
 0x34c   : > { %v6150_v46 = vmul.f32 0.17677669, %v928_v45  ;;  %v1027_v20 = vsel %vm1023_vm1, %v6144_v42, -inf }
 0x34d   : > { %4627 = vmatmul.mubr.msk.f32.gmra.mxu0 %vm789_vm0, %v2712_v44  ;;  %v4385_v47 = vpop.f32.mrf.mxu0  ;;  %1028 = vmax.xlane.f32.xlu1 %v1027_v20 }
 0x34e   : > { %v6155_v48 = vmul.f32 0.17677669, %v4385_v47  ;;  %4629 = vmatprep.mubr.msk.f32.mxu0 %vm789_vm0, %v6056_v13  ;;  %v6159_v25 = vpop.permute.xlu0 %3112  ;;  %v1024_v50 = vsel %vm1023_vm1, %v6150_v46, -inf }
 0x34f   : > { %7237 = vst [vmem:[#allocation11_spill] sm:$0xff] %v6159_v25  ;;  %v2716_v33 = vpop.permute.xlu1 %2715  ;;  %v938_v41 = vpop.f32.mrf.mxu0  ;;  %1025 = vmax.xlane.f32.xlu0 %v1024_v50 }
 0x350   : > { %v6164_v49 = vmul.f32 0.17677669, %v938_v41  ;;  %v1033_v54 = vsel %vm1023_vm1, %v6155_v48, -inf }
 0x351   : > { %4630 = vmatmul.mubr.msk.f32.gmra.mxu0 %vm789_vm0, %v2716_v33  ;;  %v4388_v51 = vpop.f32.mrf.mxu0 }
 0x352   : > { %v6166_v52 = vmul.f32 0.17677669, %v4388_v51  ;;  %4632 = vmatprep.mubr.msk.f32.mxu0 %vm789_vm0, %v6064_v0  ;;  %v6170_v53 = vpop.permute.xlu0 %3110  ;;  %v1030_v62 = vsel %vm1023_vm1, %v6164_v49, -inf }
 0x353   : > { %7238 = vst [vmem:[#allocation12_spill] sm:$0xff] %v6170_v53  ;;  %v2720_v55 = vpop.permute.xlu1 %2719  ;;  %v948_v56 = vpop.f32.mrf.mxu0  ;;  %1034 = vmax.xlane.f32.xlu0 %v1033_v54 }
 0x354   : > { %v1039_v57 = vsel %vm1023_vm1, %v6166_v52, -inf  ;;  %v6177_v59 = vmul.f32 0.17677669, %v948_v56 }
 0x355   : > { %4633 = vmatmul.mubr.msk.f32.gmra.mxu0 %vm789_vm0, %v2720_v55  ;;  %v4391_v58 = vpop.f32.mrf.mxu0  ;;  %1040 = vmax.xlane.f32.xlu1 %v1039_v57 }
 0x356   : > { %v6179_v60 = vmul.f32 0.17677669, %v4391_v58  ;;  %4635 = vmatprep.mubr.msk.f32.mxu0 %vm789_vm0, %v6072_v17  ;;  %v6183_v61 = vpop.permute.xlu0 %3106  ;;  %v1036_v6 = vsel %vm1023_vm1, %v6177_v59, -inf }
 0x357   : > { %7239 = vst [vmem:[#allocation13_spill] sm:$0xff] %v6183_v61  ;;  %v2724_v63 = vpop.permute.xlu1 %2723  ;;  %v958_v1 = vpop.f32.mrf.mxu0  ;;  %1031 = vmax.xlane.f32.xlu0 %v1030_v62 }
 0x358   : > { %v1045_v2 = vsel %vm1023_vm1, %v6179_v60, -inf  ;;  %v6190_v4 = vmul.f32 0.17677669, %v958_v1 }
 0x359   : > { %4636 = vmatmul.mubr.msk.f32.gmra.mxu0 %vm789_vm0, %v2724_v63  ;;  %v4394_v3 = vpop.f32.mrf.mxu0  ;;  %1046 = vmax.xlane.f32.xlu1 %v1045_v2 }
 0x35a   : > { %v6192_v5 = vmul.f32 0.17677669, %v4394_v3  ;;  %4638 = vmatprep.mubr.msk.f32.mxu0 %vm789_vm0, %v6080_v21  ;;  %v6198_v7 = vpop.permute.xlu0 %1816  ;;  %v1042_v0 = vsel %vm1023_vm1, %v6190_v4, -inf }
 0x35b   : > { %v2728_v8 = vpop.permute.xlu1 %2727  ;;  %v968_v9 = vpop.f32.mrf.mxu0  ;;  %1037 = vmax.xlane.f32.xlu0 %v1036_v6  ;;  %4484 = vmatprep.subr.mxu1 %v6198_v7 }
 0x35c   : > { %v1051_v10 = vsel %vm1023_vm1, %v6192_v5, -inf  ;;  %v6204_v13 = vmul.f32 0.17677669, %v968_v9 }
 0x35d   : > { %4639 = vmatmul.mubr.msk.f32.gmra.mxu0 %vm789_vm0, %v2728_v8  ;;  %v4397_v11 = vpop.f32.mrf.mxu0  ;;  %1052 = vmax.xlane.f32.xlu1 %v1051_v10 }
 0x35e   : > { %v6206_v15 = vmul.f32 0.17677669, %v4397_v11  ;;  %4641 = vmatprep.mubr.msk.f32.mxu0 %vm789_vm0, %v6088_v24  ;;  %v1048_v24 = vsel %vm1023_vm1, %v6204_v13, -inf }
 0x35f   : > { %v2732_v16 = vpop.permute.xlu1 %2731  ;;  %v978_v17 = vpop.f32.mrf.mxu0  ;;  %1043 = vmax.xlane.f32.xlu0 %v1042_v0 }
 0x360   : > { %v1057_v19 = vsel %vm1023_vm1, %v6206_v15, -inf  ;;  %v6215_v23 = vmul.f32 0.17677669, %v978_v17 }
 0x361   : > { %4642 = vmatmul.mubr.msk.f32.gmra.mxu0 %vm789_vm0, %v2732_v16  ;;  %v4400_v21 = vpop.f32.mrf.mxu0  ;;  %1058 = vmax.xlane.f32.xlu1 %v1057_v19 }
 0x362   : > { %v6217_v26 = vmul.f32 0.17677669, %v4400_v21  ;;  %v1054_v37 = vsel %vm1023_vm1, %v6215_v23, -inf }
 0x363   : > { %v988_v28 = vpop.f32.mrf.mxu0  ;;  %1049 = vmax.xlane.f32.xlu0 %v1048_v24  ;;  %v6237_v47 = vpop.permute.xlu1 %1814 }
 0x364   : > { %v1063_v31 = vsel %vm1023_vm1, %v6217_v26, -inf  ;;  %v6223_v18 = vmul.f32 0.17677669, %v988_v28 }
 0x365   : > { %v4403_v34 = vpop.f32.mrf.mxu0  ;;  %1064 = vmax.xlane.f32.xlu1 %v1063_v31 }
 0x366   : > { %v6225_v29 = vmul.f32 0.17677669, %v4403_v34  ;;  %v1060_v45 = vsel %vm1023_vm1, %v6223_v18, -inf }
 0x367   : > { %v998_v39 = vpop.f32.mrf.mxu0  ;;  %1055 = vmax.xlane.f32.xlu0 %v1054_v37  ;;  %v6239_v50 = vpop.permute.xlu1 %1808 }
 0x368   : > { %v1069_v40 = vsel %vm1023_vm1, %v6225_v29, -inf  ;;  %v6231_v44 = vmul.f32 0.17677669, %v998_v39 }
 0x369   : > { %1070 = vmax.xlane.f32.xlu1 %v1069_v40 }
 0x36a   : > { %v1066_v20 = vsel %vm1023_vm1, %v6231_v44, -inf }
 0x36b   : > { %1061 = vmax.xlane.f32.xlu0 %v1060_v45  ;;  %v6241_v33 = vpop.permute.xlu1 %1804  ;;  %v6285_v45 = vpop.permute.xlu0 %3116 }
 0x36f   : > { %1067 = vmax.xlane.f32.xlu0 %v1066_v20  ;;  %v6243_v41 = vpop.permute.xlu1 %2460 }
 0x373   : > { %v6245_v51 = vpop.permute.xlu1 %2458 }
 0x377   : > { %v6247_v54 = vpop.permute.xlu1 %2452 }
 0x37b   : > { %v6251_v57 = vpop.permute.xlu1 %3114 }
 0x37f   : > { %v6265_v10 = vpop.permute.xlu1 %3108 }
 0x380   : > { %7240 = vst [vmem:[#allocation14_spill] sm:$0xff] %v6265_v10 }
 0x383   : > { %v6279_v34 = vpop.permute.xlu1 %2466 }
 0x3c4   : > { %v4462_v55 = vpop.f32.mrf.mxu0 }
 0x3c5   : > { %v6249_v56 = vmul.f32 0.17677669, %v4462_v55 }
 0x3c6   : > { %v1555_v58 = vpop.f32.mrf.mxu0 }
 0x3c7   : > { %v6253_v62 = vmul.f32 0.17677669, %v1555_v58  ;;  %v1653_v63 = vsel %vm1023_vm1, %v6249_v56, -inf }
 0x3c8   : > { %v4465_v1 = vpop.f32.mrf.mxu0  ;;  %1654 = vmax.xlane.f32.xlu1 %v1653_v63 }
 0x3c9   : > { %v6257_v2 = vmul.f32 0.17677669, %v4465_v1  ;;  %v1650_v3 = vsel %vm1023_vm1, %v6253_v62, -inf }
 0x3ca   : > { %v1565_v6 = vpop.f32.mrf.mxu0  ;;  %1651 = vmax.xlane.f32.xlu0 %v1650_v3 }
 0x3cb   : > { %v6261_v8 = vmul.f32 0.17677669, %v1565_v6  ;;  %v1659_v9 = vsel %vm1023_vm1, %v6257_v2, -inf }
 0x3cc   : > { %v4468_v11 = vpop.f32.mrf.mxu0  ;;  %1660 = vmax.xlane.f32.xlu1 %v1659_v9 }
 0x3cd   : > { %v6267_v0 = vmul.f32 0.17677669, %v4468_v11  ;;  %v1656_v16 = vsel %vm1023_vm1, %v6261_v8, -inf }
 0x3ce   : > { %v1575_v17 = vpop.f32.mrf.mxu0  ;;  %1657 = vmax.xlane.f32.xlu0 %v1656_v16 }
 0x3cf   : > { %v6271_v19 = vmul.f32 0.17677669, %v1575_v17  ;;  %v1665_v21 = vsel %vm1023_vm1, %v6267_v0, -inf }
 0x3d0   : > { %v4471_v24 = vpop.f32.mrf.mxu0  ;;  %1666 = vmax.xlane.f32.xlu1 %v1665_v21 }
 0x3d1   : > { %v6275_v28 = vmul.f32 0.17677669, %v4471_v24  ;;  %v1662_v31 = vsel %vm1023_vm1, %v6271_v19, -inf }
 0x3d2   : > { %v1585_v37 = vpop.f32.mrf.mxu0  ;;  %1663 = vmax.xlane.f32.xlu0 %v1662_v31 }
 0x3d3   : > { %v6281_v39 = vmul.f32 0.17677669, %v1585_v37  ;;  %v1671_v40 = vsel %vm1023_vm1, %v6275_v28, -inf }
 0x3d4   : > { %v4474_v20 = vpop.f32.mrf.mxu0  ;;  %1672 = vmax.xlane.f32.xlu1 %v1671_v40 }
 0x3d5   : > { %v6287_v55 = vmul.f32 0.17677669, %v4474_v20  ;;  %v1668_v58 = vsel %vm1023_vm1, %v6281_v39, -inf }
 0x3d6   : > { %v1595_v63 = vpop.f32.mrf.mxu0  ;;  %v1029_v1 = vpop.xlane.xlu1 %1028  ;;  %1669 = vmax.xlane.f32.xlu0 %v1668_v58 }
 0x3d7   : > { %v6291_v3 = vmul.f32 0.17677669, %v1595_v63  ;;  %v1073_v6 = vsub.f32 %v6144_v42, %v1029_v1  ;;  %v1677_v9 = vsel %vm1023_vm1, %v6287_v55, -inf }
 0x3d8   : > { %v4477_v11 = vpop.f32.mrf.mxu0  ;;  %1678 = vmax.xlane.f32.xlu1 %v1677_v9  ;;  %v1026_v16 = vpop.xlane.xlu0 %1025 }
 0x3d9   : > { %v6296_v17 = vmul.f32 0.17677669, %v4477_v11  ;;  %v1072_v21 = vsub.f32 %v6150_v46, %v1026_v16  ;;  %v1090_v24 = vmul.f32 1.442695, %v1073_v6  ;;  %v1674_v20 = vsel %vm1023_vm1, %v6291_v3, -inf }
 0x3da   : > { %v1605_v31 = vpop.f32.mrf.mxu0 }
 0x3db   : > { %v1088_v37 = vmul.f32 1.442695, %v1072_v21  ;;  %v6299_v40 = vmul.f32 0.17677669, %v1605_v31  ;;  %v1683_v42 = vsel %vm1023_vm1, %v6296_v17, -inf }
 0x3dc   : > { %v4480_v58 = vpop.f32.mrf.mxu0  ;;  %1675 = vmax.xlane.f32.xlu1 %v1674_v20  ;;  %1684 = vmax.xlane.f32.xlu0 %v1683_v42  ;;  %v1035_v63 = vpop.xlane.xlu0 %1034 }
 0x3dd   : > { %4959 = vpow2.f32 %v1088_v37  ;;  %v6305_v1 = vmul.f32 0.17677669, %v4480_v58  ;;  %v1075_v46 = vsub.f32 %v6155_v48, %v1035_v63  ;;  %v1680_v16 = vsel %vm1023_vm1, %v6299_v40, -inf }
 0x3de   : > { %4961 = vpow2.f32 %v1090_v24  ;;  %v1615_v6 = vpop.f32.mrf.mxu0  ;;  %v1041_v9 = vpop.xlane.xlu1 %1040 }
 0x3df   : > { %v6308_v11 = vmul.f32 0.17677669, %v1615_v6  ;;  %v1689_v21 = vsel %vm1023_vm1, %v6305_v1, -inf  ;;  %v1094_v42 = vmul.f32 1.442695, %v1075_v46  ;;  %v1077_v10 = vsub.f32 %v6166_v52, %v1041_v9 }
 0x3e0   : > { %v4483_v31 = vpop.f32.mrf.mxu0  ;;  %1681 = vmax.xlane.f32.xlu1 %v1680_v16  ;;  %1690 = vmax.xlane.f32.xlu0 %v1689_v21  ;;  %v1032_v20 = vpop.xlane.xlu0 %1031 }
 0x3e1   : > { %v6314_v37 = vmul.f32 0.17677669, %v4483_v31  ;;  %v1074_v24 = vsub.f32 %v6164_v49, %v1032_v20  ;;  %v1686_v61 = vsel %vm1023_vm1, %v6308_v11, -inf  ;;  %v1098_v52 = vmul.f32 1.442695, %v1077_v10 }
 0x3e2   : > { %v1625_v48 = vpop.f32.mrf.mxu0  ;;  %v1047_v58 = vpop.xlane.xlu1 %1046 }
 0x3e3   : > { %v1092_v63 = vmul.f32 1.442695, %v1074_v24  ;;  %v6317_v6 = vmul.f32 0.17677669, %v1625_v48  ;;  %v1695_v16 = vsel %vm1023_vm1, %v6314_v37, -inf }
 0x3e4   : > { %1687 = vmax.xlane.f32.xlu1 %v1686_v61  ;;  %v1038_v21 = vpop.xlane.xlu0 %1037  ;;  %1696 = vmax.xlane.f32.xlu0 %v1695_v16  ;;  %v1079_v61 = vsub.f32 %v6179_v60, %v1047_v58 }
 0x3e5   : > { %4963 = vpow2.f32 %v1092_v63  ;;  %v4542_v31 = vpop.f32.mrf.mxu0  ;;  %v1076_v49 = vsub.f32 %v6177_v59, %v1038_v21  ;;  %v1692_v53 = vsel %vm1023_vm1, %v6317_v6, -inf }
 0x3e6   : > { %v1053_v46 = vpop.xlane.xlu1 %1052  ;;  %4965 = vpow2.f32 %v1094_v42  ;;  %v6325_v20 = vmul.f32 0.17677669, %v4542_v31  ;;  %v1102_v60 = vmul.f32 1.442695, %v1079_v61 }
 0x3e7   : > { %v1096_v24 = vmul.f32 1.442695, %v1076_v49  ;;  %v2213_v48 = vpop.f32.mrf.mxu0  ;;  %v1081_v10 = vsub.f32 %v6192_v5, %v1053_v46 }
 0x3e8   : > { %1693 = vmax.xlane.f32.xlu1 %v1692_v53  ;;  %v1044_v9 = vpop.xlane.xlu0 %1043  ;;  %v6335_v21 = vmul.f32 0.17677669, %v2213_v48  ;;  %v2311_v53 = vsel %vm1023_vm1, %v6325_v20, -inf }
 0x3e9   : > { %4967 = vpow2.f32 %v1096_v24  ;;  %v4545_v63 = vpop.f32.mrf.mxu0  ;;  %v1078_v16 = vsub.f32 %v6190_v4, %v1044_v9 }
 0x3ea   : > { %v6331_v25 = vpop.eup %4959  ;;  %v1059_v59 = vpop.xlane.xlu1 %1058  ;;  %4969 = vpow2.f32 %v1098_v52  ;;  %v6349_v9 = vmul.f32 0.17677669, %v4545_v63  ;;  %v2308_v46 = vsel %vm1023_vm1, %v6335_v21, -inf }
 0x3eb   : > { %v6333_v42 = vpop.eup %4961  ;;  %v1100_v31 = vmul.f32 1.442695, %v1078_v16  ;;  %v2223_v49 = vpop.f32.mrf.mxu0  ;;  %4420 = vmatprep.mubr.msk.f32.mxu1 %vm1023_vm1, %v6331_v25  ;;  %v1106_v16 = vmul.f32 1.442695, %v1081_v10 }
 0x3ec   : > { %2312 = vmax.xlane.f32.xlu1 %v2311_v53  ;;  %v1050_v4 = vpop.xlane.xlu0 %1049  ;;  %4421 = vmatmul.mubr.msk.f32.vlgmr.msra.gmra.mxu1 %vm1023_vm1, %v6333_v42  ;;  %v2317_v10 = vsel %vm1023_vm1, %v6349_v9, -inf }
 0x3ed   : > { %4971 = vpow2.f32 %v1100_v31  ;;  %v4548_v58 = vpop.f32.mrf.mxu0  ;;  %v1080_v24 = vsub.f32 %v6204_v13, %v1050_v4  ;;  %4485 = vmatpush3.msra.mxu1 %v6198_v7  ;;  %v1083_v13 = vsub.f32 %v6206_v15, %v1059_v59 }
 0x3ee   : > { %v6346_v48 = vmul.f32 0.17677669, %v4548_v58  ;;  %4486 = vmatprep.subr.mxu1 %v6237_v47  ;;  %v1065_v5 = vpop.xlane.xlu1 %1064  ;;  %4973 = vpow2.f32 %v1102_v60  ;;  %v6363_v60 = vmul.f32 0.17677669, %v2223_v49 }
 0x3ef   : > { %v1104_v52 = vmul.f32 1.442695, %v1080_v24  ;;  %v2233_v61 = vpop.f32.mrf.mxu0  ;;  %4487 = vmatpush3.msra.mxu1 %v6237_v47 }
 0x3f0   : > { %4488 = vmatprep.subr.mxu1 %v6096_v27  ;;  %2309 = vmax.xlane.f32.xlu1 %v2308_v46  ;;  %v2323_v7 = vsel %vm1023_vm1, %v6346_v48, -inf  ;;  %v1056_v63 = vpop.xlane.xlu0 %1055 }
 0x3f1   : > { %4975 = vpow2.f32 %v1104_v52  ;;  %v4551_v31 = vpop.f32.mrf.mxu0  ;;  %2324 = vmax.xlane.f32.xlu0 %v2323_v7  ;;  %v1082_v53 = vsub.f32 %v6215_v23, %v1056_v63  ;;  %4489 = vmatpush3.msra.mxu1 %v6096_v27  ;;  %v1110_v27 = vmul.f32 1.442695, %v1083_v13  ;;  %v1085_v23 = vsub.f32 %v6217_v26, %v1065_v5 }
 0x3f2   : > { %v6360_v47 = vpop.eup %4963  ;;  %4490 = vmatprep.subr.mxu1 %v6104_v30  ;;  %4977 = vpow2.f32 %v1106_v16  ;;  %v1071_v58 = vpop.xlane.xlu1 %1070  ;;  %v6382_v16 = vmul.f32 0.17677669, %v2233_v61 }
 0x3f3   : > { %v1108_v15 = vmul.f32 1.442695, %v1082_v53  ;;  %v2243_v59 = vpop.f32.mrf.mxu0  ;;  %4491 = vmatpush3.msra.mxu1 %v6104_v30  ;;  %4423 = vmatprep.mubr.msk.f32.mxu1 %vm1023_vm1, %v6360_v47  ;;  %v6370_v4 = vpop.eup %4965  ;;  %v1114_v13 = vmul.f32 1.442695, %v1085_v23  ;;  %v1087_v7 = vsub.f32 %v6225_v29, %v1071_v58 }
 0x3f4   : > { %4492 = vmatprep.subr.mxu1 %v6239_v50  ;;  %2318 = vmax.xlane.f32.xlu1 %v2317_v10  ;;  %v1062_v49 = vpop.xlane.xlu0 %1061  ;;  %v2320_v23 = vsel %vm1023_vm1, %v6382_v16, -inf }
 0x3f5   : > { %4979 = vpow2.f32 %v1108_v15  ;;  %v4554_v24 = vpop.f32.mrf.mxu0  ;;  %v1084_v30 = vsub.f32 %v6223_v18, %v1062_v49  ;;  %4424 = vmatmul.mubr.msk.f32.gmra.mxu1 %vm1023_vm1, %v6370_v4  ;;  %v2314_v18 = vsel %vm1023_vm1, %v6363_v60, -inf  ;;  %v1118_v49 = vmul.f32 1.442695, %v1087_v7 }
 0x3f6   : > { %v6377_v52 = vpop.eup %4967  ;;  %v6379_v46 = vmul.f32 0.17677669, %v4554_v24  ;;  %4493 = vmatpush3.msra.mxu1 %v6239_v50  ;;  %4981 = vpow2.f32 %v1110_v27 }
 0x3f7   : > { %v1112_v26 = vmul.f32 1.442695, %v1084_v30  ;;  %4494 = vmatprep.subr.mxu1 %v6112_v32  ;;  %v2253_v5 = vpop.f32.mrf.mxu0  ;;  %4426 = vmatprep.mubr.msk.f32.mxu1 %vm1023_vm1, %v6377_v52  ;;  %v6393_v63 = vpop.eup %4969 }
 0x3f8   : > { %4495 = vmatpush3.msra.mxu1 %v6112_v32  ;;  %2315 = vmax.xlane.f32.xlu1 %v2314_v18  ;;  %v2335_v50 = vsel %vm1023_vm1, %v6379_v46, -inf  ;;  %v1068_v61 = vpop.xlane.xlu0 %1067  ;;  %7241 = vst [vmem:[#allocation15_spill] sm:$0xff] %v6393_v63  ;;  %v6401_v32 = vmul.f32 0.17677669, %v4551_v31 }
 0x3f9   : > { %4983 = vpow2.f32 %v1112_v26  ;;  %4496 = vmatprep.subr.mxu1 %v6241_v33  ;;  %v4557_v53 = vpop.f32.mrf.mxu0  ;;  %2336 = vmax.xlane.f32.xlu0 %v2335_v50  ;;  %v1086_v15 = vsub.f32 %v6231_v44, %v1068_v61  ;;  %v6423_v26 = vmul.f32 0.17677669, %v2243_v59  ;;  %v6437_v61 = vmul.f32 0.17677669, %v2253_v5 }
 0x3fa   : > { %v6397_v10 = vpop.eup %4971  ;;  %4427 = vmatmul.mubr.msk.f32.gmra.mxu1 %vm1023_vm1, %v6393_v63  ;;  %4985 = vpow2.f32 %v1114_v13 }
 0x3fb   : > { %7242 = vst [vmem:[#allocation16_spill] sm:$0xff] %v6397_v10  ;;  %v1116_v29 = vmul.f32 1.442695, %v1086_v15  ;;  %4497 = vmatpush3.msra.mxu1 %v6241_v33  ;;  %v2263_v27 = vpop.f32.mrf.mxu0  ;;  %4429 = vmatprep.mubr.msk.f32.mxu1 %vm1023_vm1, %v6397_v10  ;;  %v6411_v58 = vpop.eup %4973 }
 0x3fc   : > { %4498 = vmatprep.subr.mxu1 %v6120_v35  ;;  %v6409_v44 = vmul.f32 0.17677669, %v2263_v27  ;;  %2321 = vmax.xlane.f32.xlu1 %v2320_v23  ;;  %7243 = vst [vmem:[#allocation17_spill] sm:$0xff] %v6411_v58 }
 0x3fd   : > { %4987 = vpow2.f32 %v1116_v29  ;;  %4499 = vmatpush3.msra.mxu1 %v6120_v35  ;;  %v4560_v33 = vpop.f32.mrf.mxu0  ;;  %v2329_v35 = vsel %vm1023_vm1, %v6401_v32, -inf  ;;  %v2326_v29 = vsel %vm1023_vm1, %v6423_v26, -inf }
 0x3fe   : > { %v6414_v31 = vpop.eup %4975  ;;  %4564 = vmatprep.subr.mxu1 %v6279_v34  ;;  %v6417_v24 = vmul.f32 0.17677669, %v4560_v33  ;;  %4430 = vmatmul.mubr.msk.f32.gmra.mxu1 %vm1023_vm1, %v6411_v58  ;;  %v2338_v30 = vsel %vm1023_vm1, %v6409_v44, -inf  ;;  %4989 = vpow2.f32 %v1118_v49 }
 0x3ff   : > { %v2273_v18 = vpop.f32.mrf.mxu0  ;;  %2339 = vmax.xlane.f32.xlu0 %v2338_v30  ;;  %4432 = vmatprep.mubr.msk.f32.mxu1 %vm1023_vm1, %v6414_v31  ;;  %v6429_v13 = vpop.eup %4977 }
 0x400   : > { %7244 = vst [vmem:[#allocation18_spill] sm:$0xff] %v6417_v24  ;;  %2330 = vmax.xlane.f32.xlu1 %v2329_v35  ;;  %v2347_v59 = vsel %vm1023_vm1, %v6417_v24, -inf  ;;  %v6455_v35 = vmul.f32 0.17677669, %v4557_v53 }
 0x401   : > { %v4563_v7 = vpop.f32.mrf.mxu0 }
 0x402   : > { %v6431_v50 = vpop.eup %4979  ;;  %4433 = vmatmul.mubr.msk.f32.gmra.mxu1 %vm1023_vm1, %v6429_v13  ;;  %7247 = vst [vmem:[#allocation21_spill] sm:$0xff] %v6455_v35 }
 0x403   : > { %v2283_v15 = vpop.f32.mrf.mxu0  ;;  %2348 = vmax.xlane.f32.xlu0 %v2347_v59  ;;  %4435 = vmatprep.mubr.msk.f32.mxu1 %vm1023_vm1, %v6431_v50  ;;  %v6445_v23 = vpop.eup %4981 }
 0x404   : > { %v6443_v27 = vmul.f32 0.17677669, %v2283_v15  ;;  %2327 = vmax.xlane.f32.xlu1 %v2326_v29  ;;  %v2332_v15 = vsel %vm1023_vm1, %v6437_v61, -inf }
 0x405   : > { %v4622_v49 = vpop.f32.mrf.mxu0 }
 0x406   : > { %7245 = vst [vmem:[#allocation19_spill] sm:$0xff] %v6443_v27  ;;  %v6447_v33 = vpop.eup %4983  ;;  %v6449_v30 = vmul.f32 0.17677669, %v4622_v49  ;;  %4436 = vmatmul.mubr.msk.f32.gmra.mxu1 %vm1023_vm1, %v6445_v23  ;;  %v2350_v5 = vsel %vm1023_vm1, %v6443_v27, -inf }
 0x407   : > { %v2863_v59 = vpop.f32.mrf.mxu0  ;;  %2351 = vmax.xlane.f32.xlu0 %v2350_v5  ;;  %4438 = vmatprep.mubr.msk.f32.mxu1 %vm1023_vm1, %v6447_v33  ;;  %v6461_v29 = vpop.eup %4985  ;;  %v6471_v5 = vmul.f32 0.17677669, %v2273_v18 }
 0x408   : > { %7246 = vst [vmem:[#allocation20_spill] sm:$0xff] %v6449_v30  ;;  %2333 = vmax.xlane.f32.xlu1 %v2332_v15  ;;  %7248 = vst [vmem:[#allocation22_spill] sm:$0xff] %v6461_v29  ;;  %v2961_v53 = vsel %vm1023_vm1, %v6449_v30, -inf  ;;  %v2341_v15 = vsel %vm1023_vm1, %v6455_v35, -inf  ;;  %v6493_v35 = vmul.f32 0.17677669, %v2863_v59 }
 0x409   : > { %v4625_v49 = vpop.f32.mrf.mxu0  ;;  %7251 = vst [vmem:[#allocation25_spill] sm:$0xff] %v6471_v5 }
 0x40a   : > { %v6463_v58 = vpop.eup %4987  ;;  %v6465_v10 = vmul.f32 0.17677669, %v4625_v49  ;;  %4439 = vmatmul.mubr.msk.f32.gmra.mxu1 %vm1023_vm1, %v6461_v29  ;;  %v6485_v29 = vmul.f32 0.17677669, %v4563_v7  ;;  %7256 = vst [vmem:[#allocation30_spill] sm:$0xff] %v6493_v35 }
 0x40b   : > { %7249 = vst [vmem:[#allocation23_spill] sm:$0xff] %v6463_v58  ;;  %v2873_v63 = vpop.f32.mrf.mxu0  ;;  %2962 = vmax.xlane.f32.xlu0 %v2961_v53  ;;  %4441 = vmatprep.mubr.msk.f32.mxu1 %vm1023_vm1, %v6463_v58  ;;  %v6477_v27 = vpop.eup %4989  ;;  %v2344_v58 = vsel %vm1023_vm1, %v6471_v5, -inf }
 0x40c   : > { %7250 = vst [vmem:[#allocation24_spill] sm:$0xff] %v6465_v10  ;;  %2342 = vmax.xlane.f32.xlu1 %v2341_v15  ;;  %7252 = vst [vmem:[#allocation26_spill] sm:$0xff] %v6477_v27  ;;  %v6479_v24 = vmul.f32 0.17677669, %v2873_v63  ;;  %v2967_v18 = vsel %vm1023_vm1, %v6465_v10, -inf  ;;  %v2353_v7 = vsel %vm1023_vm1, %v6485_v29, -inf }
 0x40d   : > { %v4628_v49 = vpop.f32.mrf.mxu0  ;;  %7254 = vst [vmem:[#allocation28_spill] sm:$0xff] %v6485_v29 }
 0x40e   : > { %7253 = vst [vmem:[#allocation27_spill] sm:$0xff] %v6479_v24  ;;  %4442 = vmatmul.mubr.msk.f32.gmra.mxu1 %vm1023_vm1, %v6477_v27  ;;  %v6489_v30 = vmul.f32 0.17677669, %v4628_v49  ;;  %v2964_v63 = vsel %vm1023_vm1, %v6479_v24, -inf  ;;  %v2958_v49 = vsel %vm1023_vm1, %v6493_v35, -inf }
 0x40f   : > { %v2883_v53 = vpop.f32.mrf.mxu0  ;;  %2968 = vmax.xlane.f32.xlu0 %v2967_v18 }
 0x410   : > { %2345 = vmax.xlane.f32.xlu1 %v2344_v58  ;;  %7255 = vst [vmem:[#allocation29_spill] sm:$0xff] %v6489_v30  ;;  %v6497_v18 = vmul.f32 0.17677669, %v2883_v53  ;;  %v2973_v58 = vsel %vm1023_vm1, %v6489_v30, -inf }
 0x411   : > { %v4631_v15 = vpop.f32.mrf.mxu0 }
 0x412   : > { %7257 = vst [vmem:[#allocation31_spill] sm:$0xff] %v6497_v18  ;;  %v6503_v24 = vmul.f32 0.17677669, %v4631_v15 }
 0x413   : > { %v2893_v27 = vpop.f32.mrf.mxu0  ;;  %2965 = vmax.xlane.f32.xlu0 %v2964_v63  ;;  %v2970_v63 = vsel %vm1023_vm1, %v6497_v18, -inf }
 0x414   : > { %2354 = vmax.xlane.f32.xlu1 %v2353_v7  ;;  %v6507_v7 = vmul.f32 0.17677669, %v2893_v27  ;;  %v2979_v53 = vsel %vm1023_vm1, %v6503_v24, -inf }
 0x415   : > { %v4634_v10 = vpop.f32.mrf.mxu0 }
 0x417   : > { %v2903_v5 = vpop.f32.mrf.mxu0  ;;  %2974 = vmax.xlane.f32.xlu0 %v2973_v58 }
 0x418   : > { %2959 = vmax.xlane.f32.xlu1 %v2958_v49  ;;  %v2976_v49 = vsel %vm1023_vm1, %v6507_v7, -inf }
 0x419   : > { %v4637_v59 = vpop.f32.mrf.mxu0 }
 0x41a   : > { %v6511_v58 = vmul.f32 0.17677669, %v4637_v59 }
 0x41b   : > { %v2913_v29 = vpop.f32.mrf.mxu0  ;;  %2971 = vmax.xlane.f32.xlu0 %v2970_v63 }
 0x41c   : > { %7258 = vst [vmem:[#allocation32_spill] sm:$0xff] %v6511_v58  ;;  %v2991_v18 = vsel %vm1023_vm1, %v6511_v58, -inf }
 0x41d   : > { %v4640_v30 = vpop.f32.mrf.mxu0 }
 0x41e   : > { %v6515_v15 = vmul.f32 0.17677669, %v4640_v30  ;;  %v6529_v30 = vmul.f32 0.17677669, %v4634_v10 }
 0x41f   : > { %2980 = vmax.xlane.f32.xlu0 %v2979_v53  ;;  %v2923_v35 = vpop.f32.mrf.mxu0 }
 0x420   : > { %7259 = vst [vmem:[#allocation33_spill] sm:$0xff] %v6515_v15  ;;  %v2997_v59 = vsel %vm1023_vm1, %v6515_v15, -inf  ;;  %7261 = vst [vmem:[#allocation35_spill] sm:$0xff] %v6529_v30  ;;  %v6540_v15 = vmul.f32 0.17677669, %v2923_v35 }
 0x421   : > { %v4643_v63 = vpop.f32.mrf.mxu0 }
 0x422   : > { %v6521_v27 = vmul.f32 0.17677669, %v4643_v63  ;;  %v2994_v35 = vsel %vm1023_vm1, %v6540_v15, -inf }
 0x423   : > { %2977 = vmax.xlane.f32.xlu0 %v2976_v49  ;;  %v6531_v49 = vmul.f32 0.17677669, %v2903_v5  ;;  %v2933_v5 = vpop.f32.mrf.mxu0 }
 0x424   : > { %7260 = vst [vmem:[#allocation34_spill] sm:$0xff] %v6521_v27  ;;  %v3003_v53 = vsel %vm1023_vm1, %v6521_v27, -inf }
 0x425   : > { %7262 = vst [vmem:[#allocation36_spill] sm:$0xff] %v6531_v49  ;;  %v2982_v63 = vsel %vm1023_vm1, %v6531_v49, -inf }
 0x427   : > { %2992 = vmax.xlane.f32.xlu0 %v2991_v18  ;;  %v6535_v18 = vmul.f32 0.17677669, %v2913_v29 }
 0x429   : > { %3104 = vrot.lane.b32.xlu1 %v5686_v14, %s5348_s15  ;;  %v2985_v14 = vsel %vm1023_vm1, %v6529_v30, -inf  ;;  %v2988_v10 = vsel %vm1023_vm1, %v6535_v18, -inf }
 0x42b   : > { %2998 = vmax.xlane.f32.xlu0 %v2997_v59 }
 0x42f   : > { %3004 = vmax.xlane.f32.xlu0 %v3003_v53 }
 0x445   : > { %3102 = vrot.lane.b32.xlu0 %v5680_v12, %s5348_s15 }
 0x44d   : > { %2986 = vmax.xlane.f32.xlu1 %v2985_v14 }
 0x451   : > { %2983 = vmax.xlane.f32.xlu1 %v2982_v63  ;;  %v1655_v59 = vpop.xlane.xlu1 %1654  ;;  %v6546_v63 = vmul.f32 0.17677669, %v2933_v5 }
 0x452   : > { %v1699_v53 = vsub.f32 %v6249_v56, %v1655_v59 }
 0x453   : > { %v1652_v27 = vpop.xlane.xlu0 %1651 }
 0x454   : > { %v1698_v12 = vsub.f32 %v6253_v62, %v1652_v27  ;;  %v1716_v58 = vmul.f32 1.442695, %v1699_v53 }
 0x455   : > { %2989 = vmax.xlane.f32.xlu1 %v2988_v10  ;;  %v1661_v29 = vpop.xlane.xlu1 %1660 }
 0x456   : > { %v1714_v14 = vmul.f32 1.442695, %v1698_v12  ;;  %v1701_v30 = vsub.f32 %v6257_v2, %v1661_v29  ;;  %v3000_v12 = vsel %vm1023_vm1, %v6546_v63, -inf }
 0x457   : > { %v1658_v49 = vpop.xlane.xlu0 %1657 }
 0x458   : > { %4991 = vpow2.f32 %v1714_v14  ;;  %v1700_v56 = vsub.f32 %v6261_v8, %v1658_v49  ;;  %v1720_v62 = vmul.f32 1.442695, %v1701_v30 }
 0x459   : > { %4993 = vpow2.f32 %v1716_v58  ;;  %2995 = vmax.xlane.f32.xlu1 %v2994_v35  ;;  %v1667_v27 = vpop.xlane.xlu1 %1666 }
 0x45a   : > { %v1718_v59 = vmul.f32 1.442695, %v1700_v56  ;;  %v1703_v53 = vsub.f32 %v6267_v0, %v1667_v27  ;;  %v1144_v0 = vsel %vm1023_vm1, %v6414_v31, 0.0 }
 0x45b   : > { %v1664_v10 = vpop.xlane.xlu0 %1663 }
 0x45c   : > { %4995 = vpow2.f32 %v1718_v59  ;;  %v1702_v2 = vsub.f32 %v6271_v19, %v1664_v10  ;;  %v1724_v5 = vmul.f32 1.442695, %v1703_v53  ;;  %v1123_v10 = vsel %vm1023_vm1, %v6333_v42, 0.0 }
 0x45d   : > { %4997 = vpow2.f32 %v1720_v62  ;;  %3001 = vmax.xlane.f32.xlu1 %v3000_v12  ;;  %v1673_v8 = vpop.xlane.xlu1 %1672  ;;  %v1120_v62 = vsel %vm1023_vm1, %v6331_v25, 0.0 }
 0x45e   : > { %v1722_v49 = vmul.f32 1.442695, %v1702_v2  ;;  %v1705_v58 = vsub.f32 %v6275_v28, %v1673_v8  ;;  %v1147_v28 = vsel %vm1023_vm1, %v6429_v13, 0.0  ;;  %v1150_v2 = vsel %vm1023_vm1, %v6431_v50, 0.0 }
 0x45f   : > { %v1670_v30 = vpop.xlane.xlu0 %1669  ;;  %v1126_v8 = vsel %vm1023_vm1, %v6360_v47, 0.0 }
 0x460   : > { %4999 = vpow2.f32 %v1722_v49  ;;  %v1704_v29 = vsub.f32 %v6281_v39, %v1670_v30  ;;  %v1728_v14 = vmul.f32 1.442695, %v1705_v58 }
 0x461   : > { %5001 = vpow2.f32 %v1724_v5  ;;  %v1679_v19 = vpop.xlane.xlu1 %1678  ;;  %1145 = vadd.xlane.f32.xlu1 %v1144_v0 }
 0x462   : > { %v1726_v56 = vmul.f32 1.442695, %v1704_v29  ;;  %v1707_v35 = vsub.f32 %v6287_v55, %v1679_v19  ;;  %v1129_v29 = vsel %vm1023_vm1, %v6370_v4, 0.0  ;;  %v1132_v4 = vsel %vm1023_vm1, %v6377_v52, 0.0 }
 0x464   : > { %5003 = vpow2.f32 %v1726_v56  ;;  %1121 = vadd.xlane.f32.xlu0 %v1120_v62  ;;  %v1732_v55 = vmul.f32 1.442695, %v1707_v35 }
 0x465   : > { %v6564_v27 = vpop.eup %4991  ;;  %5005 = vpow2.f32 %v1728_v14  ;;  %v1676_v39 = vpop.xlane.xlu1 %1675  ;;  %1148 = vadd.xlane.f32.xlu1 %v1147_v28 }
 0x466   : > { %v1685_v31 = vpop.xlane.xlu0 %1684  ;;  %v6566_v59 = vpop.eup %4993  ;;  %v1706_v53 = vsub.f32 %v6291_v3, %v1676_v39  ;;  %4500 = vmatprep.mubr.msk.f32.mxu1 %vm1023_vm1, %v6564_v27 }
 0x467   : > { %v1709_v25 = vsub.f32 %v6296_v17, %v1685_v31  ;;  %4501 = vmatmul.mubr.msk.f32.vlgmr.msra.gmra.mxu1 %vm1023_vm1, %v6566_v59 }
 0x468   : > { %v1730_v13 = vmul.f32 1.442695, %v1706_v53  ;;  %1124 = vadd.xlane.f32.xlu0 %v1123_v10  ;;  %4565 = vmatpush3.msra.mxu1 %v6279_v34 }
 0x469   : > { %v6579_v3 = vpop.eup %4995  ;;  %4566 = vmatprep.subr.mxu1 %v6128_v22  ;;  %v1682_v12 = vpop.xlane.xlu1 %1681  ;;  %1151 = vadd.xlane.f32.xlu1 %v1150_v2  ;;  %v1736_v34 = vmul.f32 1.442695, %v1709_v25 }
 0x46a   : > { %v1691_v17 = vpop.xlane.xlu0 %1690  ;;  %v4998_v5 = vpop.eup %4997  ;;  %5007 = vpow2.f32 %v1730_v13  ;;  %v1708_v42 = vsub.f32 %v6299_v40, %v1682_v12  ;;  %4567 = vmatpush3.msra.mxu1 %v6128_v22  ;;  %4503 = vmatprep.mubr.msk.f32.mxu1 %vm1023_vm1, %v6579_v3  ;;  %v1153_v22 = vsel %vm1023_vm1, %v6445_v23, 0.0 }
 0x46b   : > { %5009 = vpow2.f32 %v1732_v55  ;;  %v1711_v50 = vsub.f32 %v6305_v1, %v1691_v17  ;;  %4568 = vmatprep.subr.mxu1 %v6136_v36  ;;  %4504 = vmatmul.mubr.msk.f32.gmra.mxu1 %vm1023_vm1, %v4998_v5  ;;  %v1755_v35 = vsel %vm1023_vm1, %v4998_v5, 0.0  ;;  %v1752_v55 = vsel %vm1023_vm1, %v6579_v3, 0.0 }
 0x46c   : > { %v1734_v49 = vmul.f32 1.442695, %v1708_v42  ;;  %1127 = vadd.xlane.f32.xlu0 %v1126_v8  ;;  %4569 = vmatpush3.msra.mxu1 %v6136_v36 }
 0x46d   : > { %v6594_v40 = vpop.eup %4999  ;;  %4570 = vmatprep.subr.mxu1 %v6243_v41  ;;  %v1688_v58 = vpop.xlane.xlu1 %1687  ;;  %1154 = vadd.xlane.f32.xlu1 %v1153_v22  ;;  %v1740_v36 = vmul.f32 1.442695, %v1711_v50 }
 0x46e   : > { %v5002_v1 = vpop.eup %5001  ;;  %5011 = vpow2.f32 %v1734_v49  ;;  %v1710_v30 = vsub.f32 %v6308_v11, %v1688_v58  ;;  %v1697_v47 = vpop.xlane.xlu0 %1696  ;;  %4571 = vmatpush3.msra.mxu1 %v6243_v41  ;;  %4506 = vmatprep.mubr.msk.f32.mxu1 %vm1023_vm1, %v6594_v40  ;;  %v1156_v41 = vsel %vm1023_vm1, %v6447_v33, 0.0  ;;  %v1758_v13 = vsel %vm1023_vm1, %v6594_v40, 0.0 }
 0x46f   : > { %5013 = vpow2.f32 %v1736_v34  ;;  %v1713_v23 = vsub.f32 %v6314_v37, %v1697_v47  ;;  %4572 = vmatprep.subr.mxu1 %v6245_v51  ;;  %4507 = vmatmul.mubr.msk.f32.gmra.mxu1 %vm1023_vm1, %v5002_v1 }
 0x470   : > { %v1738_v0 = vmul.f32 1.442695, %v1710_v30  ;;  %1130 = vadd.xlane.f32.xlu0 %v1129_v29  ;;  %4573 = vmatpush3.msra.mxu1 %v6245_v51 }
 0x471   : > { %v6609_v11 = vpop.eup %5003  ;;  %4574 = vmatprep.subr.mxu1 %v6141_v38  ;;  %v1694_v14 = vpop.xlane.xlu1 %1693  ;;  %1157 = vadd.xlane.f32.xlu1 %v1156_v41  ;;  %v1744_v51 = vmul.f32 1.442695, %v1713_v23 }
 0x472   : > { %v5006_v37 = vpop.eup %5005  ;;  %5015 = vpow2.f32 %v1738_v0  ;;  %v1712_v19 = vsub.f32 %v6317_v6, %v1694_v14  ;;  %4575 = vmatpush3.msra.mxu1 %v6141_v38  ;;  %4509 = vmatprep.mubr.msk.f32.mxu1 %vm1023_vm1, %v6609_v11  ;;  %v1749_v6 = vsel %vm1023_vm1, %v6566_v59, 0.0  ;;  %v1764_v58 = vsel %vm1023_vm1, %v6609_v11, 0.0 }
 0x473   : > { %5017 = vpow2.f32 %v1740_v36  ;;  %4576 = vmatprep.subr.mxu1 %v6148_v43  ;;  %4510 = vmatmul.mubr.msk.f32.gmra.mxu1 %vm1023_vm1, %v5006_v37  ;;  %v1767_v34 = vsel %vm1023_vm1, %v5006_v37, 0.0 }
 0x474   : > { %v1742_v33 = vmul.f32 1.442695, %v1712_v19  ;;  %1133 = vadd.xlane.f32.xlu0 %v1132_v4  ;;  %4577 = vmatpush3.msra.mxu1 %v6148_v43  ;;  %v1746_v43 = vsel %vm1023_vm1, %v6564_v27, 0.0 }
 0x475   : > { %4578 = vmatprep.subr.mxu1 %v6247_v54  ;;  %v2313_v38 = vpop.xlane.xlu1 %2312  ;;  %1750 = vadd.xlane.f32.xlu1 %v1749_v6 }
 0x476   : > { %5019 = vpow2.f32 %v1742_v33  ;;  %4579 = vmatpush3.msra.mxu1 %v6247_v54  ;;  %v2357_v52 = vsub.f32 %v6325_v20, %v2313_v38  ;;  %v1761_v20 = vsel %vm1023_vm1, %v5002_v1, 0.0  ;;  %v7263_v38 = vld [vmem:[#allocation11_spill] sm:$0xff] }
 0x477   : > { %v5008_v56 = vpop.eup %5007  ;;  %5021 = vpow2.f32 %v1744_v51  ;;  %4644 = vmatprep.subr.mxu1 %v6285_v45 }
 0x478   : > { %v5010_v62 = vpop.eup %5009  ;;  %1756 = vadd.xlane.f32.xlu0 %v1755_v35  ;;  %4512 = vmatprep.mubr.msk.f32.mxu1 %vm1023_vm1, %v5008_v56  ;;  %v2374_v31 = vmul.f32 1.442695, %v2357_v52  ;;  %v1770_v22 = vsel %vm1023_vm1, %v5008_v56, 0.0  ;;  %v7264_v52 = vld [vmem:[#allocation12_spill] sm:$0xff] }
 0x479   : > { %v2310_v28 = vpop.xlane.xlu1 %2309  ;;  %1747 = vadd.xlane.f32.xlu1 %v1746_v43  ;;  %4513 = vmatmul.mubr.msk.f32.gmra.mxu1 %vm1023_vm1, %v5010_v62  ;;  %v1773_v3 = vsel %vm1023_vm1, %v5010_v62, 0.0 }
 0x47a   : > { %v2356_v54 = vsub.f32 %v6335_v21, %v2310_v28  ;;  %v2325_v25 = vpop.xlane.xlu0 %2324 }
 0x47b   : > { %v5012_v39 = vpop.eup %5011  ;;  %v2361_v12 = vsub.f32 %v6346_v48, %v2325_v25  ;;  %v7268_v25 = vld [vmem:[#allocation19_spill] sm:$0xff] }
 0x47c   : > { %v5014_v59 = vpop.eup %5013  ;;  %v2372_v53 = vmul.f32 1.442695, %v2356_v54  ;;  %1762 = vadd.xlane.f32.xlu0 %v1761_v20  ;;  %4515 = vmatprep.mubr.msk.f32.mxu1 %vm1023_vm1, %v5012_v39  ;;  %v1776_v11 = vsel %vm1023_vm1, %v5012_v39, 0.0  ;;  %v7265_v54 = vld [vmem:[#allocation14_spill] sm:$0xff] }
 0x47d   : > { %v2319_v27 = vpop.xlane.xlu1 %2318  ;;  %1753 = vadd.xlane.f32.xlu1 %v1752_v55  ;;  %4516 = vmatmul.mubr.msk.f32.gmra.mxu1 %vm1023_vm1, %v5014_v59  ;;  %v2382_v48 = vmul.f32 1.442695, %v2361_v12  ;;  %v1779_v47 = vsel %vm1023_vm1, %v5014_v59, 0.0  ;;  %v7270_v12 = vld [vmem:[#allocation24_spill] sm:$0xff] }
 0x47e   : > { %5023 = vpow2.f32 %v2372_v53  ;;  %v2359_v21 = vsub.f32 %v6349_v9, %v2319_v27  ;;  %v7267_v53 = vld [vmem:[#allocation18_spill] sm:$0xff] }
 0x47f   : > { %v6639_v10 = vpop.eup %5015  ;;  %5025 = vpow2.f32 %v2374_v31  ;;  %v7266_v31 = vld [vmem:[#allocation21_spill] sm:$0xff] }
 0x480   : > { %v5018_v2 = vpop.eup %5017  ;;  %v2378_v17 = vmul.f32 1.442695, %v2359_v21  ;;  %1759 = vadd.xlane.f32.xlu0 %v1758_v13  ;;  %4518 = vmatprep.mubr.msk.f32.mxu1 %vm1023_vm1, %v6639_v10  ;;  %v1782_v39 = vsel %vm1023_vm1, %v6639_v10, 0.0  ;;  %v7269_v13 = vld [vmem:[#allocation13_spill] sm:$0xff] }
 0x481   : > { %v2316_v5 = vpop.xlane.xlu1 %2315  ;;  %1774 = vadd.xlane.f32.xlu1 %v1773_v3  ;;  %4519 = vmatmul.mubr.msk.f32.gmra.mxu1 %vm1023_vm1, %v5018_v2 }
 0x482   : > { %5027 = vpow2.f32 %v2378_v17  ;;  %v2358_v9 = vsub.f32 %v6363_v60, %v2316_v5  ;;  %v2337_v49 = vpop.xlane.xlu0 %2336 }
 0x483   : > { %v6649_v42 = vpop.eup %5019  ;;  %v2365_v19 = vsub.f32 %v6379_v46, %v2337_v49 }
 0x484   : > { %v6652_v50 = vpop.eup %5021  ;;  %v2376_v8 = vmul.f32 1.442695, %v2358_v9  ;;  %1768 = vadd.xlane.f32.xlu0 %v1767_v34  ;;  %4521 = vmatprep.mubr.msk.f32.mxu1 %vm1023_vm1, %v6649_v42  ;;  %v7271_v9 = vld [vmem:[#allocation25_spill] sm:$0xff] }
 0x485   : > { %v2322_v40 = vpop.xlane.xlu1 %2321  ;;  %1771 = vadd.xlane.f32.xlu1 %v1770_v22  ;;  %4522 = vmatmul.mubr.msk.f32.gmra.mxu1 %vm1023_vm1, %v6652_v50  ;;  %v1791_v5 = vsel %vm1023_vm1, %v6652_v50, 0.0  ;;  %v1788_v50 = vsel %vm1023_vm1, %v6649_v42, 0.0 }
 0x486   : > { %5029 = vpow2.f32 %v2376_v8  ;;  %v2360_v60 = vsub.f32 %v6382_v16, %v2322_v40 }
 0x487   : > { %5031 = vpow2.f32 %v2382_v48 }
 0x488   : > { %v2380_v1 = vmul.f32 1.442695, %v2360_v60  ;;  %1765 = vadd.xlane.f32.xlu0 %v1764_v58  ;;  %v2340_v30 = vpop.xlane.xlu0 %2339 }
 0x489   : > { %v2331_v36 = vpop.xlane.xlu1 %2330  ;;  %1780 = vadd.xlane.f32.xlu1 %v1779_v47  ;;  %v2366_v51 = vsub.f32 %v6409_v44, %v2340_v30 }
 0x48a   : > { %5033 = vpow2.f32 %v2380_v1  ;;  %v2363_v23 = vsub.f32 %v6401_v32, %v2331_v36  ;;  %v7272_v1 = vld [vmem:[#allocation27_spill] sm:$0xff]  ;;  %v7273_v36 = vld [vmem:[#allocation28_spill] sm:$0xff] }
 0x48b   : > { %v6664_v29 = vpop.eup %5023  ;;  %v2392_v35 = vmul.f32 1.442695, %v2366_v51 }
 0x48c   : > { %v6666_v0 = vpop.eup %5025  ;;  %v2386_v41 = vmul.f32 1.442695, %v2363_v23  ;;  %v6668_v16 = vpop.xlane.xlu0 %2348  ;;  %4580 = vmatprep.mubr.msk.f32.mxu1 %vm1023_vm1, %v6664_v29 }
 0x48d   : > { %v2328_v14 = vpop.xlane.xlu1 %2327  ;;  %1777 = vadd.xlane.f32.xlu1 %v1776_v11  ;;  %4581 = vmatmul.mubr.msk.f32.vlgmr.msra.gmra.mxu1 %vm1023_vm1, %v6666_v0  ;;  %v2369_v55 = vsub.f32 %v7267_v53, %v6668_v16  ;;  %v2407_v42 = vsel %vm1023_vm1, %v6666_v0, 0.0 }
 0x48e   : > { %v2362_v37 = vsub.f32 %v6423_v26, %v2328_v14  ;;  %4645 = vmatpush3.msra.mxu1 %v6285_v45  ;;  %5035 = vpow2.f32 %v2386_v41  ;;  %v1785_v45 = vsel %vm1023_vm1, %v5018_v2, 0.0  ;;  %v2390_v26 = vmul.f32 1.442695, %v2365_v19 }
 0x48f   : > { %v5028_v32 = vpop.eup %5027  ;;  %4646 = vmatprep.subr.mxu1 %v6251_v57  ;;  %v2398_v48 = vmul.f32 1.442695, %v2369_v55 }
 0x490   : > { %v2384_v4 = vmul.f32 1.442695, %v2362_v37  ;;  %v2352_v33 = vpop.xlane.xlu0 %2351  ;;  %4647 = vmatpush3.msra.mxu1 %v6251_v57  ;;  %v2413_v6 = vsel %vm1023_vm1, %v5028_v32, 0.0 }
 0x491   : > { %4648 = vmatprep.subr.mxu1 %v7263_v38  ;;  %v2334_v56 = vpop.xlane.xlu1 %2333  ;;  %2414 = vadd.xlane.f32.xlu0 %v2413_v6  ;;  %v2370_v27 = vsub.f32 %v7268_v25, %v2352_v33 }
 0x492   : > { %5037 = vpow2.f32 %v2384_v4  ;;  %v2364_v46 = vsub.f32 %v6437_v61, %v2334_v56  ;;  %1786 = vadd.xlane.f32.xlu1 %v1785_v45  ;;  %4649 = vmatpush3.msra.mxu1 %v7263_v38  ;;  %v7275_v4 = vld [vmem:[#allocation30_spill] sm:$0xff] }
 0x493   : > { %v5030_v44 = vpop.eup %5029  ;;  %4650 = vmatprep.subr.mxu1 %v7264_v52  ;;  %v2400_v49 = vmul.f32 1.442695, %v2370_v27 }
 0x494   : > { %v2388_v57 = vmul.f32 1.442695, %v2364_v46  ;;  %v6687_v62 = vpop.xlane.xlu0 %2962  ;;  %4651 = vmatpush3.msra.mxu1 %v7264_v52  ;;  %4583 = vmatprep.mubr.msk.f32.mxu1 %vm1023_vm1, %v5030_v44  ;;  %v2410_v43 = vsel %vm1023_vm1, %v5030_v44, 0.0  ;;  %v5032_v28 = vpop.eup %5031  ;;  %v7276_v52 = vld [vmem:[#allocation31_spill] sm:$0xff] }
 0x495   : > { %4652 = vmatprep.subr.mxu1 %v7265_v54  ;;  %v2343_v61 = vpop.xlane.xlu1 %2342  ;;  %2411 = vadd.xlane.f32.xlu0 %v2410_v43  ;;  %v2419_v2 = vsel %vm1023_vm1, %v5032_v28, 0.0 }
 0x496   : > { %5039 = vpow2.f32 %v2388_v57  ;;  %v2367_v20 = vsub.f32 %v7266_v31, %v2343_v61  ;;  %1783 = vadd.xlane.f32.xlu1 %v1782_v39  ;;  %4584 = vmatmul.mubr.msk.f32.gmra.mxu1 %vm1023_vm1, %v5028_v32  ;;  %v7274_v32 = vld [vmem:[#allocation29_spill] sm:$0xff]  ;;  %v2404_v57 = vsel %vm1023_vm1, %v6664_v29, 0.0 }
 0x497   : > { %v5034_v59 = vpop.eup %5033  ;;  %5041 = vpow2.f32 %v2390_v26  ;;  %4653 = vmatpush3.msra.mxu1 %v7265_v54  ;;  %v7277_v54 = vld [vmem:[#allocation20_spill] sm:$0xff] }
 0x498   : > { %5043 = vpow2.f32 %v2392_v35  ;;  %v2394_v21 = vmul.f32 1.442695, %v2367_v20  ;;  %4654 = vmatprep.subr.mxu1 %v7269_v13  ;;  %v2969_v10 = vpop.xlane.xlu0 %2968  ;;  %4586 = vmatprep.mubr.msk.f32.mxu1 %vm1023_vm1, %v5034_v59  ;;  %v2416_v60 = vsel %vm1023_vm1, %v5034_v59, 0.0  ;;  %v3007_v61 = vsub.f32 %v7277_v54, %v6687_v62 }
 0x499   : > { %v3009_v17 = vsub.f32 %v7270_v12, %v2969_v10  ;;  %4655 = vmatpush3.msra.mxu1 %v7269_v13  ;;  %v2346_v3 = vpop.xlane.xlu1 %2345  ;;  %2420 = vadd.xlane.f32.xlu0 %v2419_v2 }
 0x49a   : > { %5045 = vpow2.f32 %v2394_v21  ;;  %v2368_v34 = vsub.f32 %v7271_v9, %v2346_v3  ;;  %1792 = vadd.xlane.f32.xlu1 %v1791_v5  ;;  %4587 = vmatmul.mubr.msk.f32.gmra.mxu1 %vm1023_vm1, %v5032_v28  ;;  %v3024_v27 = vmul.f32 1.442695, %v3007_v61 }
 0x49b   : > { %v3028_v8 = vmul.f32 1.442695, %v3009_v17  ;;  %v5036_v58 = vpop.eup %5035 }
 0x49c   : > { %v2396_v22 = vmul.f32 1.442695, %v2368_v34  ;;  %v2966_v40 = vpop.xlane.xlu0 %2965  ;;  %v2425_v37 = vsel %vm1023_vm1, %v5036_v58, 0.0 }
 0x49d   : > { %5047 = vpow2.f32 %v3028_v8  ;;  %v3008_v30 = vsub.f32 %v7272_v1, %v2966_v40  ;;  %v2355_v47 = vpop.xlane.xlu1 %2354  ;;  %2417 = vadd.xlane.f32.xlu0 %v2416_v60 }
 0x49e   : > { %5049 = vpow2.f32 %v2396_v22  ;;  %v2371_v23 = vsub.f32 %v7273_v36, %v2355_v47  ;;  %1789 = vadd.xlane.f32.xlu1 %v1788_v50 }
 0x49f   : > { %v5038_v41 = vpop.eup %5037  ;;  %5051 = vpow2.f32 %v2398_v48  ;;  %v3026_v16 = vmul.f32 1.442695, %v3008_v30 }
 0x4a0   : > { %5053 = vpow2.f32 %v2400_v49  ;;  %v2402_v11 = vmul.f32 1.442695, %v2371_v23  ;;  %v2975_v14 = vpop.xlane.xlu0 %2974  ;;  %4589 = vmatprep.mubr.msk.f32.mxu1 %vm1023_vm1, %v5038_v41  ;;  %v2422_v44 = vsel %vm1023_vm1, %v5038_v41, 0.0 }
 0x4a1   : > { %5055 = vpow2.f32 %v3026_v16  ;;  %v3011_v19 = vsub.f32 %v7274_v32, %v2975_v14  ;;  %v2960_v51 = vpop.xlane.xlu1 %2959  ;;  %2426 = vadd.xlane.f32.xlu0 %v2425_v37  ;;  %4590 = vmatmul.mubr.msk.f32.gmra.mxu1 %vm1023_vm1, %v5036_v58  ;;  %v7279_v32 = vld [vmem:[#allocation16_spill] sm:$0xff] }
 0x4a2   : > { %5057 = vpow2.f32 %v2402_v11  ;;  %v3006_v33 = vsub.f32 %v7275_v4, %v2960_v51  ;;  %2408 = vadd.xlane.f32.xlu1 %v2407_v42  ;;  %v7278_v11 = vld [vmem:[#allocation15_spill] sm:$0xff]  ;;  %v7280_v42 = vld [vmem:[#allocation17_spill] sm:$0xff] }
 0x4a3   : > { %v5040_v6 = vpop.eup %5039  ;;  %v3032_v38 = vmul.f32 1.442695, %v3011_v19  ;;  %v1135_v14 = vsel %vm1023_vm1, %v7278_v11, 0.0  ;;  %v1138_v19 = vsel %vm1023_vm1, %v7279_v32, 0.0  ;;  %v1141_v4 = vsel %vm1023_vm1, %v7280_v42, 0.0 }
 0x4a4   : > { %v5042_v56 = vpop.eup %5041  ;;  %v3022_v45 = vmul.f32 1.442695, %v3006_v33  ;;  %v2972_v46 = vpop.xlane.xlu0 %2971  ;;  %4592 = vmatprep.mubr.msk.f32.mxu1 %vm1023_vm1, %v5040_v6  ;;  %v2428_v31 = vsel %vm1023_vm1, %v5040_v6, 0.0  ;;  %v7281_v33 = vld [vmem:[#allocation22_spill] sm:$0xff] }
 0x4a5   : > { %v5044_v26 = vpop.eup %5043  ;;  %5059 = vpow2.f32 %v3032_v38  ;;  %v3010_v0 = vsub.f32 %v7276_v52, %v2972_v46  ;;  %v3105_v35 = vpop.permute.xlu1 %3104  ;;  %2423 = vadd.xlane.f32.xlu0 %v2422_v44  ;;  %4593 = vmatmul.mubr.msk.f32.gmra.mxu1 %vm1023_vm1, %v5042_v56  ;;  %v2431_v20 = vsel %vm1023_vm1, %v5042_v56, 0.0  ;;  %v1159_v6 = vsel %vm1023_vm1, %v7281_v33, 0.0  ;;  %v7283_v44 = vld [vmem:[#allocation32_spill] sm:$0xff] }
 0x4a6   : > { %5061 = vpow2.f32 %v3022_v45  ;;  %2405 = vadd.xlane.f32.xlu1 %v2404_v57  ;;  %4595 = vmatprep.mubr.msk.f32.mxu1 %vm1023_vm1, %v5044_v26  ;;  %v2434_v9 = vsel %vm1023_vm1, %v5044_v26, 0.0  ;;  %v7282_v45 = vld [vmem:[#allocation35_spill] sm:$0xff]  ;;  %v7284_v57 = vld [vmem:[#allocation36_spill] sm:$0xff] }
 0x4a7   : > { %v5046_v43 = vpop.eup %5045  ;;  %v3030_v28 = vmul.f32 1.442695, %v3010_v0  ;;  %4656 = vmatprep.subr.mxu1 %v3105_v35 }
 0x4a8   : > { %v2981_v39 = vpop.xlane.xlu0 %2980  ;;  %4657 = vmatpush3.msra.mxu1 %v3105_v35  ;;  %v2437_v10 = vsel %vm1023_vm1, %v5046_v43, 0.0 }
 0x4a9   : > { %5063 = vpow2.f32 %v3030_v28  ;;  %v3013_v29 = vsub.f32 %v6503_v24, %v2981_v39  ;;  %2429 = vadd.xlane.f32.xlu0 %v2428_v31  ;;  %4596 = vmatmul.mubr.msk.f32.gmra.mxu1 %vm1023_vm1, %v5046_v43 }
 0x4aa   : > { %v5048_v59 = vpop.eup %5047  ;;  %2432 = vadd.xlane.f32.xlu1 %v2431_v20 }
 0x4ab   : > { %v5050_v53 = vpop.eup %5049  ;;  %v3036_v55 = vmul.f32 1.442695, %v3013_v29  ;;  %v3063_v62 = vsel %vm1023_vm1, %v5048_v59, 0.0  ;;  %v7285_v29 = vld [vmem:[#allocation33_spill] sm:$0xff] }
 0x4ac   : > { %v5052_v25 = vpop.eup %5051  ;;  %v2978_v21 = vpop.xlane.xlu0 %2977  ;;  %4598 = vmatprep.mubr.msk.f32.mxu1 %vm1023_vm1, %v5050_v53  ;;  %v2440_v58 = vsel %vm1023_vm1, %v5050_v53, 0.0 }
 0x4ad   : > { %v5054_v13 = vpop.eup %5053  ;;  %5065 = vpow2.f32 %v3036_v55  ;;  %v3012_v24 = vsub.f32 %v6507_v7, %v2978_v21  ;;  %3064 = vadd.xlane.f32.xlu0 %v3063_v62  ;;  %4599 = vmatmul.mubr.msk.f32.gmra.mxu1 %vm1023_vm1, %v5052_v25  ;;  %v2443_v49 = vsel %vm1023_vm1, %v5052_v25, 0.0  ;;  %v6776_v38 = vpop.f32.mrf.mxu1  ;;  %v7286_v21 = vld [vmem:[#allocation34_spill] sm:$0xff] }
 0x4ae   : > { %v5056_v2 = vpop.eup %5055  ;;  %2438 = vadd.xlane.f32.xlu1 %v2437_v10  ;;  %4601 = vmatprep.mubr.msk.f32.mxu1 %vm1023_vm1, %v5054_v13  ;;  %5067 = vpow2.f32 %v3024_v27  ;;  %v2446_v16 = vsel %vm1023_vm1, %v5054_v13, 0.0 }
 0x4af   : > { %v5058_v12 = vpop.eup %5057  ;;  %v3034_v17 = vmul.f32 1.442695, %v3012_v24  ;;  %v3060_v5 = vsel %vm1023_vm1, %v5056_v2, 0.0  ;;  %v6781_v0 = vpop.f32.mrf.mxu1 }
 0x4b0   : > { %v6741_v3 = vpop.xlane.xlu0 %2992  ;;  %v2449_v36 = vsel %vm1023_vm1, %v5058_v12, 0.0 }
 0x4b1   : > { %5069 = vpow2.f32 %v3034_v17  ;;  %3061 = vadd.xlane.f32.xlu0 %v3060_v5  ;;  %4602 = vmatmul.mubr.msk.f32.gmra.mxu1 %vm1023_vm1, %v5058_v12  ;;  %v3017_v26 = vsub.f32 %v7283_v44, %v6741_v3 }
 0x4b2   : > { %v5060_v7 = vpop.eup %5059  ;;  %2435 = vadd.xlane.f32.xlu1 %v2434_v9 }
 0x4b3   : > { %v5062_v34 = vpop.eup %5061  ;;  %v3069_v8 = vsel %vm1023_vm1, %v5060_v7, 0.0  ;;  %v3044_v54 = vmul.f32 1.442695, %v3017_v26 }
 0x4b4   : > { %v6746_v48 = vpop.xlane.xlu0 %2998  ;;  %4660 = vmatprep.mubr.msk.f32.mxu1 %vm1023_vm1, %v5062_v34  ;;  %v3054_v51 = vsel %vm1023_vm1, %v5062_v34, 0.0 }
 0x4b5   : > { %3070 = vadd.xlane.f32.xlu0 %v3069_v8  ;;  %v6784_v28 = vpop.f32.mrf.mxu1  ;;  %v3019_v20 = vsub.f32 %v7285_v29, %v6746_v48 }
 0x4b6   : > { %v5064_v22 = vpop.eup %5063  ;;  %2444 = vadd.xlane.f32.xlu1 %v2443_v49 }
 0x4b7   : > { %v3066_v60 = vsel %vm1023_vm1, %v5064_v22, 0.0  ;;  %v3048_v27 = vmul.f32 1.442695, %v3019_v20 }
 0x4b8   : > { %v6751_v40 = vpop.xlane.xlu0 %3004 }
 0x4b9   : > { %3067 = vadd.xlane.f32.xlu0 %v3066_v60  ;;  %v3021_v62 = vsub.f32 %v7286_v21, %v6751_v40 }
 0x4ba   : > { %v5066_v1 = vpop.eup %5065  ;;  %2441 = vadd.xlane.f32.xlu1 %v2440_v58 }
 0x4bb   : > { %v3075_v47 = vsel %vm1023_vm1, %v5066_v1, 0.0  ;;  %v5068_v50 = vpop.eup %5067  ;;  %v3052_v12 = vmul.f32 1.442695, %v3021_v62 }
 0x4bc   : > { %v3103_v30 = vpop.permute.xlu0 %3102  ;;  %v3057_v37 = vsel %vm1023_vm1, %v5068_v50, 0.0 }
 0x4bd   : > { %4658 = vmatprep.subr.mxu1 %v3103_v30  ;;  %3076 = vadd.xlane.f32.xlu0 %v3075_v47 }
 0x4be   : > { %v5070_v23 = vpop.eup %5069  ;;  %2450 = vadd.xlane.f32.xlu1 %v2449_v36  ;;  %4659 = vmatpush3.msra.mxu1 %v3103_v30 }
 0x4bf   : > { %4661 = vmatmul.mubr.msk.f32.vlgmr.msra.gmra.mxu1 %vm1023_vm1, %v5068_v50  ;;  %v3072_v41 = vsel %vm1023_vm1, %v5070_v23, 0.0 }
 0x4c0   : > { %4663 = vmatprep.mubr.msk.f32.mxu1 %vm1023_vm1, %v5056_v2 }
 0x4c1   : > { %3073 = vadd.xlane.f32.xlu0 %v3072_v41 }
 0x4c2   : > { %2447 = vadd.xlane.f32.xlu1 %v2446_v16 }
 0x4c3   : > { %4664 = vmatmul.mubr.msk.f32.gmra.mxu1 %vm1023_vm1, %v5048_v59  ;;  %v6789_v59 = vpop.f32.mrf.mxu1 }
 0x4c4   : > { %4666 = vmatprep.mubr.msk.f32.mxu1 %vm1023_vm1, %v5064_v22 }
 0x4c5   : > { %1136 = vadd.xlane.f32.xlu0 %v1135_v14  ;;  %v6794_v13 = vpop.f32.mrf.mxu1 }
 0x4c6   : > { %3058 = vadd.xlane.f32.xlu1 %v3057_v37 }
 0x4c7   : > { %4667 = vmatmul.mubr.msk.f32.gmra.mxu1 %vm1023_vm1, %v5060_v7  ;;  %v6797_v17 = vpop.f32.mrf.mxu1 }
 0x4c8   : > { %4669 = vmatprep.mubr.msk.f32.mxu1 %vm1023_vm1, %v5070_v23 }
 0x4c9   : > { %1139 = vadd.xlane.f32.xlu0 %v1138_v19  ;;  %v6802_v7 = vpop.f32.mrf.mxu1 }
 0x4ca   : > { %3055 = vadd.xlane.f32.xlu1 %v3054_v51 }
 0x4cb   : > { %4670 = vmatmul.mubr.msk.f32.gmra.mxu1 %vm1023_vm1, %v5066_v1  ;;  %v6807_v49 = vpop.f32.mrf.mxu1 }
 0x4cd   : > { %1142 = vadd.xlane.f32.xlu0 %v1141_v4  ;;  %v4434_v58 = vpop.f32.mrf.mxu1 }
 0x4ce   : > { %1160 = vadd.xlane.f32.xlu1 %v1159_v6 }
 0x4cf   : > { %v6815_v36 = vpop.f32.mrf.mxu1 }
 0x4d1   : > { %v4437_v37 = vpop.f32.mrf.mxu1 }
 0x4d3   : > { %v1332_v33 = vpop.f32.mrf.mxu1 }
 0x4d5   : > { %v6830_v44 = vpop.f32.mrf.mxu1 }
 0x4d6   : > { %v2987_v56 = vpop.xlane.xlu1 %2986 }
 0x4d7   : > { %v3015_v46 = vsub.f32 %v7282_v45, %v2987_v56 }
 0x4d9   : > { %v3040_v52 = vmul.f32 1.442695, %v3015_v46 }
 0x4da   : > { %v2984_v35 = vpop.xlane.xlu1 %2983 }
 0x4db   : > { %5071 = vpow2.f32 %v3040_v52  ;;  %v3014_v43 = vsub.f32 %v7284_v57, %v2984_v35 }
 0x4dd   : > { %v3038_v61 = vmul.f32 1.442695, %v3014_v43 }
 0x4de   : > { %v2990_v39 = vpop.xlane.xlu1 %2989 }
 0x4df   : > { %5073 = vpow2.f32 %v3038_v61  ;;  %v3016_v31 = vsub.f32 %v6535_v18, %v2990_v39  ;;  %v7287_v61 = vld [vmem:[#allocation23_spill] sm:$0xff] }
 0x4e0   : > { %5075 = vpow2.f32 %v3044_v54  ;;  %v1342_v54 = vpop.f32.mrf.mxu1  ;;  %v1162_v39 = vsel %vm1023_vm1, %v7287_v61, 0.0 }
 0x4e1   : > { %v3042_v53 = vmul.f32 1.442695, %v3016_v31 }
 0x4e2   : > { %v2996_v55 = vpop.xlane.xlu1 %2995 }
 0x4e3   : > { %5077 = vpow2.f32 %v3042_v53  ;;  %v3018_v25 = vsub.f32 %v6540_v15, %v2996_v55  ;;  %v7288_v53 = vld [vmem:[#allocation26_spill] sm:$0xff] }
 0x4e4   : > { %v1165_v55 = vsel %vm1023_vm1, %v7288_v53, 0.0 }
 0x4e5   : > { %v3046_v24 = vmul.f32 1.442695, %v3018_v25 }
 0x4e6   : > { %v3002_v10 = vpop.xlane.xlu1 %3001 }
 0x4e7   : > { %5079 = vpow2.f32 %v3046_v24  ;;  %v3020_v18 = vsub.f32 %v6546_v63, %v3002_v10 }
 0x4e8   : > { %v5072_v2 = vpop.eup %5071  ;;  %5081 = vpow2.f32 %v3048_v27 }
 0x4e9   : > { %v3050_v3 = vmul.f32 1.442695, %v3020_v18  ;;  %v3081_v5 = vsel %vm1023_vm1, %v5072_v2, 0.0 }
 0x4ea   : > { %v6800_v15 = vpop.xlane.xlu1 %1145  ;;  %3082 = vadd.xlane.f32.xlu1 %v3081_v5 }
 0x4eb   : > { %5083 = vpow2.f32 %v3050_v3 }
 0x4ec   : > { %v5074_v9 = vpop.eup %5073  ;;  %5085 = vpow2.f32 %v3052_v12 }
 0x4ed   : > { %4672 = vmatprep.mubr.msk.f32.mxu1 %vm1023_vm1, %v5074_v9  ;;  %v3078_v63 = vsel %vm1023_vm1, %v5074_v9, 0.0  ;;  %v5076_v34 = vpop.eup %5075  ;;  %v6817_v23 = vpop.xlane.xlu0 %1121 }
 0x4ee   : > { %v1149_v48 = vpop.xlane.xlu1 %1148  ;;  %3079 = vadd.xlane.f32.xlu1 %v3078_v63  ;;  %4673 = vmatmul.mubr.msk.f32.gmra.mxu1 %vm1023_vm1, %v5072_v2  ;;  %v3087_v22 = vsel %vm1023_vm1, %v5076_v34, 0.0  ;;  %v6847_v2 = vpop.f32.mrf.mxu1 }
 0x4ef   : > { %5087 = vrcp.f32 %v1149_v48 }
 0x4f0   : > { %v5078_v8 = vpop.eup %5077  ;;  %v6849_v5 = vpop.f32.mrf.mxu1 }
 0x4f1   : > { %4675 = vmatprep.mubr.msk.f32.mxu1 %vm1023_vm1, %v5078_v8  ;;  %v3084_v30 = vsel %vm1023_vm1, %v5078_v8, 0.0  ;;  %v6825_v51 = vpop.xlane.xlu0 %1124 }
 0x4f2   : > { %v1152_v40 = vpop.xlane.xlu1 %1151  ;;  %3088 = vadd.xlane.f32.xlu1 %v3087_v22  ;;  %4676 = vmatmul.mubr.msk.f32.gmra.mxu1 %vm1023_vm1, %v5076_v34 }
 0x4f3   : > { %5089 = vrcp.f32 %v1152_v40 }
 0x4f4   : > { %v5080_v60 = vpop.eup %5079 }
 0x4f5   : > { %v5082_v1 = vpop.eup %5081  ;;  %4678 = vmatprep.mubr.msk.f32.mxu1 %vm1023_vm1, %v5080_v60  ;;  %v3090_v32 = vsel %vm1023_vm1, %v5080_v60, 0.0  ;;  %v6832_v26 = vpop.xlane.xlu0 %1127 }
 0x4f6   : > { %v1155_v47 = vpop.xlane.xlu1 %1154  ;;  %3085 = vadd.xlane.f32.xlu1 %v3084_v30  ;;  %4679 = vmatmul.mubr.msk.f32.gmra.mxu1 %vm1023_vm1, %v5082_v1  ;;  %v3093_v16 = vsel %vm1023_vm1, %v5082_v1, 0.0 }
 0x4f7   : > { %5091 = vrcp.f32 %v1155_v47 }
 0x4f8   : > { %v5084_v50 = vpop.eup %5083 }
 0x4f9   : > { %v5086_v41 = vpop.eup %5085  ;;  %4681 = vmatprep.mubr.msk.f32.mxu1 %vm1023_vm1, %v5084_v50  ;;  %v3096_v52 = vsel %vm1023_vm1, %v5084_v50, 0.0  ;;  %v6841_v29 = vpop.xlane.xlu0 %1130 }
 0x4fa   : > { %v1158_v11 = vpop.xlane.xlu1 %1157  ;;  %3094 = vadd.xlane.f32.xlu1 %v3093_v16  ;;  %4682 = vmatmul.mubr.msk.f32.gmra.mxu1 %vm1023_vm1, %v5086_v41  ;;  %v3099_v6 = vsel %vm1023_vm1, %v5086_v41, 0.0 }
 0x4fb   : > { %5093 = vrcp.f32 %v1158_v11 }
 0x4fc   : > { %v5088_v14 = vpop.eup %5087 }
 0x4fd   : > { %v6823_v19 = vmul.f32 %v5088_v14, %v4434_v58  ;;  %v6845_v27 = vpop.xlane.xlu0 %1133 }
 0x4fe   : > { %v1751_v42 = vpop.xlane.xlu1 %1750  ;;  %3091 = vadd.xlane.f32.xlu1 %v3090_v32 }
 0x4ff   : > { %5095 = vrcp.f32 %v1751_v42 }
 0x500   : > { %v5090_v4 = vpop.eup %5089 }
 0x501   : > { %v6828_v56 = vmul.f32 %v5090_v4, %v1332_v33  ;;  %v1757_v62 = vpop.xlane.xlu0 %1756 }
 0x502   : > { %v1748_v45 = vpop.xlane.xlu1 %1747  ;;  %3100 = vadd.xlane.f32.xlu1 %v3099_v6 }
 0x504   : > { %v5092_v46 = vpop.eup %5091 }
 0x505   : > { %v6835_v35 = vmul.f32 %v5092_v46, %v4437_v37  ;;  %v1763_v18 = vpop.xlane.xlu0 %1762 }
 0x506   : > { %v1754_v57 = vpop.xlane.xlu1 %1753  ;;  %3097 = vadd.xlane.f32.xlu1 %v3096_v52 }
 0x508   : > { %v5094_v43 = vpop.eup %5093 }
 0x509   : > { %v6839_v31 = vmul.f32 %v5094_v43, %v1342_v54  ;;  %v1760_v3 = vpop.xlane.xlu0 %1759 }
 0x50a   : > { %v1775_v20 = vpop.xlane.xlu1 %1774  ;;  %1163 = vadd.xlane.f32.xlu1 %v1162_v39 }
 0x50b   : > { %5097 = vrcp.f32 %v1775_v20 }
 0x50c   : > { %5099 = vrcp.f32 %v1748_v45  ;;  %v5096_v16 = vpop.eup %5095 }
 0x50d   : > { %v1769_v34 = vpop.xlane.xlu0 %1768 }
 0x50e   : > { %v1772_v25 = vpop.xlane.xlu1 %1771  ;;  %1166 = vadd.xlane.f32.xlu1 %v1165_v55 }
 0x50f   : > { %5101 = vrcp.f32 %v1772_v25 }
 0x510   : > { %5103 = vrcp.f32 %v1757_v62 }
 0x511   : > { %v1766_v60 = vpop.xlane.xlu0 %1765 }
 0x512   : > { %v1781_v21 = vpop.xlane.xlu1 %1780 }
 0x513   : > { %5105 = vrcp.f32 %v1781_v21 }
 0x514   : > { %5107 = vrcp.f32 %v1754_v57 }
 0x516   : > { %v1778_v24 = vpop.xlane.xlu1 %1777 }
 0x517   : > { %5109 = vrcp.f32 %v1778_v24 }
 0x518   : > { %5111 = vrcp.f32 %v1763_v18  ;;  %v5098_v14 = vpop.eup %5097 }
 0x519   : > { %v5100_v42 = vpop.eup %5099 }
 0x51a   : > { %v6851_v30 = vpop.xlane.xlu0 %2414 }
 0x51b   : > { %v1787_v10 = vpop.xlane.xlu1 %1786 }
 0x51c   : > { %5113 = vrcp.f32 %v1787_v10  ;;  %v5102_v6 = vpop.eup %5101 }
 0x51d   : > { %5115 = vrcp.f32 %v1760_v3  ;;  %v5104_v46 = vpop.eup %5103 }
 0x51e   : > { %v6855_v11 = vpop.xlane.xlu0 %2411 }
 0x51f   : > { %v1784_v12 = vpop.xlane.xlu1 %1783 }
 0x520   : > { %5117 = vrcp.f32 %v1784_v12  ;;  %v5106_v54 = vpop.eup %5105 }
 0x521   : > { %5119 = vrcp.f32 %v1769_v34  ;;  %v5108_v39 = vpop.eup %5107 }
 0x522   : > { %v6859_v20 = vpop.xlane.xlu0 %2420 }
 0x523   : > { %v1793_v9 = vpop.xlane.xlu1 %1792 }
 0x524   : > { %5121 = vrcp.f32 %v1793_v9  ;;  %v5110_v25 = vpop.eup %5109 }
 0x525   : > { %5123 = vrcp.f32 %v1766_v60  ;;  %v5112_v24 = vpop.eup %5111 }
 0x527   : > { %v4502_v63 = vpop.f32.mrf.mxu1  ;;  %v1790_v22 = vpop.xlane.xlu1 %1789 }
 0x528   : > { %5125 = vrcp.f32 %v1790_v22  ;;  %v2036_v4 = vmul.f32 %v5096_v16, %v4502_v63 }
 0x529   : > { %v1940_v48 = vpop.f32.mrf.mxu1  ;;  %v5114_v3 = vpop.eup %5113 }
 0x52a   : > { %v2035_v52 = vmul.f32 %v5100_v42, %v1940_v48  ;;  %v5116_v63 = vpop.eup %5115 }
 0x52b   : > { %v4505_v8 = vpop.f32.mrf.mxu1  ;;  %v6853_v47 = vpop.xlane.xlu1 %2408 }
 0x52c   : > { %v2038_v10 = vmul.f32 %v5104_v46, %v4505_v8  ;;  %5127 = vrcp.f32 %v6853_v47 }
 0x52d   : > { %v1950_v40 = vpop.f32.mrf.mxu1  ;;  %v5118_v60 = vpop.eup %5117 }
 0x52e   : > { %v2037_v18 = vmul.f32 %v5108_v39, %v1950_v40 }
 0x52f   : > { %v4508_v58 = vpop.f32.mrf.mxu1  ;;  %v6857_v37 = vpop.xlane.xlu1 %2405 }
 0x530   : > { %v2040_v42 = vmul.f32 %v5112_v24, %v4508_v58 }
 0x531   : > { %v1960_v1 = vpop.f32.mrf.mxu1 }
 0x533   : > { %v4511_v50 = vpop.f32.mrf.mxu1  ;;  %v2433_v21 = vpop.xlane.xlu1 %2432 }
 0x534   : > { %5129 = vrcp.f32 %v2433_v21 }
 0x535   : > { %v1970_v41 = vpop.f32.mrf.mxu1  ;;  %5131 = vrcp.f32 %v6857_v37 }
 0x537   : > { %v2439_v40 = vpop.xlane.xlu1 %2438 }
 0x539   : > { %v4514_v32 = vpop.f32.mrf.mxu1 }
 0x53a   : > { %v2044_v33 = vmul.f32 %v5098_v14, %v4514_v32  ;;  %v5120_v14 = vpop.eup %5119  ;;  %v2418_v32 = vpop.xlane.xlu0 %2417 }
 0x53b   : > { %v1980_v45 = vpop.f32.mrf.mxu1  ;;  %v5122_v8 = vpop.eup %5121 }
 0x53c   : > { %v4839_v57 = vpack.i.bf16 %v2044_v33, %v2036_v4  ;;  %v2043_v43 = vmul.f32 %v5102_v6, %v1980_v45  ;;  %v2039_v4 = vmul.f32 %v5116_v63, %v1960_v1  ;;  %v5124_v45 = vpop.eup %5123 }
 0x53d   : > { %v4517_v61 = vpop.f32.mrf.mxu1  ;;  %v2041_v39 = vmul.f32 %v5124_v45, %v1970_v41 }
 0x53e   : > { %v4844_v53 = vpack.i.bf16 %v2043_v43, %v2035_v52  ;;  %v2046_v55 = vmul.f32 %v5106_v54, %v4517_v61  ;;  %4840 = vrot.lane.b32.xlu1 %v4839_v57, %s5348_s15  ;;  %v5126_v43 = vpop.eup %5125  ;;  %v2042_v61 = vmul.f32 %v5120_v14, %v4511_v50 }
 0x53f   : > { %v1990_v62 = vpop.f32.mrf.mxu1 }
 0x540   : > { %v2045_v12 = vmul.f32 %v5110_v25, %v1990_v62  ;;  %4845 = vrot.lane.b32.xlu0 %v4844_v53, %s5348_s15  ;;  %v4849_v34 = vpack.i.bf16 %v2046_v55, %v2038_v10  ;;  %v2427_v55 = vpop.xlane.xlu0 %2426  ;;  %v2436_v25 = vpop.xlane.xlu1 %2435 }
 0x541   : > { %v4520_v9 = vpop.f32.mrf.mxu1 }
 0x542   : > { %v4854_v48 = vpack.i.bf16 %v2045_v12, %v2037_v18  ;;  %v2048_v22 = vmul.f32 %v5114_v3, %v4520_v9 }
 0x543   : > { %v2000_v16 = vpop.f32.mrf.mxu1 }
 0x544   : > { %v2047_v33 = vmul.f32 %v5118_v60, %v2000_v16  ;;  %4850 = vrot.lane.b32.xlu0 %v4849_v34, %s5348_s15  ;;  %4855 = vrot.lane.b32.xlu1 %v4854_v48, %s5348_s15  ;;  %v4859_v46 = vpack.i.bf16 %v2048_v22, %v2040_v42  ;;  %v2424_v24 = vpop.xlane.xlu0 %2423  ;;  %v2445_v10 = vpop.xlane.xlu1 %2444 }
 0x545   : > { %v4523_v6 = vpop.f32.mrf.mxu1  ;;  %v5128_v48 = vpop.eup %5127 }
 0x546   : > { %v4864_v52 = vpack.i.bf16 %v2047_v33, %v2039_v4  ;;  %v2050_v57 = vmul.f32 %v5122_v8, %v4523_v6 }
 0x547   : > { %v2010_v54 = vpop.f32.mrf.mxu1 }
 0x548   : > { %v2049_v53 = vmul.f32 %v5126_v43, %v2010_v54  ;;  %4860 = vrot.lane.b32.xlu0 %v4859_v46, %s5348_s15  ;;  %4865 = vrot.lane.b32.xlu1 %v4864_v52, %s5348_s15  ;;  %v4869_v58 = vpack.i.bf16 %v2050_v57, %v2042_v61  ;;  %v2430_v50 = vpop.xlane.xlu0 %2429  ;;  %v2442_v41 = vpop.xlane.xlu1 %2441  ;;  %v3607_v54 = vld [vmem:[%s7193_s3 + $0x78] sm:$0xff] }
 0x549   : > { %5133 = vrcp.f32 %v2430_v50  ;;  %4684 = vmatprep.subr.mxu0 %v3607_v54  ;;  %4740 = vmatprep.subr.mxu1 %v3607_v54 }
 0x54a   : > { %v4874_v1 = vpack.i.bf16 %v2049_v53, %v2041_v39  ;;  %5135 = vrcp.f32 %v6851_v30  ;;  %v5130_v30 = vpop.eup %5129  ;;  %4685 = vmatpush3.msra.mxu0 %v3607_v54  ;;  %4756 = vmatpush3.msra.mxu1 %v3607_v54  ;;  %v3596_v54 = vld [vmem:[%s7193_s3 + $0x20] sm:$0xff] }
 0x54b   : > { %5137 = vrcp.f32 %v2439_v40 }
 0x54c   : > { %4870 = vrot.lane.b32.xlu0 %v4869_v58, %s5348_s15  ;;  %4875 = vrot.lane.b32.xlu1 %v4874_v1, %s5348_s15  ;;  %5139 = vrcp.f32 %v6855_v11  ;;  %v2451_v63 = vpop.xlane.xlu1 %2450  ;;  %v5132_v11 = vpop.eup %5131  ;;  %v3606_v1 = vld [vmem:[%s7193_s3 + $0x70] sm:$0xff]  ;;  %s7141_s15 = scalar_lea.hbm %s7195_s5, %s4051_s12 }
 0x54d   : > { %v4582_v62 = vpop.f32.mrf.mxu1  ;;  %5141 = vrcp.f32 %v2436_v25  ;;  %4686 = vmatprep.subr.mxu0 %v3606_v1  ;;  %4741 = vmatprep.subr.mxu1 %v3606_v1 }
 0x54e   : > { %5143 = vrcp.f32 %v6859_v20  ;;  %v2686_v60 = vmul.f32 %v5128_v48, %v4582_v62  ;;  %4687 = vmatpush3.msra.mxu0 %v3606_v1  ;;  %4757 = vmatpush3.msra.mxu1 %v3606_v1 }
 0x54f   : > { %v2590_v18 = vpop.f32.mrf.mxu1  ;;  %5145 = vrcp.f32 %v2445_v10 }
 0x550   : > { %5147 = vrcp.f32 %v2418_v32  ;;  %v2448_v21 = vpop.xlane.xlu1 %2447  ;;  %v2685_v32 = vmul.f32 %v5132_v11, %v2590_v18 }
 0x551   : > { %5149 = vrcp.f32 %v2442_v41 }
 0x552   : > { %5151 = vrcp.f32 %v2427_v55 }
 0x553   : > { %5153 = vrcp.f32 %v2451_v63 }
 0x554   : > { %5155 = vrcp.f32 %v2424_v24 }
 0x555   : > { %5157 = vrcp.f32 %v2448_v21 }
 0x556   : > { %v4585_v12 = vpop.f32.mrf.mxu1  ;;  %v5134_v20 = vpop.eup %5133 }
 0x557   : > { %v5136_v42 = vpop.eup %5135 }
 0x558   : > { %v2600_v3 = vpop.f32.mrf.mxu1  ;;  %v5138_v8 = vpop.eup %5137  ;;  %v2688_v45 = vmul.f32 %v5136_v42, %v4585_v12  ;;  %v3605_v12 = vld [vmem:[%s7193_s3 + $0x68] sm:$0xff] }
 0x559   : > { %v5140_v6 = vpop.eup %5139  ;;  %4688 = vmatprep.subr.mxu0 %v3605_v12  ;;  %4742 = vmatprep.subr.mxu1 %v3605_v12 }
 0x55a   : > { %v4588_v9 = vpop.f32.mrf.mxu1  ;;  %v5142_v57 = vpop.eup %5141  ;;  %v2687_v39 = vmul.f32 %v5140_v6, %v2600_v3  ;;  %4689 = vmatpush3.msra.mxu0 %v3605_v12  ;;  %4758 = vmatpush3.msra.mxu1 %v3605_v12 }
 0x55b   : > { %v5144_v61 = vpop.eup %5143 }
 0x55c   : > { %v2610_v34 = vpop.f32.mrf.mxu1  ;;  %v5146_v55 = vpop.eup %5145  ;;  %v2690_v24 = vmul.f32 %v5144_v61, %v4588_v9 }
 0x55d   : > { %v5148_v62 = vpop.eup %5147 }
 0x55e   : > { %v5150_v50 = vpop.eup %5149  ;;  %v2689_v63 = vmul.f32 %v5148_v62, %v2610_v34 }
 0x55f   : > { %v5152_v3 = vpop.eup %5151 }
 0x560   : > { %v5154_v9 = vpop.eup %5153 }
 0x561   : > { %v6874_v47 = vpop.f32.mrf.mxu1  ;;  %v5156_v11 = vpop.eup %5155 }
 0x562   : > { %v5158_v34 = vpop.eup %5157 }
 0x563   : > { %v6876_v37 = vpop.f32.mrf.mxu1 }
 0x565   : > { %v4594_v22 = vpop.f32.mrf.mxu1 }
 0x566   : > { %v2694_v16 = vmul.f32 %v5130_v30, %v4594_v22  ;;  %v3604_v22 = vld [vmem:[%s7193_s3 + $0x60] sm:$0xff] }
 0x567   : > { %v2630_v14 = vpop.f32.mrf.mxu1  ;;  %4690 = vmatprep.subr.mxu0 %v3604_v22  ;;  %4743 = vmatprep.subr.mxu1 %v3604_v22 }
 0x568   : > { %v4879_v4 = vpack.i.bf16 %v2694_v16, %v2686_v60  ;;  %v2693_v33 = vmul.f32 %v5134_v20, %v2630_v14  ;;  %v2692_v60 = vmul.f32 %v5152_v3, %v6874_v47  ;;  %v6896_v14 = vpop.xlane.xlu1 %3058  ;;  %v3603_v47 = vld [vmem:[%s7193_s3 + $0x58] sm:$0xff]  ;;  %4691 = vmatpush3.msra.mxu0 %v3604_v22  ;;  %4759 = vmatpush3.msra.mxu1 %v3604_v22 }
 0x569   : > { %v4597_v40 = vpop.f32.mrf.mxu1  ;;  %4692 = vmatprep.subr.mxu0 %v3603_v47  ;;  %4744 = vmatprep.subr.mxu1 %v3603_v47  ;;  %5159 = vrcp.f32 %v6896_v14 }
 0x56a   : > { %v4884_v46 = vpack.i.bf16 %v2693_v33, %v2685_v32  ;;  %v2696_v52 = vmul.f32 %v5138_v8, %v4597_v40  ;;  %4880 = vrot.lane.b32.xlu0 %v4879_v4, %s5347_s8  ;;  %v2691_v32 = vmul.f32 %v5156_v11, %v6876_v37  ;;  %v3602_v40 = vld [vmem:[%s7193_s3 + $0x50] sm:$0xff]  ;;  %4693 = vmatpush3.msra.mxu0 %v3603_v47  ;;  %v3601_v37 = vld [vmem:[%s7193_s3 + $0x48] sm:$0xff] }
 0x56b   : > { %v2640_v43 = vpop.f32.mrf.mxu1  ;;  %4760 = vmatpush3.msra.mxu1 %v3603_v47  ;;  %4694 = vmatprep.subr.mxu0 %v3602_v40  ;;  %v3593_v11 = vld [vmem:[%s7193_s3 + $0x8] sm:$0xff] }
 0x56c   : > { %v4889_v53 = vpack.i.bf16 %v2696_v52, %v2688_v45  ;;  %v2695_v58 = vmul.f32 %v5142_v57, %v2640_v43  ;;  %4885 = vrot.lane.b32.xlu1 %v4884_v46, %s5347_s8  ;;  %v3056_v6 = vpop.xlane.xlu1 %3055  ;;  %4745 = vmatprep.subr.mxu1 %v3602_v40  ;;  %v3600_v45 = vld [vmem:[%s7193_s3 + $0x40] sm:$0xff]  ;;  %v3599_v46 = vld [vmem:[%s7193_s3 + $0x38] sm:$0xff]  ;;  %v3598_v52 = vld [vmem:[%s7193_s3 + $0x30] sm:$0xff] }
 0x56d   : > { %v4600_v25 = vpop.f32.mrf.mxu1  ;;  %4695 = vmatpush3.msra.mxu0 %v3602_v40  ;;  %4761 = vmatpush3.msra.mxu1 %v3602_v40  ;;  %v3597_v43 = vld [vmem:[%s7193_s3 + $0x28] sm:$0xff] }
 0x56e   : > { %v4894_v10 = vpack.i.bf16 %v2695_v58, %v2687_v39  ;;  %v2698_v18 = vmul.f32 %v5146_v55, %v4600_v25  ;;  %4890 = vrot.lane.b32.xlu0 %v4889_v53, %s5347_s8  ;;  %4696 = vmatprep.subr.mxu0 %v3601_v37  ;;  %v3595_v39 = vld [vmem:[%s7193_s3 + $0x18] sm:$0xff]  ;;  %v3065_v58 = vpop.xlane.xlu0 %3064 }
 0x56f   : > { %v2650_v41 = vpop.f32.mrf.mxu1  ;;  %4746 = vmatprep.subr.mxu1 %v3601_v37  ;;  %4697 = vmatpush3.msra.mxu0 %v3601_v37 }
 0x570   : > { %v4899_v21 = vpack.i.bf16 %v2698_v18, %v2690_v24  ;;  %v2697_v48 = vmul.f32 %v5150_v50, %v2650_v41  ;;  %4895 = vrot.lane.b32.xlu1 %v4894_v10, %s5347_s8  ;;  %4762 = vmatpush3.msra.mxu1 %v3601_v37  ;;  %v6920_v57 = vpop.xlane.xlu1 %1160 }
 0x571   : > { %v4603_v30 = vpop.f32.mrf.mxu1  ;;  %4698 = vmatprep.subr.mxu0 %v3600_v45  ;;  %4747 = vmatprep.subr.mxu1 %v3600_v45 }
 0x572   : > { %v4904_v16 = vpack.i.bf16 %v2697_v48, %v2689_v63  ;;  %v2700_v20 = vmul.f32 %v5154_v9, %v4603_v30  ;;  %4900 = vrot.lane.b32.xlu0 %v4899_v21, %s5347_s8  ;;  %4699 = vmatpush3.msra.mxu0 %v3600_v45  ;;  %v3062_v25 = vpop.xlane.xlu0 %3061  ;;  %v3594_v9 = vld [vmem:[%s7193_s3 + $0x10] sm:$0xff] }
 0x573   : > { %v2660_v42 = vpop.f32.mrf.mxu1  ;;  %4763 = vmatpush3.msra.mxu1 %v3600_v45  ;;  %4700 = vmatprep.subr.mxu0 %v3599_v46 }
 0x574   : > { %v4909_v4 = vpack.i.bf16 %v2700_v20, %v2692_v60  ;;  %v2699_v33 = vmul.f32 %v5158_v34, %v2660_v42  ;;  %4905 = vrot.lane.b32.xlu1 %v4904_v16, %s5347_s8  ;;  %4748 = vmatprep.subr.mxu1 %v3599_v46  ;;  %v3083_v61 = vpop.xlane.xlu1 %3082  ;;  %v3592_v60 = vld [vmem:[%s7193_s3] sm:$0xff] }
 0x575   : > { %4701 = vmatpush3.msra.mxu0 %v3599_v46  ;;  %4764 = vmatpush3.msra.mxu1 %v3599_v46  ;;  %5161 = vrcp.f32 %v3083_v61 }
 0x576   : > { %v4914_v8 = vpack.i.bf16 %v2699_v33, %v2691_v32  ;;  %4910 = vrot.lane.b32.xlu0 %v4909_v4, %s5347_s8  ;;  %4702 = vmatprep.subr.mxu0 %v3598_v52  ;;  %v3071_v18 = vpop.xlane.xlu0 %3070  ;;  %5163 = vrcp.f32 %v3056_v6  ;;  %v5160_v34 = vpop.eup %5159 }
 0x577   : > { %4749 = vmatprep.subr.mxu1 %v3598_v52  ;;  %4703 = vmatpush3.msra.mxu0 %v3598_v52 }
 0x578   : > { %4915 = vrot.lane.b32.xlu1 %v4914_v8, %s5347_s8  ;;  %4765 = vmatpush3.msra.mxu1 %v3598_v52  ;;  %v3080_v53 = vpop.xlane.xlu1 %3079 }
 0x579   : > { %4704 = vmatprep.subr.mxu0 %v3597_v43  ;;  %4750 = vmatprep.subr.mxu1 %v3597_v43  ;;  %5165 = vrcp.f32 %v3080_v53 }
 0x57a   : > { %4705 = vmatpush3.msra.mxu0 %v3597_v43  ;;  %4766 = vmatpush3.msra.mxu1 %v3597_v43  ;;  %v3068_v41 = vpop.xlane.xlu0 %3067  ;;  %5167 = vrcp.f32 %v3065_v58 }
 0x57b   : > { %4706 = vmatprep.subr.mxu0 %v3596_v54  ;;  %4751 = vmatprep.subr.mxu1 %v3596_v54  ;;  %5169 = vrcp.f32 %v3062_v25 }
 0x57c   : > { %4707 = vmatpush3.msra.mxu0 %v3596_v54  ;;  %4767 = vmatpush3.msra.mxu1 %v3596_v54  ;;  %v3089_v1 = vpop.xlane.xlu1 %3088 }
 0x57d   : > { %4708 = vmatprep.subr.mxu0 %v3595_v39  ;;  %4752 = vmatprep.subr.mxu1 %v3595_v39  ;;  %5171 = vrcp.f32 %v3089_v1 }
 0x57e   : > { %4709 = vmatpush3.msra.mxu0 %v3595_v39  ;;  %4768 = vmatpush3.msra.mxu1 %v3595_v39  ;;  %v3077_v48 = vpop.xlane.xlu0 %3076 }
 0x57f   : > { %v4662_v55 = vpop.f32.mrf.mxu1  ;;  %4710 = vmatprep.subr.mxu0 %v3594_v9  ;;  %4753 = vmatprep.subr.mxu1 %v3594_v9 }
 0x580   : > { %v3086_v24 = vpop.xlane.xlu1 %3085  ;;  %4711 = vmatpush3.msra.mxu0 %v3594_v9  ;;  %4769 = vmatpush3.msra.mxu1 %v3594_v9  ;;  %v3336_v33 = vmul.f32 %v5160_v34, %v4662_v55 }
 0x581   : > { %v3240_v62 = vpop.f32.mrf.mxu1  ;;  %5173 = vrcp.f32 %v3086_v24  ;;  %4712 = vmatprep.subr.mxu0 %v3593_v11  ;;  %4754 = vmatprep.subr.mxu1 %v3593_v11 }
 0x582   : > { %5175 = vrcp.f32 %v3071_v18  ;;  %4713 = vmatpush3.msra.mxu0 %v3593_v11  ;;  %4770 = vmatpush3.msra.mxu1 %v3593_v11  ;;  %v3074_v16 = vpop.xlane.xlu0 %3073  ;;  %v5162_v42 = vpop.eup %5161 }
 0x583   : > { %v6931_v10 = vpop.f32.mrf.mxu1  ;;  %4714 = vmatprep.subr.mxu0 %v3592_v60  ;;  %4755 = vmatprep.subr.mxu1 %v3592_v60  ;;  %v5164_v4 = vpop.eup %5163 }
 0x584   : > { %v3095_v12 = vpop.xlane.xlu1 %3094  ;;  %4715 = vmatpush3.msra.mxu0 %v3592_v60  ;;  %4771 = vmatpush3.msra.mxu1 %v3592_v60  ;;  %v3335_v6 = vmul.f32 %v5164_v4, %v3240_v62 }
 0x585   : > { %v6933_v50 = vpop.f32.mrf.mxu1  ;;  %5177 = vrcp.f32 %v3095_v12 }
 0x586   : > { %5179 = vrcp.f32 %v3068_v41  ;;  %v5166_v8 = vpop.eup %5165 }
 0x587   : > { %v6936_v3 = vpop.f32.mrf.mxu1  ;;  %v5168_v37 = vpop.eup %5167 }
 0x588   : > { %v3092_v63 = vpop.xlane.xlu1 %3091  ;;  %v5170_v52 = vpop.eup %5169  ;;  %v3338_v53 = vmul.f32 %v5168_v37, %v6931_v10 }
 0x589   : > { %v6938_v21 = vpop.f32.mrf.mxu1  ;;  %5181 = vrcp.f32 %v3092_v63  ;;  %v3337_v55 = vmul.f32 %v5170_v52, %v6933_v50 }
 0x58a   : > { %5183 = vrcp.f32 %v3077_v48  ;;  %v5172_v54 = vpop.eup %5171 }
 0x58b   : > { %v6943_v22 = vpop.f32.mrf.mxu1 }
 0x58c   : > { %v3101_v30 = vpop.xlane.xlu1 %3100 }
 0x58d   : > { %v3270_v20 = vpop.f32.mrf.mxu1  ;;  %5185 = vrcp.f32 %v3101_v30 }
 0x58e   : > { %5187 = vrcp.f32 %v3074_v16  ;;  %v5174_v39 = vpop.eup %5173 }
 0x58f   : > { %v5176_v24 = vpop.eup %5175 }
 0x590   : > { %v3098_v14 = vpop.xlane.xlu1 %3097  ;;  %v3340_v48 = vmul.f32 %v5176_v24, %v6936_v3 }
 0x591   : > { %5189 = vrcp.f32 %v3098_v14 }
 0x592   : > { %v5178_v18 = vpop.eup %5177  ;;  %5191 = vrcp.f32 %v6800_v15 }
 0x593   : > { %v5180_v63 = vpop.eup %5179  ;;  %5193 = vrcp.f32 %v6817_v23 }
 0x594   : > { %v3339_v50 = vmul.f32 %v5180_v63, %v6938_v21  ;;  %v1137_v21 = vpop.xlane.xlu0 %1136  ;;  %5195 = vrcp.f32 %v6825_v51 }
 0x595   : > { %5197 = vrcp.f32 %v6832_v26 }
 0x596   : > { %v5182_v30 = vpop.eup %5181  ;;  %5199 = vrcp.f32 %v6841_v29 }
 0x597   : > { %v5184_v11 = vpop.eup %5183  ;;  %5201 = vrcp.f32 %v6845_v27 }
 0x598   : > { %5203 = vrcp.f32 %v1137_v21 }
 0x59a   : > { %v5186_v34 = vpop.eup %5185 }
 0x5ae   : > { %v4674_v32 = vpop.f32.mrf.mxu1 }
 0x5af   : > { %v3344_v47 = vmul.f32 %v5162_v42, %v4674_v32  ;;  %v5188_v42 = vpop.eup %5187  ;;  %v3342_v32 = vmul.f32 %v5184_v11, %v6943_v22 }
 0x5b0   : > { %v3280_v40 = vpop.f32.mrf.mxu1  ;;  %v5190_v3 = vpop.eup %5189 }
 0x5b1   : > { %v4919_v45 = vpack.i.bf16 %v3344_v47, %v3336_v33  ;;  %v3343_v46 = vmul.f32 %v5166_v8, %v3280_v40  ;;  %v3341_v8 = vmul.f32 %v5188_v42, %v3270_v20  ;;  %v5192_v51 = vpop.eup %5191 }
 0x5b2   : > { %v4677_v43 = vpop.f32.mrf.mxu1  ;;  %v5194_v26 = vpop.eup %5193 }
 0x5b3   : > { %v4924_v61 = vpack.i.bf16 %v3343_v46, %v3335_v6  ;;  %4920 = vrot.lane.b32.xlu0 %v4919_v45, %s5346_s7  ;;  %v3346_v58 = vmul.f32 %v5172_v54, %v4677_v43  ;;  %v1140_v45 = vpop.xlane.xlu0 %1139  ;;  %v1164_v46 = vpop.xlane.xlu1 %1163 }
 0x5b4   : > { %v3290_v1 = vpop.f32.mrf.mxu1  ;;  %5205 = vrcp.f32 %v1140_v45 }
 0x5b5   : > { %v3345_v25 = vmul.f32 %v5174_v39, %v3290_v1  ;;  %4925 = vrot.lane.b32.xlu1 %v4924_v61, %s5346_s7  ;;  %v4929_v62 = vpack.i.bf16 %v3346_v58, %v3338_v53 }
 0x5b6   : > { %v4680_v41 = vpop.f32.mrf.mxu1 }
 0x5b7   : > { %v4934_v12 = vpack.i.bf16 %v3345_v25, %v3337_v55  ;;  %v3348_v9 = vmul.f32 %v5178_v18, %v4680_v41  ;;  %4930 = vrot.lane.b32.xlu0 %v4929_v62, %s5346_s7  ;;  %v1143_v22 = vpop.xlane.xlu0 %1142  ;;  %v1167_v52 = vpop.xlane.xlu1 %1166 }
 0x5b8   : > { %v3300_v10 = vpop.f32.mrf.mxu1  ;;  %5207 = vrcp.f32 %v1143_v22  ;;  %v5196_v55 = vpop.eup %5195 }
 0x5b9   : > { %4935 = vrot.lane.b32.xlu1 %v4934_v12, %s5346_s7  ;;  %v4939_v60 = vpack.i.bf16 %v3348_v9, %v3340_v48  ;;  %v3347_v16 = vmul.f32 %v5182_v30, %v3300_v10  ;;  %5209 = vrcp.f32 %v6920_v57  ;;  %v5198_v25 = vpop.eup %5197  ;;  %v1378_v48 = vmul.f32 %v5196_v55, %v6776_v38 }
 0x5ba   : > { %v4683_v14 = vpop.f32.mrf.mxu1  ;;  %5211 = vrcp.f32 %v1164_v46  ;;  %v5200_v24 = vpop.eup %5199  ;;  %v1377_v30 = vmul.f32 %v5194_v26, %v6781_v0  ;;  %v1385_v10 = vmul.f32 %v5192_v51, %v6815_v36 }
 0x5bb   : > { %v4944_v4 = vpack.i.bf16 %v3347_v16, %v3339_v50  ;;  %v3350_v33 = vmul.f32 %v5186_v34, %v4683_v14  ;;  %4940 = vrot.lane.b32.xlu0 %v4939_v60, %s5346_s7  ;;  %v6964_v43 = vpop.permute.xlu0 %4845  ;;  %v6966_v54 = vpop.permute.xlu1 %4840  ;;  %5213 = vrcp.f32 %v1167_v52  ;;  %v1379_v50 = vmul.f32 %v5198_v25, %v6789_v59 }
 0x5bc   : > { %v3310_v47 = vpop.f32.mrf.mxu1  ;;  %v5202_v62 = vpop.eup %5201  ;;  %v1380_v60 = vmul.f32 %v5200_v24, %v6784_v28  ;;  %v4843_v42 = vunpack.i.h.bf16 %v6966_v54  ;;  %v4842_v38 = vunpack.i.l.bf16 %v6966_v54  ;;  %v4848_v36 = vunpack.i.h.bf16 %v6964_v43 }
 0x5bd   : > { %v4954_v40 = vpack.i.bf16 %v3350_v33, %v3342_v32  ;;  %v3349_v37 = vmul.f32 %v5190_v3, %v3310_v47  ;;  %4945 = vrot.lane.b32.xlu1 %v4944_v4, %s5346_s7  ;;  %v5204_v18 = vpop.eup %5203  ;;  %v1381_v16 = vmul.f32 %v5202_v62, %v6797_v17  ;;  %v4847_v59 = vunpack.i.l.bf16 %v6964_v43 }
 0x5be   : > { %v1382_v34 = vmul.f32 %v5204_v18, %v6794_v13  ;;  %v3551_v45 = vsel %vm789_vm0, %v1385_v10, %v4848_v36 }
 0x5bf   : > { %v4949_v6 = vpack.i.bf16 %v3349_v37, %v3341_v8  ;;  %4955 = vrot.lane.b32.xlu0 %v4954_v40, %s5346_s7  ;;  %v6968_v61 = vpop.permute.xlu0 %4850  ;;  %v6970_v20 = vpop.permute.xlu1 %4855  ;;  %v3552_v40 = vsel %vm789_vm0, %v6823_v19, %v4843_v42  ;;  %v3544_v37 = vsel %vm789_vm0, %v1378_v48, %v4842_v38 }
 0x5c0   : > { %v4852_v28 = vunpack.i.l.bf16 %v6968_v61  ;;  %v4858_v17 = vunpack.i.h.bf16 %v6970_v20  ;;  %v4853_v13 = vunpack.i.h.bf16 %v6968_v61  ;;  %v4857_v4 = vunpack.i.l.bf16 %v6970_v20 }
 0x5c1   : > { %4950 = vrot.lane.b32.xlu1 %v4949_v6, %s5346_s7  ;;  %v5206_v12 = vpop.eup %5205 }
 0x5c2   : > { %v7009_v32 = vmul.f32 %v5206_v12, %v6807_v49  ;;  %v3553_v46 = vsel %vm789_vm0, %v6828_v56, %v4858_v17  ;;  %v3545_v43 = vsel %vm789_vm0, %v1379_v50, %v4857_v4  ;;  %v3554_v54 = vsel %vm789_vm0, %v6835_v35, %v4853_v13 }
 0x5c3   : > { %v6972_v39 = vpop.permute.xlu0 %4860  ;;  %v6975_v53 = vpop.permute.xlu1 %4865 }
 0x5c4   : > { %v4867_v47 = vunpack.i.l.bf16 %v6975_v53  ;;  %v4863_v6 = vunpack.i.h.bf16 %v6972_v39 }
 0x5c5   : > { %v5208_v63 = vpop.eup %5207 }
 0x5c6   : > { %v5210_v57 = vpop.eup %5209  ;;  %v7012_v0 = vmul.f32 %v5208_v63, %v6802_v7  ;;  %v4868_v7 = vunpack.i.h.bf16 %v6975_v53 }
 0x5c7   : > { %v6981_v58 = vpop.permute.xlu0 %4870  ;;  %v6984_v1 = vpop.permute.xlu1 %4875  ;;  %v1390_v49 = vmul.f32 %v5210_v57, %v6830_v44  ;;  %v4862_v44 = vunpack.i.l.bf16 %v6972_v39  ;;  %v7051_v39 = vsel %vm789_vm0, %v1381_v16, %v4867_v47 }
 0x5c8   : > { %v5212_v11 = vpop.eup %5211  ;;  %v7055_v56 = vsel %vm789_vm0, %v6839_v31, %v4868_v7  ;;  %v4873_v47 = vunpack.i.h.bf16 %v6981_v58 }
 0x5c9   : > { %v5214_v14 = vpop.eup %5213  ;;  %v7024_v3 = vmul.f32 %v5212_v11, %v6849_v5  ;;  %v3543_v5 = vsel %vm789_vm0, %v1377_v30, %v4847_v59  ;;  %v3548_v26 = vsel %vm789_vm0, %v1382_v34, %v4862_v44  ;;  %v3556_v55 = vsel %vm789_vm0, %v1390_v49, %v4863_v6 }
 0x5ca   : > { %v7029_v8 = vmul.f32 %v5214_v14, %v6847_v2  ;;  %v3546_v2 = vsel %vm789_vm0, %v1380_v60, %v4852_v28  ;;  %v4878_v6 = vunpack.i.h.bf16 %v6984_v1  ;;  %v4877_v44 = vunpack.i.l.bf16 %v6984_v1 }
 0x5dc   : > { %v6986_v15 = vpop.permute.xlu0 %4880 }
 0x5dd   : > { %v4883_v61 = vunpack.i.h.bf16 %v6986_v15  ;;  %v4882_v20 = vunpack.i.l.bf16 %v6986_v15 }
 0x5de   : > { %v6989_v23 = vpop.permute.xlu1 %4885 }
 0x5df   : > { %v4888_v22 = vunpack.i.h.bf16 %v6989_v23  ;;  %v4887_v19 = vunpack.i.l.bf16 %v6989_v23  ;;  %v3568_v63 = vsel %vm1023_vm1, %v3552_v40, %v4883_v61  ;;  %v3560_v57 = vsel %vm1023_vm1, %v3544_v37, %v4882_v20 }
 0x5e0   : > { %v6991_v29 = vpop.permute.xlu0 %4890  ;;  %v4872_v40 = vunpack.i.l.bf16 %v6981_v58 }
 0x5e1   : > { %v4893_v35 = vunpack.i.h.bf16 %v6991_v29  ;;  %v4892_v25 = vunpack.i.l.bf16 %v6991_v29  ;;  %v3559_v31 = vsel %vm1023_vm1, %v3543_v5, %v4887_v19  ;;  %v3567_v12 = vsel %vm1023_vm1, %v3551_v45, %v4888_v22 }
 0x5e2   : > { %v6993_v27 = vpop.permute.xlu1 %4895 }
 0x5e3   : > { %v4898_v62 = vunpack.i.h.bf16 %v6993_v27  ;;  %v4897_v18 = vunpack.i.l.bf16 %v6993_v27  ;;  %v3562_v14 = vsel %vm1023_vm1, %v3546_v2, %v4892_v25  ;;  %v3570_v42 = vsel %vm1023_vm1, %v3554_v54, %v4893_v35 }
 0x5e4   : > { %v6995_v41 = vpop.permute.xlu0 %4900 }
 0x5e5   : > { %v4903_v38 = vunpack.i.h.bf16 %v6995_v41  ;;  %v4902_v36 = vunpack.i.l.bf16 %v6995_v41  ;;  %v3561_v59 = vsel %vm1023_vm1, %v3545_v43, %v4897_v18  ;;  %v3569_v28 = vsel %vm1023_vm1, %v3553_v46, %v4898_v62 }
 0x5e6   : > { %v6998_v9 = vpop.permute.xlu1 %4905  ;;  %v3550_v62 = vsel %vm789_vm0, %v7012_v0, %v4872_v40  ;;  %v3558_v18 = vsel %vm789_vm0, %v7029_v8, %v4873_v47  ;;  %v4044_v0 = vld [vmem:[%s7194_s4] ss:$0 sm:$0xff] }
 0x5e7   : > { %v4908_v17 = vunpack.i.h.bf16 %v6998_v9  ;;  %v4907_v13 = vunpack.i.l.bf16 %v6998_v9  ;;  %v3564_v22 = vsel %vm1023_vm1, %v3548_v26, %v4902_v36  ;;  %v3572_v58 = vsel %vm1023_vm1, %v3556_v55, %v4903_v38 }
 0x5e8   : > { %v7020_v33 = vpop.permute.xlu0 %4910 }
 0x5e9   : > { %v3563_v54 = vsel %vm1023_vm1, %v7051_v39, %v4907_v13  ;;  %v3571_v1 = vsel %vm1023_vm1, %v7055_v56, %v4908_v17  ;;  %v4913_v61 = vunpack.i.h.bf16 %v7020_v33  ;;  %v4912_v20 = vunpack.i.l.bf16 %v7020_v33 }
 0x5ea   : > { %v7036_v21 = vpop.permute.xlu1 %4915  ;;  %v3549_v33 = vsel %vm789_vm0, %v7009_v32, %v4877_v44  ;;  %v3557_v56 = vsel %vm789_vm0, %v7024_v3, %v4878_v6 }
 0x5eb   : > { %v4918_v19 = vunpack.i.h.bf16 %v7036_v21  ;;  %v3566_v32 = vsel %vm1023_vm1, %v3550_v62, %v4912_v20 }
 0x625   : > { %v4921_v52 = vpop.permute.xlu0 %4920 }
 0x626   : > { %v4923_v53 = vunpack.i.h.bf16 %v4921_v52  ;;  %v4922_v51 = vunpack.i.l.bf16 %v4921_v52  ;;  %v4917_v52 = vunpack.i.l.bf16 %v7036_v21 }
 0x627   : > { %v4926_v23 = vpop.permute.xlu1 %4925 }
 0x628   : > { %v4928_v24 = vunpack.i.h.bf16 %v4926_v23  ;;  %v4927_v15 = vunpack.i.l.bf16 %v4926_v23  ;;  %v3577_v27 = vsel %vm3575_vm2, %v3560_v57, %v4922_v51  ;;  %v3585_v60 = vsel %vm3575_vm2, %v3568_v63, %v4923_v53 }
 0x629   : > { %v4931_v48 = vpop.permute.xlu0 %4930  ;;  %v3574_v63 = vsel %vm1023_vm1, %v3558_v18, %v4913_v61 }
 0x62a   : > { %v3576_v30 = vsel %vm3575_vm2, %v3559_v31, %v4927_v15  ;;  %v3584_v10 = vsel %vm3575_vm2, %v3567_v12, %v4928_v24  ;;  %v4933_v29 = vunpack.i.h.bf16 %v4931_v48  ;;  %v4932_v11 = vunpack.i.l.bf16 %v4931_v48 }
 0x62b   : > { %v4936_v50 = vpop.permute.xlu1 %4935  ;;  %4716 = vmatprep.mubr.f32.mxu0 %v3576_v30  ;;  %4728 = vmatprep.mubr.f32.mxu1 %v3584_v10  ;;  %v3565_v24 = vsel %vm1023_vm1, %v3549_v33, %v4917_v52  ;;  %v3573_v15 = vsel %vm1023_vm1, %v3557_v56, %v4918_v19 }
 0x62c   : > { %v4938_v16 = vunpack.i.h.bf16 %v4936_v50  ;;  %v4937_v34 = vunpack.i.l.bf16 %v4936_v50  ;;  %4717 = vmatmul.mubr.f32.vlgmr.msra.gmra.mxu0 %v3577_v27  ;;  %4729 = vmatmul.mubr.f32.vlgmr.msra.gmra.mxu1 %v3585_v60  ;;  %v3579_v41 = vsel %vm3575_vm2, %v3562_v14, %v4932_v11  ;;  %v3587_v37 = vsel %vm3575_vm2, %v3570_v42, %v4933_v29 }
 0x62d   : > { %v4941_v4 = vpop.permute.xlu0 %4940 }
 0x62e   : > { %v3578_v49 = vsel %vm3575_vm2, %v3561_v59, %v4937_v34  ;;  %v3586_v7 = vsel %vm3575_vm2, %v3569_v28, %v4938_v16  ;;  %v4943_v9 = vunpack.i.h.bf16 %v4941_v4  ;;  %v4942_v5 = vunpack.i.l.bf16 %v4941_v4 }
 0x62f   : > { %4719 = vmatprep.mubr.f32.mxu0 %v3578_v49  ;;  %4731 = vmatprep.mubr.f32.mxu1 %v3586_v7  ;;  %v4946_v45 = vpop.permute.xlu1 %4945 }
 0x630   : > { %4720 = vmatmul.mubr.f32.gmra.mxu0 %v3579_v41  ;;  %4732 = vmatmul.mubr.f32.gmra.mxu1 %v3587_v37  ;;  %v4948_v46 = vunpack.i.h.bf16 %v4946_v45  ;;  %v4947_v2 = vunpack.i.l.bf16 %v4946_v45  ;;  %v3581_v21 = vsel %vm3575_vm2, %v3564_v22, %v4942_v5  ;;  %v3589_v39 = vsel %vm3575_vm2, %v3572_v58, %v4943_v9 }
 0x631   : > { %v4956_v43 = vpop.permute.xlu0 %4955 }
 0x632   : > { %v3580_v53 = vsel %vm3575_vm2, %v3563_v54, %v4947_v2  ;;  %v3588_v51 = vsel %vm3575_vm2, %v3571_v1, %v4948_v46  ;;  %v4958_v23 = vunpack.i.h.bf16 %v4956_v43  ;;  %v4957_v26 = vunpack.i.l.bf16 %v4956_v43 }
 0x633   : > { %v4951_v55 = vpop.permute.xlu1 %4950  ;;  %4722 = vmatprep.mubr.f32.mxu0 %v3580_v53  ;;  %4734 = vmatprep.mubr.f32.mxu1 %v3588_v51 }
 0x634   : > { %v4953_v35 = vunpack.i.h.bf16 %v4951_v55  ;;  %v4952_v25 = vunpack.i.l.bf16 %v4951_v55  ;;  %4723 = vmatmul.mubr.f32.gmra.mxu0 %v3581_v21  ;;  %4735 = vmatmul.mubr.f32.gmra.mxu1 %v3589_v39  ;;  %v3583_v3 = vsel %vm3575_vm2, %v3566_v32, %v4957_v26  ;;  %v3591_v57 = vsel %vm3575_vm2, %v3574_v63, %v4958_v23 }
 0x636   : > { %v3582_v31 = vsel %vm3575_vm2, %v3565_v24, %v4952_v25  ;;  %v3590_v12 = vsel %vm3575_vm2, %v3573_v15, %v4953_v35 }
 0x637   : > { %4725 = vmatprep.mubr.f32.mxu0 %v3582_v31  ;;  %4737 = vmatprep.mubr.f32.mxu1 %v3590_v12 }
 0x638   : > { %4726 = vmatmul.mubr.f32.gmra.mxu0 %v3583_v3  ;;  %4738 = vmatmul.mubr.f32.gmra.mxu1 %v3591_v57 }
 0x6ec   : > { %v4718_v8 = vpop.f32.mrf.mxu0  ;;  %v4730_v48 = vpop.f32.mrf.mxu1 }
 0x6ed   : > { %v3687_v30 = vadd.f32 %v4718_v8, %v4044_v0  ;;  %v3727_v10 = vadd.f32 %v4730_v48, %v4044_v0 }
 0x6ee   : > { %v3681_v29 = vpop.f32.mrf.mxu0  ;;  %v3721_v11 = vpop.f32.mrf.mxu1 }
 0x6ef   : > { %3761 = vst [vmem:[%s7122_s26 + $0x8] sm:$0xff] %v3687_v30  ;;  %3769 = vst [vmem:[%s7122_s26 + $0x48] sm:$0xff] %v3727_v10  ;;  %v3682_v50 = vadd.f32 %v4044_v0, %v3681_v29  ;;  %v3722_v27 = vadd.f32 %v4044_v0, %v3721_v11 }
 0x6f0   : > { %v4721_v60 = vpop.f32.mrf.mxu0  ;;  %v4733_v16 = vpop.f32.mrf.mxu1 }
 0x6f1   : > { %3760 = vst [vmem:[%s7122_s26] sm:$0xff] %v3682_v50  ;;  %3768 = vst [vmem:[%s7122_s26 + $0x40] sm:$0xff] %v3722_v27  ;;  %v3697_v34 = vadd.f32 %v4721_v60, %v4044_v0  ;;  %v3737_v14 = vadd.f32 %v4733_v16, %v4044_v0 }
 0x6f2   : > { %v3691_v42 = vpop.f32.mrf.mxu0  ;;  %v3731_v38 = vpop.f32.mrf.mxu1 }
 0x6f3   : > { %3763 = vst [vmem:[%s7122_s26 + $0x18] sm:$0xff] %v3697_v34  ;;  %3771 = vst [vmem:[%s7122_s26 + $0x58] sm:$0xff] %v3737_v14  ;;  %v3692_v36 = vadd.f32 %v4044_v0, %v3691_v42  ;;  %v3732_v59 = vadd.f32 %v4044_v0, %v3731_v38 }
 0x6f4   : > { %v4724_v28 = vpop.f32.mrf.mxu0  ;;  %v4736_v17 = vpop.f32.mrf.mxu1 }
 0x6f5   : > { %3762 = vst [vmem:[%s7122_s26 + $0x10] sm:$0xff] %v3692_v36  ;;  %3770 = vst [vmem:[%s7122_s26 + $0x50] sm:$0xff] %v3732_v59  ;;  %v3707_v13 = vadd.f32 %v4724_v28, %v4044_v0  ;;  %v3747_v4 = vadd.f32 %v4736_v17, %v4044_v0 }
 0x6f6   : > { %v3701_v49 = vpop.f32.mrf.mxu0  ;;  %v3741_v7 = vpop.f32.mrf.mxu1 }
 0x6f7   : > { %3765 = vst [vmem:[%s7122_s26 + $0x28] sm:$0xff] %v3707_v13  ;;  %3773 = vst [vmem:[%s7122_s26 + $0x68] sm:$0xff] %v3747_v4  ;;  %v3702_v47 = vadd.f32 %v4044_v0, %v3701_v49  ;;  %v3742_v40 = vadd.f32 %v4044_v0, %v3741_v7 }
 0x6f8   : > { %v4727_v41 = vpop.f32.mrf.mxu0  ;;  %v4739_v37 = vpop.f32.mrf.mxu1 }
 0x6f9   : > { %3764 = vst [vmem:[%s7122_s26 + $0x20] sm:$0xff] %v3702_v47  ;;  %3772 = vst [vmem:[%s7122_s26 + $0x60] sm:$0xff] %v3742_v40  ;;  %v3717_v6 = vadd.f32 %v4727_v41, %v4044_v0  ;;  %v3757_v44 = vadd.f32 %v4739_v37, %v4044_v0 }
 0x6fa   : > { %v3711_v9 = vpop.f32.mrf.mxu0  ;;  %v3751_v5 = vpop.f32.mrf.mxu1 }
 0x6fb   : > { %3767 = vst [vmem:[%s7122_s26 + $0x38] sm:$0xff] %v3717_v6  ;;  %3775 = vst [vmem:[%s7122_s26 + $0x78] sm:$0xff] %v3757_v44  ;;  %v3712_v45 = vadd.f32 %v4044_v0, %v3711_v9  ;;  %v3752_v46 = vadd.f32 %v4044_v0, %v3751_v5 }
 0x6fd   : > { %3766 = vst [vmem:[%s7122_s26 + $0x30] sm:$0xff] %v3712_v45  ;;  %3774 = vst [vmem:[%s7122_s26 + $0x70] sm:$0xff] %v3752_v46 }
 0x6fe   : > { %5282 = shalt.err (!%p5279_p0)
}
 0x6ff   : > { %s5283_s10 = scalar_lea.hbm %s7141_s15, 2048  ;;  %s5287_s7 = scalar_lea.hbm %s7195_s5, 4096 }
 0x700   : > { %p5284_p5 = scmp.ne.s32.totalorder %s7141_s15, %s5283_s10  ;;  %p5288_p4 = scmp.lt.s32.totalorder %s7141_s15, %s7195_s5 }
 0x701   : > { %p5289_p6 = scmp.lt.s32.totalorder %s5287_s7, %s5283_s10 }
 0x702   : > { %p5285_p9 = pnand %p5284_p5, %p7289_p11 }
 0x703   : > { %p5290_p8 = por %p5289_p6, %p5288_p4 }
 0x704   : > { %p5286_p1 = pneg %p5285_p9 }
 0x706   : > { %p5291_p3 = pnand %p5290_p8, %p5286_p1 }
 0x708   : > { %5294 = shalt.err (!%p5291_p3)
}
 0x709   : > { %s5350_s12 = smov 128   ;;  %s5351_s17 = smov 8  }
 0x70a   : > { %4778 = dma.vmem_to_hbm [thread:$0]  (%p7289_p11), %s7143_s29, 2048, %s7141_s15, %s3777_s22, %s5350_s12, %s5350_s12, %s5351_s17  }
 0x70b PF: > { %s3805_s6 = sand.u32 1, %s5325_s18   ;;  %p7290_p7 = scmp.ne.s32.totalorder %s7227_s25, 0 }
 0x70c   : > { %p7291_p12 = scmp.ge.s32.totalorder %s5337_s21, 2  ;;  %s3806_s23 = scalar_lea.sflag [#allocation4], %s3805_s6 }
 0x70e   : > { %p4789_p10 = pnand %p7291_p12, %p7290_p7 }
 0x710   : > { %p4790_p2 = pneg %p4789_p10 }
 0x712   : > { %5320 = dma.done.wait (%p4790_p2), %s3806_s23, 2048  }
 0x713   : > { %5322 = vsyncadd (%p4790_p2), %s3806_s23, 4294965248  ;;  %p19_p13 = scmp.ge.s32.totalorder %s5436_s30, 4   ;;  %s7292_s18 = smov %s5329_s19 }
 0x714   : > { %s7293_s19 = smov %s5333_s20  ;;  %s7294_s20 = smov %s5453_s13 }
 0x715   : > { %s7295_s21 = smov %s5436_s30  ;;  %21 = sbr.rel (!%p19_p13) target bundleno = 6 (0x6), region = 89 }
 0x71a   :  { %3811 = vsyncpa [#allocation3], 1 }
 0x71b   :  { %3813 = vsyncpa [#allocation3 + $0x1], 1 }
 0x71c   :  { %3814 = vsyncpa [#allocation6], 1 }
 0x71d   :  { %3815 = vsyncpa [#allocation4], 1 }
 0x71e   :  { %3817 = vsyncpa [#allocation4 + $0x1], 1 }

</bundles_post_ra>
